<compile_context>
chip_gen: v7x
topology: tpu7x:2x2x1
jax: 0.10.0
libtpu: 0.0.40
codegen_flags: <defaults>
</compile_context>

<pallas_src>
import functools
import math

import jax
import jax.numpy as jnp
from jax.experimental import pallas as pl
from jax.experimental.pallas import tpu as pltpu

_LANE = 128


def _round_up(n, m):
    return -(-n // m) * m


@functools.lru_cache(maxsize=1)
def _bf16_elementwise_ok():
    """True if the local TPU generation has bf16 VPU/EUP (v6e and newer)."""
    try:
        kind = jax.devices()[0].device_kind.lower()
    except Exception:  # pragma: no cover - defensive
        return False
    # v2-v5 TensorCores have f32-only VPU/EUP; keep the f32 elementwise path.
    return not any(v in kind for v in ("v2", "v3", "v4", "v5"))


def _decoder_kernel(x_ref, w1_ref, b1_ref, w2_ref, b2_ref, o_ref, *,
                    vpu_layer1, bf16_ew):
    b1 = b1_ref[...].astype(jnp.float32)                     # (1, H)

    if vpu_layer1:
        # latent_dim is tiny (<= 8): a K-deep MXU matmul would be almost
        # entirely padding + result-FIFO latency, so do K broadcast FMAs on
        # the VPU.  Casts hoisted out of the loop (one unpack of x and w1).
        xf = x_ref[...].astype(jnp.float32)                  # (TB, L)
        w1f = w1_ref[...].astype(jnp.float32)                # (L, H)
        h = b1
        for k in range(xf.shape[1]):                         # static trip count
            h = h + xf[:, k:k + 1] * w1f[k:k + 1, :]
    else:
        h = jnp.dot(x_ref[...], w1_ref[...],
                    preferred_element_type=jnp.float32) + b1

    if bf16_ew:
        # v6e/v7x: bf16 EUP runs at ~2x the f32 rate; halves sigmoid cost.
        h = jax.nn.sigmoid(h.astype(jnp.bfloat16))
    else:
        # f32 inputs, or v2-v5 (no bf16 VPU/EUP): keep f32 elementwise path.
        h = jax.nn.sigmoid(h)

    h = h.astype(w2_ref.dtype)
    y = jnp.dot(h, w2_ref[...], preferred_element_type=jnp.float32)   # MXU
    y = y + b2_ref[...].astype(jnp.float32)
    o_ref[...] = y.astype(o_ref.dtype)


def pad_decoder_params(w1, b1, w2, b2):
    """Zero-pad hidden/out dims up to lane (128) multiples.  Call ONCE at init.

    Numerically exact: padded w1 columns / b1 entries are zero, so padded
    hidden units are sigmoid(0)=0.5 -- but the matching (zero) w2 rows kill
    their contribution.  Padded w2 columns / b2 entries are zero, so padded
    output columns are exactly zero and can simply be sliced off by the
    consumer (outside the per-call hot path).
    """
    H = w1.shape[1]
    O = w2.shape[1]
    Hp = _round_up(H, _LANE)
    Op = _round_up(O, _LANE)
    if Hp != H:
        w1 = jnp.pad(w1, ((0, 0), (0, Hp - H)))
        b1 = jnp.pad(b1, ((0, 0), (0, Hp - H)))
        w2 = jnp.pad(w2, ((0, Hp - H), (0, 0)))
    if Op != O:
        w2 = jnp.pad(w2, ((0, 0), (0, Op - O)))
        b2 = jnp.pad(b2, ((0, 0), (0, Op - O)))
    return w1, b1, w2, b2


def _pick_batch_tile(B, dtype, block_b):
    """Batch tile: big enough to amortize per-step overhead, small enough that
    the grid has >=4 steps (v7x megacore split + per-TC pipelining)."""
    sub = 16 if dtype == jnp.bfloat16 else 8
    if block_b is None:
        block_b = 4096 if dtype == jnp.bfloat16 else 2048
    if B <= 4 * sub:
        return B                       # tiny batch: single full-extent block
    target = _round_up(pl.cdiv(B, 4), sub)   # aim for ~4 grid steps
    tb = min(block_b, target)
    return max(sub, (tb // sub) * sub)


def decoder_forward(x, w1, b1, w2, b2, *, block_b=None):
    """Fused Decoder forward: y = sigmoid(x @ w1 + b1) @ w2 + b2.

    x  : (B, latent_dim)
    w1 : (latent_dim, hidden_dim)   (transposed PyTorch weight)
    b1 : (1, hidden_dim)
    w2 : (hidden_dim, out_dim)      (transposed PyTorch weight)
    b2 : (1, out_dim)

    For best performance pass parameters pre-padded with `pad_decoder_params`
    (hidden_dim / out_dim multiples of 128); otherwise this wrapper pads on the
    fly (extra HBM traffic every call).  Returns (B, out_dim_padded) in x's
    dtype with f32 accumulation; if out_dim was padded, slice [:, :out_dim] at
    the consumer.
    """
    B, L = x.shape
    H = w1.shape[1]
    O = w2.shape[1]
    if (H % _LANE) or (O % _LANE):
        # Convenience slow path only -- pre-pad once at init for production.
        w1, b1, w2, b2 = pad_decoder_params(w1, b1, w2, b2)
        H, O = w1.shape[1], w2.shape[1]

    tb = _pick_batch_tile(B, x.dtype, block_b)
    grid = (pl.cdiv(B, tb),)
    # NOTE: when B % tb != 0, the last tile reads past the end of x; that is
    # safe here because there is no cross-row reduction (see module comment).

    bf16_ew = (x.dtype == jnp.bfloat16) and _bf16_elementwise_ok()
    kernel = functools.partial(_decoder_kernel,
                               vpu_layer1=(L <= 8), bf16_ew=bf16_ew)

    itemsize = jnp.dtype(x.dtype).itemsize
    cost = pl.CostEstimate(
        flops=2 * B * (L * H + H * O),
        transcendentals=B * H,                                       # sigmoid
        bytes_accessed=(B * L + L * H + H + H * O + O + B * O) * itemsize,
    )

    return pl.pallas_call(
        kernel,
        out_shape=jax.ShapeDtypeStruct((B, O), x.dtype),
        grid=grid,
        in_specs=[
            pl.BlockSpec((tb, L), lambda i: (i, 0)),     # batch-tiled input
            # Constant (0, 0) index maps: weights/biases stay VMEM-resident
            # across grid steps (Pallas skips the re-DMA on unchanged blocks).
            pl.BlockSpec((L, H), lambda i: (0, 0)),
            pl.BlockSpec((1, H), lambda i: (0, 0)),
            pl.BlockSpec((H, O), lambda i: (0, 0)),
            pl.BlockSpec((1, O), lambda i: (0, 0)),
        ],
        out_specs=pl.BlockSpec((tb, O), lambda i: (i, 0)),
        compiler_params=pltpu.CompilerParams(
            dimension_semantics=("parallel",),           # megacore-shard batch
        ),
        cost_estimate=cost,
    )(x, w1, b1, w2, b2)


def _xavier_uniform(key, fan_in, fan_out, dtype=jnp.float32):
    # Matches torch.nn.init.xavier_uniform_ (gain=1); generated in PyTorch's
    # (out, in) layout then transposed to (in, out).
    limit = math.sqrt(6.0 / (fan_in + fan_out))
    w_pt = jax.random.uniform(key, (fan_out, fan_in), dtype=dtype,
                              minval=-limit, maxval=limit)
    return w_pt.T


def make_decoder_params(key, out_dim, hidden_dim, latent_dim, dtype=jnp.float32):
    k1, k2 = jax.random.split(key)
    w1 = _xavier_uniform(k1, latent_dim, hidden_dim, dtype)   # (latent, hidden)
    b1 = jnp.zeros((1, hidden_dim), dtype)                    # zeros (_init_weights)
    w2 = _xavier_uniform(k2, hidden_dim, out_dim, dtype)      # (hidden, out)
    b2 = jnp.zeros((1, out_dim), dtype)
    return w1, b1, w2, b2


def decoder_reference(x, w1, b1, w2, b2):
    xf, w1f, b1f = (a.astype(jnp.float32) for a in (x, w1, b1))
    w2f, b2f = (a.astype(jnp.float32) for a in (w2, b2))
    h = jax.nn.sigmoid(xf @ w1f + b1f)
    return h @ w2f + b2f


if __name__ == "__main__":
    # Shapes consistent with Decoder(out_dim, hidden_dim, latent_dim, nn.Sigmoid).
    batch = 2048                 # -> tb=512, grid of 4 pipelined steps
    latent_dim = 4
    hidden_dim = 32
    out_dim = 128                # already lane-aligned -> no output slice needed

    key = jax.random.PRNGKey(0)
    kx, kx2, kp = jax.random.split(key, 3)

    x = jax.random.normal(kx, (batch, latent_dim), dtype=jnp.float32)
    w1, b1, w2, b2 = make_decoder_params(kp, out_dim, hidden_dim, latent_dim)

    # Pad parameters ONCE at init (hoisted out of the per-call hot path).
    w1p, b1p, w2p, b2p = pad_decoder_params(w1, b1, w2, b2)

    # --- f32 path (matches PyTorch numerics) ---
    y = jax.block_until_ready(decoder_forward(x, w1p, b1p, w2p, b2p))
    y_ref = decoder_reference(x, w1, b1, w2, b2)
    assert y.shape == (batch, out_dim)
    assert jnp.allclose(y, y_ref, atol=1e-5, rtol=1e-5), "f32 mismatch vs reference"

    # --- larger batch: >=8 grid steps (tb=2048, grid=8) so the pipeline hits
    #     steady state; still tiny in absolute terms (8 MiB output). ---
    xl = jax.random.normal(kx2, (16384, latent_dim), dtype=jnp.float32)
    yl = jax.block_until_ready(decoder_forward(xl, w1p, b1p, w2p, b2p))
    yl_ref = decoder_reference(xl, w1, b1, w2, b2)
    assert yl.shape == (16384, out_dim)
    assert jnp.allclose(yl, yl_ref, atol=1e-5, rtol=1e-5), "f32 (large B) mismatch"

    # --- bf16 weights/activations, f32 accumulation (v6e/v7x fast path;
    #     automatically falls back to f32 elementwise on v2-v5) ---
    to_bf16 = lambda a: a.astype(jnp.bfloat16)
    y_bf16 = jax.block_until_ready(
        decoder_forward(to_bf16(x), to_bf16(w1p), to_bf16(b1p),
                        to_bf16(w2p), to_bf16(b2p)))
    assert y_bf16.shape == (batch, out_dim) and y_bf16.dtype == jnp.bfloat16
    err = float(jnp.max(jnp.abs(y_bf16.astype(jnp.float32) - y_ref)))
    assert err < 0.1, f"bf16 path drifted too far from f32 reference: {err}"

    print("KERNEL_OK")
</pallas_src>

<mosaic_0001>
module attributes {stable_mosaic.version = 11 : i64} {
  func.func @_decoder_kernel(%arg0: i32, %arg1: memref<512x4xf32, #tpu.memory_space<vmem>>, %arg2: memref<4x128xf32, #tpu.memory_space<vmem>>, %arg3: memref<1x128xf32, #tpu.memory_space<vmem>>, %arg4: memref<128x128xf32, #tpu.memory_space<vmem>>, %arg5: memref<1x128xf32, #tpu.memory_space<vmem>>, %arg6: memref<512x128xf32, #tpu.memory_space<vmem>>) attributes {dimension_semantics = [#tpu.dimension_semantics<parallel>], iteration_bounds = array<i64: 4>, scalar_prefetch = 0 : i64, scratch_operands = 0 : i64, tpu.core_type = #tpu.core_type<tc>, window_params = [{transform_indices = @transform_0, window_bounds = array<i64: 512, 4>}, {pipeline_mode = #tpu.pipeline_mode<synchronous>, transform_indices = @transform_1, window_bounds = array<i64: 4, 128>}, {pipeline_mode = #tpu.pipeline_mode<synchronous>, transform_indices = @transform_2, window_bounds = array<i64: 1, 128>}, {pipeline_mode = #tpu.pipeline_mode<synchronous>, transform_indices = @transform_3, window_bounds = array<i64: 128, 128>}, {pipeline_mode = #tpu.pipeline_mode<synchronous>, transform_indices = @transform_4, window_bounds = array<i64: 1, 128>}, {transform_indices = @transform_5, window_bounds = array<i64: 512, 128>}]} {
    %c0 = arith.constant 0 : index
    %c0_0 = arith.constant 0 : index
    %0 = vector.load %arg3[%c0, %c0_0] : memref<1x128xf32, #tpu.memory_space<vmem>>, vector<1x128xf32>
    %c0_1 = arith.constant 0 : index
    %c0_2 = arith.constant 0 : index
    %1 = vector.load %arg1[%c0_1, %c0_2] : memref<512x4xf32, #tpu.memory_space<vmem>>, vector<512x4xf32>
    %c0_3 = arith.constant 0 : index
    %c0_4 = arith.constant 0 : index
    %2 = vector.load %arg2[%c0_3, %c0_4] : memref<4x128xf32, #tpu.memory_space<vmem>>, vector<4x128xf32>
    %3 = vector.extract_strided_slice %1 {offsets = [0, 0], sizes = [512, 1], strides = [1, 1]} : vector<512x4xf32> to vector<512x1xf32>
    %4 = vector.extract_strided_slice %2 {offsets = [0, 0], sizes = [1, 128], strides = [1, 1]} : vector<4x128xf32> to vector<1x128xf32>
    %5 = vector.broadcast %3 : vector<512x1xf32> to vector<512x128xf32>
    %6 = vector.broadcast %4 : vector<1x128xf32> to vector<512x128xf32>
    %7 = arith.mulf %5, %6 : vector<512x128xf32>
    %8 = vector.broadcast %0 : vector<1x128xf32> to vector<512x128xf32>
    %9 = arith.addf %8, %7 : vector<512x128xf32>
    %10 = vector.extract_strided_slice %1 {offsets = [0, 1], sizes = [512, 1], strides = [1, 1]} : vector<512x4xf32> to vector<512x1xf32>
    %11 = vector.extract_strided_slice %2 {offsets = [1, 0], sizes = [1, 128], strides = [1, 1]} : vector<4x128xf32> to vector<1x128xf32>
    %12 = vector.broadcast %10 : vector<512x1xf32> to vector<512x128xf32>
    %13 = vector.broadcast %11 : vector<1x128xf32> to vector<512x128xf32>
    %14 = arith.mulf %12, %13 : vector<512x128xf32>
    %15 = arith.addf %9, %14 : vector<512x128xf32>
    %16 = vector.extract_strided_slice %1 {offsets = [0, 2], sizes = [512, 1], strides = [1, 1]} : vector<512x4xf32> to vector<512x1xf32>
    %17 = vector.extract_strided_slice %2 {offsets = [2, 0], sizes = [1, 128], strides = [1, 1]} : vector<4x128xf32> to vector<1x128xf32>
    %18 = vector.broadcast %16 : vector<512x1xf32> to vector<512x128xf32>
    %19 = vector.broadcast %17 : vector<1x128xf32> to vector<512x128xf32>
    %20 = arith.mulf %18, %19 : vector<512x128xf32>
    %21 = arith.addf %15, %20 : vector<512x128xf32>
    %22 = vector.extract_strided_slice %1 {offsets = [0, 3], sizes = [512, 1], strides = [1, 1]} : vector<512x4xf32> to vector<512x1xf32>
    %23 = vector.extract_strided_slice %2 {offsets = [3, 0], sizes = [1, 128], strides = [1, 1]} : vector<4x128xf32> to vector<1x128xf32>
    %24 = vector.broadcast %22 : vector<512x1xf32> to vector<512x128xf32>
    %25 = vector.broadcast %23 : vector<1x128xf32> to vector<512x128xf32>
    %26 = arith.mulf %24, %25 : vector<512x128xf32>
    %27 = arith.addf %21, %26 : vector<512x128xf32>
    %28 = arith.negf %27 : vector<512x128xf32>
    %29 = math.exp %28 : vector<512x128xf32>
    %cst = arith.constant 1.000000e+00 : f32
    %30 = vector.broadcast %cst : f32 to vector<512x128xf32>
    %31 = arith.addf %30, %29 : vector<512x128xf32>
    %32 = arith.divf %30, %31 : vector<512x128xf32>
    %c0_5 = arith.constant 0 : index
    %c0_6 = arith.constant 0 : index
    %33 = vector.load %arg4[%c0_5, %c0_6] : memref<128x128xf32, #tpu.memory_space<vmem>>, vector<128x128xf32>
    %cst_7 = arith.constant dense<0.000000e+00> : vector<512x128xf32>
    %34 = tpu.matmul %32, %33, %cst_7 {dimension_numbers = #tpu.dot_dimension_numbers<[1], [0], [0], [1], [0, 0, 1, 1], [], []>} : vector<512x128xf32>, vector<128x128xf32>, vector<512x128xf32> -> vector<512x128xf32>
    %c0_8 = arith.constant 0 : index
    %c0_9 = arith.constant 0 : index
    %35 = vector.load %arg5[%c0_8, %c0_9] : memref<1x128xf32, #tpu.memory_space<vmem>>, vector<1x128xf32>
    %36 = vector.broadcast %35 : vector<1x128xf32> to vector<512x128xf32>
    %37 = arith.addf %34, %36 : vector<512x128xf32>
    %c0_10 = arith.constant 0 : index
    %c0_11 = arith.constant 0 : index
    %38 = vector.load %arg6[%c0_10, %c0_11] : memref<512x128xf32, #tpu.memory_space<vmem>>, vector<512x128xf32>
    tpu.vector_store %arg6[%c0_10, %c0_11], %37 {strides = array<i32>} : memref<512x128xf32, #tpu.memory_space<vmem>>, vector<512x128xf32>,
    return
  }
  func.func @transform_0(%arg0: i32) -> (i32, i32) {
    %c0_i32 = arith.constant 0 : i32
    %c0_i32_0 = arith.constant 0 : i32
    return %arg0, %c0_i32 : i32, i32
  }
  func.func @transform_1(%arg0: i32) -> (i32, i32) {
    %c0_i32 = arith.constant 0 : i32
    %c0_i32_0 = arith.constant 0 : i32
    %c0_i32_1 = arith.constant 0 : i32
    return %c0_i32, %c0_i32_0 : i32, i32
  }
  func.func @transform_2(%arg0: i32) -> (i32, i32) {
    %c0_i32 = arith.constant 0 : i32
    %c0_i32_0 = arith.constant 0 : i32
    %c0_i32_1 = arith.constant 0 : i32
    return %c0_i32, %c0_i32_0 : i32, i32
  }
  func.func @transform_3(%arg0: i32) -> (i32, i32) {
    %c0_i32 = arith.constant 0 : i32
    %c0_i32_0 = arith.constant 0 : i32
    %c0_i32_1 = arith.constant 0 : i32
    return %c0_i32, %c0_i32_0 : i32, i32
  }
  func.func @transform_4(%arg0: i32) -> (i32, i32) {
    %c0_i32 = arith.constant 0 : i32
    %c0_i32_0 = arith.constant 0 : i32
    %c0_i32_1 = arith.constant 0 : i32
    return %c0_i32, %c0_i32_0 : i32, i32
  }
  func.func @transform_5(%arg0: i32) -> (i32, i32) {
    %c0_i32 = arith.constant 0 : i32
    %c0_i32_0 = arith.constant 0 : i32
    return %arg0, %c0_i32 : i32, i32
  }
}

</mosaic_0001>

<bundles_post_ra>
// kernel: tpu_custom_call.1
= control target key start
LH: loop header
LB: loop body
LE: loop exit
PB: predicated region body
PF: predicated region fallthrough
CT: control target
= control target key end

     0   :  { %10 = vsyncpa [#allocation3], 0  ;;  %s5301_s0 = inlined_call_operand.vmem [shape: f32[2048,4], index: 0, kind: input, shape index: {}]   ;;  %s5302_s1 = inlined_call_operand.vmem [shape: f32[4,128], index: 1, kind: input, shape index: {}]   ;;  %s5303_s2 = inlined_call_operand.vmem [shape: f32[1,128], index: 2, kind: input, shape index: {}]   ;;  %s5304_s3 = inlined_call_operand.vmem [shape: f32[128,128], index: 3, kind: input, shape index: {}]   ;;  %s5305_s4 = inlined_call_operand.vmem [shape: f32[1,128], index: 4, kind: input, shape index: {}]   ;;  %s5306_s5 = inlined_call_operand.hbm [shape: f32[2048,128], index: 5, kind: output, shape index: {}]  }
   0x1   :  { %12 = vsyncpa [#allocation3 + $0x1], 0  ;;  %s3647_s18 = smov 0   ;;  %s3649_s19 = smov 0  }
   0x2   :  { %s3651_s20 = smov 0   ;;  %s3653_s21 = smov 0  }
   0x3 LB: > { %s3668_s22 = sadd.s32 4294967295, %s3608_s21   ;;  %s2846_s23 = sadd.s32 4294967294, %s3608_s21   ;;  %s3608_s21 = sphi %s3653_s21, %s5615_s21   ;;  %s3604_s20 = sphi %s3651_s20, %s5614_s20   ;;  %s3600_s19 = sphi %s3649_s19, %s5613_s19   ;;  %s3596_s18 = sphi %s3647_s18, %s5612_s18  }
   0x4   : > { %s3672_s24 = sadd.s32 1, %s3608_s21   ;;  %s135_s25 = sadd.s32 1, %s3604_s20 }
   0x5   : > { %s132_s26 = ssub.s32 %s3608_s21, %s3672_s24  ;;  %p145_p0 = scmp.ne.s32.totalorder %s3604_s20, %s3600_s19 }
   0x6   : > { %p133_p1 = scmp.eq.s32.totalorder %s132_s26, 0  ;;  %p146_p2 = scmp.eq.s32.totalorder %s3668_s22, 3 }
   0x7   : > { %p151_p3 = scmp.ne.s32.totalorder %s3600_s19, %s3596_s18  ;;  %p152_p4 = scmp.eq.s32.totalorder %s2846_s23, 3 }
   0x8   : > { %s3683_s27 = scalar_select %p133_p1, %s3604_s20, %s135_s25  }
   0x9   : > { %p3685_p5 = por %p146_p2, %p145_p0  ;;  %p3689_p6 = por %p152_p4, %p151_p3 }
   0xa   : > { %p2849_p7 = scmp.ge.s32.totalorder %s3608_s21, 1  ;;  %p191_p8 = scmp.lt.s32.totalorder %s3608_s21, 5 }
   0xc   : > { %p192_p9 = pnand %p2849_p7, %p191_p8 }
   0xe   : > { %195 = sbr.rel (%p192_p9) target bundleno = 1019 (0x3fb), region = 40 }
  0x15   : > { %s2851_s30 = sshll.u32 %s3668_s22, 6  ;;  %v3610_v0 = vmov 0   ;;  %s2924_s8 = sshll.u32 %s3668_s22, 13 }
  0x16   : > { %3227 = vset.pattern.permute.xlu1 %v3610_v0  ;;  %3226 = vset.pattern.permute.xlu0 %v3610_v0  ;;  %p220_p10 = scmp.lt.s32.totalorder %s2851_s30, 255  ;;  %s5251_s13 = scalar_lea.hbm %s5306_s5, %s2924_s8 }
  0x17   : > { %s3614_s15 = smov [#allocation2]  }
  0x18   : > { %s5617_s30 = smov (!%p220_p10, %s2851_s30), 255  ;;  %s3550_s16 = sshll.u32 %s3614_s15, 4  ;;  %s3551_s16 = int_to_ptr.vmem [resolvable:$false] %s3550_s16 }
  0x19   : > { %s2852_s6 = sshll.u32 %s5617_s30, 3  ;;  %s3552_s17 = scalar_lea.vmem %s3551_s16, 16384 }
  0x1a   : > { %s3699_s9 = scalar_lea.vmem %s5301_s0, %s2852_s6 }
  0x1b   : > { %v3702_v1 = vld [vmem:[%s3699_s9 + $0x10] sm:$0xff]  ;;  %v3705_v2 = vld [vmem:[%s3699_s9] sm:$0xff]  ;;  %v3710_v3 = vld [vmem:[%s3699_s9 + $0x18] sm:$0xff] }
  0x1c   : > { %304 = vperm.xlu1 %3227, %v3702_v1   ;;  %294 = vperm.xlu0 %3226, %v3705_v2   ;;  %v3713_v4 = vld [vmem:[%s3699_s9 + $0x8] sm:$0xff]  ;;  %v3721_v6 = vld [vmem:[%s3699_s9 + $0x20] sm:$0xff]  ;;  %v3726_v7 = vld [vmem:[%s3699_s9 + $0x38] sm:$0xff] }
  0x1d   : > { %v3718_v5 = vld [vmem:[%s3699_s9 + $0x28] sm:$0xff]  ;;  %v3729_v8 = vld [vmem:[%s3699_s9 + $0x30] sm:$0xff]  ;;  %v3737_v10 = vld [vmem:[%s3699_s9 + $0x40] sm:$0xff] }
  0x1e   : > { %v3734_v9 = vld [vmem:[%s3699_s9 + $0x48] sm:$0xff]  ;;  %v3742_v11 = vld [vmem:[%s3699_s9 + $0x58] sm:$0xff]  ;;  %v3745_v12 = vld [vmem:[%s3699_s9 + $0x50] sm:$0xff] }
  0x1f   : > { %v3750_v13 = vld [vmem:[%s3699_s9 + $0x68] sm:$0xff]  ;;  %v3753_v14 = vld [vmem:[%s3699_s9 + $0x60] sm:$0xff]  ;;  %v3758_v15 = vld [vmem:[%s3699_s9 + $0x78] sm:$0xff] }
  0x20   : > { %309 = vperm.xlu1 %3227, %v3710_v3   ;;  %299 = vperm.xlu0 %3226, %v3713_v4   ;;  %v3761_v16 = vld [vmem:[%s3699_s9 + $0x70] sm:$0xff]  ;;  %v3766_v17 = vld [vmem:[%s3699_s9 + $0x88] sm:$0xff]  ;;  %v3769_v18 = vld [vmem:[%s3699_s9 + $0x80] sm:$0xff] }
  0x21   : > { %v3774_v19 = vld [vmem:[%s3699_s9 + $0x98] sm:$0xff]  ;;  %v3777_v20 = vld [vmem:[%s3699_s9 + $0x90] sm:$0xff]  ;;  %v3782_v21 = vld [vmem:[%s3699_s9 + $0xa8] sm:$0xff] }
  0x22   : > { %v3785_v22 = vld [vmem:[%s3699_s9 + $0xa0] sm:$0xff]  ;;  %v3790_v23 = vld [vmem:[%s3699_s9 + $0xb8] sm:$0xff]  ;;  %v3793_v24 = vld [vmem:[%s3699_s9 + $0xb0] sm:$0xff] }
  0x23   : > { %v3798_v25 = vld [vmem:[%s3699_s9 + $0xc8] sm:$0xff]  ;;  %v3801_v26 = vld [vmem:[%s3699_s9 + $0xc0] sm:$0xff]  ;;  %v3806_v27 = vld [vmem:[%s3699_s9 + $0xd8] sm:$0xff] }
  0x24   : > { %319 = vperm.xlu1 %3227, %v3718_v5   ;;  %314 = vperm.xlu0 %3226, %v3721_v6   ;;  %v3809_v28 = vld [vmem:[%s3699_s9 + $0xd0] sm:$0xff]  ;;  %v3814_v29 = vld [vmem:[%s3699_s9 + $0xe8] sm:$0xff]  ;;  %v3817_v30 = vld [vmem:[%s3699_s9 + $0xe0] sm:$0xff] }
  0x25   : > { %v3822_v31 = vld [vmem:[%s3699_s9 + $0xf8] sm:$0xff]  ;;  %v3825_v32 = vld [vmem:[%s3699_s9 + $0xf0] sm:$0xff]  ;;  %v3830_v33 = vld [vmem:[%s3699_s9 + $0x108] sm:$0xff] }
  0x26   : > { %v3833_v34 = vld [vmem:[%s3699_s9 + $0x100] sm:$0xff]  ;;  %v3838_v35 = vld [vmem:[%s3699_s9 + $0x118] sm:$0xff]  ;;  %v3841_v36 = vld [vmem:[%s3699_s9 + $0x110] sm:$0xff] }
  0x27   : > { %v3846_v37 = vld [vmem:[%s3699_s9 + $0x128] sm:$0xff]  ;;  %v3849_v38 = vld [vmem:[%s3699_s9 + $0x120] sm:$0xff]  ;;  %v3854_v39 = vld [vmem:[%s3699_s9 + $0x138] sm:$0xff] }
  0x28   : > { %329 = vperm.xlu1 %3227, %v3726_v7   ;;  %324 = vperm.xlu0 %3226, %v3729_v8   ;;  %v3857_v40 = vld [vmem:[%s3699_s9 + $0x130] sm:$0xff]  ;;  %v3862_v41 = vld [vmem:[%s3699_s9 + $0x148] sm:$0xff]  ;;  %v3865_v42 = vld [vmem:[%s3699_s9 + $0x140] sm:$0xff] }
  0x29   : > { %v3870_v43 = vld [vmem:[%s3699_s9 + $0x158] sm:$0xff]  ;;  %v3873_v44 = vld [vmem:[%s3699_s9 + $0x150] sm:$0xff]  ;;  %v3878_v45 = vld [vmem:[%s3699_s9 + $0x168] sm:$0xff] }
  0x2a   : > { %v3881_v46 = vld [vmem:[%s3699_s9 + $0x160] sm:$0xff]  ;;  %v3886_v47 = vld [vmem:[%s3699_s9 + $0x178] sm:$0xff]  ;;  %v3889_v48 = vld [vmem:[%s3699_s9 + $0x170] sm:$0xff] }
  0x2b   : > { %5326 = vst [vmem:[#allocation5_spill] sm:$0xff] %v3889_v48  ;;  %v3894_v49 = vld [vmem:[%s3699_s9 + $0x188] sm:$0xff]  ;;  %v3897_v50 = vld [vmem:[%s3699_s9 + $0x180] sm:$0xff]  ;;  %v3902_v51 = vld [vmem:[%s3699_s9 + $0x198] sm:$0xff] }
  0x2c   : > { %339 = vperm.xlu1 %3227, %v3734_v9   ;;  %334 = vperm.xlu0 %3226, %v3737_v10   ;;  %5327 = vst [vmem:[#allocation6_spill] sm:$0xff] %v3897_v50  ;;  %v3905_v52 = vld [vmem:[%s3699_s9 + $0x190] sm:$0xff]  ;;  %v3910_v53 = vld [vmem:[%s3699_s9 + $0x1a8] sm:$0xff]  ;;  %v3913_v54 = vld [vmem:[%s3699_s9 + $0x1a0] sm:$0xff] }
  0x2d   : > { %v3918_v55 = vld [vmem:[%s3699_s9 + $0x1b8] sm:$0xff]  ;;  %v3921_v56 = vld [vmem:[%s3699_s9 + $0x1b0] sm:$0xff]  ;;  %v3926_v57 = vld [vmem:[%s3699_s9 + $0x1c8] sm:$0xff] }
  0x2e   : > { %5328 = vst [vmem:[#allocation7_spill] sm:$0xff] %v3926_v57  ;;  %v3929_v58 = vld [vmem:[%s3699_s9 + $0x1c0] sm:$0xff]  ;;  %v3934_v59 = vld [vmem:[%s3699_s9 + $0x1d8] sm:$0xff]  ;;  %v3937_v60 = vld [vmem:[%s3699_s9 + $0x1d0] sm:$0xff] }
  0x2f   : > { %5329 = vst [vmem:[#allocation8_spill] sm:$0xff] %v3934_v59  ;;  %5330 = vst [vmem:[#allocation9_spill] sm:$0xff] %v3937_v60  ;;  %v3942_v61 = vld [vmem:[%s3699_s9 + $0x1e8] sm:$0xff]  ;;  %v3945_v62 = vld [vmem:[%s3699_s9 + $0x1e0] sm:$0xff] }
  0x30   : > { %349 = vperm.xlu1 %3227, %v3742_v11   ;;  %344 = vperm.xlu0 %3226, %v3745_v12   ;;  %5331 = vst [vmem:[#allocation10_spill] sm:$0xff] %v3942_v61  ;;  %5332 = vst [vmem:[#allocation11_spill] sm:$0xff] %v3945_v62  ;;  %v3950_v63 = vld [vmem:[%s3699_s9 + $0x1f8] sm:$0xff]  ;;  %v3953_v0 = vld [vmem:[%s3699_s9 + $0x1f0] sm:$0xff] }
  0x31   : > { %5333 = vst [vmem:[#allocation12_spill] sm:$0xff] %v3950_v63 }
  0x34   : > { %359 = vperm.xlu1 %3227, %v3750_v13   ;;  %354 = vperm.xlu0 %3226, %v3753_v14  }
  0x38   : > { %369 = vperm.xlu1 %3227, %v3758_v15   ;;  %364 = vperm.xlu0 %3226, %v3761_v16  }
  0x3c   : > { %379 = vperm.xlu1 %3227, %v3766_v17   ;;  %374 = vperm.xlu0 %3226, %v3769_v18  }
  0x40   : > { %389 = vperm.xlu1 %3227, %v3774_v19   ;;  %384 = vperm.xlu0 %3226, %v3777_v20  }
  0x44   : > { %399 = vperm.xlu1 %3227, %v3782_v21   ;;  %394 = vperm.xlu0 %3226, %v3785_v22  }
  0x48   : > { %409 = vperm.xlu1 %3227, %v3790_v23   ;;  %404 = vperm.xlu0 %3226, %v3793_v24  }
  0x4c   : > { %419 = vperm.xlu1 %3227, %v3798_v25   ;;  %414 = vperm.xlu0 %3226, %v3801_v26  }
  0x50   : > { %429 = vperm.xlu1 %3227, %v3806_v27   ;;  %424 = vperm.xlu0 %3226, %v3809_v28  }
  0x54   : > { %439 = vperm.xlu1 %3227, %v3814_v29   ;;  %434 = vperm.xlu0 %3226, %v3817_v30  }
  0x58   : > { %449 = vperm.xlu1 %3227, %v3822_v31   ;;  %444 = vperm.xlu0 %3226, %v3825_v32  }
  0x5c   : > { %459 = vperm.xlu1 %3227, %v3830_v33   ;;  %454 = vperm.xlu0 %3226, %v3833_v34  }
  0x60   : > { %469 = vperm.xlu1 %3227, %v3838_v35   ;;  %464 = vperm.xlu0 %3226, %v3841_v36  }
  0x64   : > { %479 = vperm.xlu1 %3227, %v3846_v37   ;;  %474 = vperm.xlu0 %3226, %v3849_v38  }
  0x68   : > { %489 = vperm.xlu1 %3227, %v3854_v39   ;;  %484 = vperm.xlu0 %3226, %v3857_v40  }
  0x6c   : > { %499 = vperm.xlu1 %3227, %v3862_v41   ;;  %494 = vperm.xlu0 %3226, %v3865_v42  }
  0x70   : > { %509 = vperm.xlu1 %3227, %v3870_v43   ;;  %504 = vperm.xlu0 %3226, %v3873_v44  }
  0x74   : > { %519 = vperm.xlu1 %3227, %v3878_v45   ;;  %514 = vperm.xlu0 %3226, %v3881_v46  }
  0x78   : > { %529 = vperm.xlu1 %3227, %v3886_v47   ;;  %524 = vperm.xlu0 %3226, %v3889_v48  }
  0x7c   : > { %539 = vperm.xlu1 %3227, %v3894_v49   ;;  %534 = vperm.xlu0 %3226, %v3897_v50  }
  0x80   : > { %549 = vperm.xlu1 %3227, %v3902_v51   ;;  %544 = vperm.xlu0 %3226, %v3905_v52  }
  0x84   : > { %559 = vperm.xlu1 %3227, %v3910_v53   ;;  %554 = vperm.xlu0 %3226, %v3913_v54  }
  0x88   : > { %569 = vperm.xlu1 %3227, %v3918_v55   ;;  %564 = vperm.xlu0 %3226, %v3921_v56  }
  0x8c   : > { %579 = vperm.xlu1 %3227, %v3926_v57   ;;  %574 = vperm.xlu0 %3226, %v3929_v58  }
  0x90   : > { %589 = vperm.xlu1 %3227, %v3934_v59   ;;  %584 = vperm.xlu0 %3226, %v3937_v60   ;;  %v3611_v60 = vmov 1  }
  0x94   : > { %599 = vperm.xlu1 %3227, %v3942_v61   ;;  %594 = vperm.xlu0 %3226, %v3945_v62  }
  0x98   : > { %609 = vperm.xlu1 %3227, %v3950_v63   ;;  %604 = vperm.xlu0 %3226, %v3953_v0  }
  0x9b   : > { %v3957_v57 = vpop.permute.xlu1 %304  ;;  %v3959_v59 = vpop.permute.xlu0 %294 }
  0x9c   : > { %5334 = vst [vmem:[#allocation13_spill] sm:$0xff] %v3957_v57  ;;  %5335 = vst [vmem:[#allocation14_spill] sm:$0xff] %v3959_v59  ;;  %3229 = vset.pattern.permute.xlu1 %v3611_v60  ;;  %3228 = vset.pattern.permute.xlu0 %v3611_v60 }
  0x9d   : > { %755 = vperm.xlu1 %3229, %v3713_v4   ;;  %751 = vperm.xlu0 %3228, %v3705_v2  }
  0x9f   : > { %v3963_v61 = vpop.permute.xlu1 %309  ;;  %v3965_v62 = vpop.permute.xlu0 %299 }
  0xa0   : > { %5336 = vst [vmem:[#allocation15_spill] sm:$0xff] %v3963_v61  ;;  %5337 = vst [vmem:[#allocation16_spill] sm:$0xff] %v3965_v62 }
  0xa1   : > { %759 = vperm.xlu1 %3229, %v3702_v1   ;;  %763 = vperm.xlu0 %3228, %v3710_v3  }
  0xa3   : > { %v3969_v63 = vpop.permute.xlu1 %319  ;;  %v3971_v57 = vpop.permute.xlu0 %314 }
  0xa4   : > { %5338 = vst [vmem:[#allocation17_spill] sm:$0xff] %v3969_v63  ;;  %5339 = vst [vmem:[#allocation18_spill] sm:$0xff] %v3971_v57 }
  0xa5   : > { %767 = vperm.xlu1 %3229, %v3721_v6   ;;  %771 = vperm.xlu0 %3228, %v3718_v5  }
  0xa7   : > { %v3975_v60 = vpop.permute.xlu1 %329  ;;  %v3977_v59 = vpop.permute.xlu0 %324 }
  0xa8   : > { %5340 = vst [vmem:[#allocation19_spill] sm:$0xff] %v3975_v60  ;;  %5341 = vst [vmem:[#allocation20_spill] sm:$0xff] %v3977_v59 }
  0xa9   : > { %775 = vperm.xlu1 %3229, %v3729_v8   ;;  %779 = vperm.xlu0 %3228, %v3726_v7  }
  0xab   : > { %v3981_v61 = vpop.permute.xlu1 %339  ;;  %v3983_v62 = vpop.permute.xlu0 %334 }
  0xac   : > { %5342 = vst [vmem:[#allocation21_spill] sm:$0xff] %v3981_v61  ;;  %5343 = vst [vmem:[#allocation22_spill] sm:$0xff] %v3983_v62 }
  0xad   : > { %783 = vperm.xlu1 %3229, %v3737_v10   ;;  %787 = vperm.xlu0 %3228, %v3734_v9  }
  0xaf   : > { %v3987_v57 = vpop.permute.xlu1 %349  ;;  %v3989_v63 = vpop.permute.xlu0 %344 }
  0xb0   : > { %5344 = vst [vmem:[#allocation23_spill] sm:$0xff] %v3987_v57  ;;  %5345 = vst [vmem:[#allocation24_spill] sm:$0xff] %v3989_v63 }
  0xb1   : > { %791 = vperm.xlu1 %3229, %v3745_v12   ;;  %795 = vperm.xlu0 %3228, %v3742_v11  }
  0xb3   : > { %v3993_v59 = vpop.permute.xlu1 %359  ;;  %v3995_v60 = vpop.permute.xlu0 %354 }
  0xb4   : > { %5346 = vst [vmem:[#allocation25_spill] sm:$0xff] %v3993_v59  ;;  %5347 = vst [vmem:[#allocation26_spill] sm:$0xff] %v3995_v60 }
  0xb5   : > { %799 = vperm.xlu1 %3229, %v3753_v14   ;;  %803 = vperm.xlu0 %3228, %v3750_v13  }
  0xb7   : > { %v3999_v62 = vpop.permute.xlu1 %369  ;;  %v4001_v61 = vpop.permute.xlu0 %364 }
  0xb8   : > { %5348 = vst [vmem:[#allocation27_spill] sm:$0xff] %v3999_v62  ;;  %5349 = vst [vmem:[#allocation28_spill] sm:$0xff] %v4001_v61 }
  0xb9   : > { %807 = vperm.xlu1 %3229, %v3761_v16   ;;  %811 = vperm.xlu0 %3228, %v3758_v15  }
  0xbb   : > { %v4005_v63 = vpop.permute.xlu1 %379  ;;  %v4007_v57 = vpop.permute.xlu0 %374 }
  0xbc   : > { %5350 = vst [vmem:[#allocation29_spill] sm:$0xff] %v4005_v63  ;;  %5351 = vst [vmem:[#allocation30_spill] sm:$0xff] %v4007_v57 }
  0xbd   : > { %815 = vperm.xlu1 %3229, %v3769_v18   ;;  %819 = vperm.xlu0 %3228, %v3766_v17  }
  0xbf   : > { %v4011_v60 = vpop.permute.xlu1 %389  ;;  %v4013_v59 = vpop.permute.xlu0 %384 }
  0xc0   : > { %5352 = vst [vmem:[#allocation31_spill] sm:$0xff] %v4011_v60  ;;  %5353 = vst [vmem:[#allocation32_spill] sm:$0xff] %v4013_v59 }
  0xc1   : > { %823 = vperm.xlu1 %3229, %v3777_v20   ;;  %827 = vperm.xlu0 %3228, %v3774_v19  }
  0xc3   : > { %v4017_v61 = vpop.permute.xlu1 %399  ;;  %v4019_v62 = vpop.permute.xlu0 %394 }
  0xc4   : > { %5354 = vst [vmem:[#allocation33_spill] sm:$0xff] %v4017_v61  ;;  %5355 = vst [vmem:[#allocation34_spill] sm:$0xff] %v4019_v62 }
  0xc5   : > { %831 = vperm.xlu1 %3229, %v3785_v22   ;;  %835 = vperm.xlu0 %3228, %v3782_v21  }
  0xc7   : > { %v4023_v57 = vpop.permute.xlu1 %409  ;;  %v4025_v63 = vpop.permute.xlu0 %404 }
  0xc8   : > { %5356 = vst [vmem:[#allocation35_spill] sm:$0xff] %v4023_v57  ;;  %5357 = vst [vmem:[#allocation36_spill] sm:$0xff] %v4025_v63 }
  0xc9   : > { %839 = vperm.xlu1 %3229, %v3793_v24   ;;  %843 = vperm.xlu0 %3228, %v3790_v23  }
  0xcb   : > { %v4029_v59 = vpop.permute.xlu1 %419  ;;  %v4031_v60 = vpop.permute.xlu0 %414 }
  0xcc   : > { %5358 = vst [vmem:[#allocation37_spill] sm:$0xff] %v4029_v59  ;;  %5359 = vst [vmem:[#allocation38_spill] sm:$0xff] %v4031_v60 }
  0xcd   : > { %847 = vperm.xlu1 %3229, %v3801_v26   ;;  %851 = vperm.xlu0 %3228, %v3798_v25  }
  0xcf   : > { %v4035_v62 = vpop.permute.xlu1 %429  ;;  %v4037_v61 = vpop.permute.xlu0 %424 }
  0xd0   : > { %5360 = vst [vmem:[#allocation39_spill] sm:$0xff] %v4035_v62  ;;  %5361 = vst [vmem:[#allocation40_spill] sm:$0xff] %v4037_v61 }
  0xd1   : > { %855 = vperm.xlu1 %3229, %v3809_v28   ;;  %859 = vperm.xlu0 %3228, %v3806_v27  }
  0xd3   : > { %v4041_v63 = vpop.permute.xlu1 %439  ;;  %v4043_v57 = vpop.permute.xlu0 %434 }
  0xd4   : > { %5362 = vst [vmem:[#allocation41_spill] sm:$0xff] %v4041_v63  ;;  %5363 = vst [vmem:[#allocation42_spill] sm:$0xff] %v4043_v57 }
  0xd5   : > { %863 = vperm.xlu1 %3229, %v3817_v30   ;;  %867 = vperm.xlu0 %3228, %v3814_v29  }
  0xd7   : > { %v4047_v60 = vpop.permute.xlu1 %449  ;;  %v4049_v59 = vpop.permute.xlu0 %444 }
  0xd8   : > { %5364 = vst [vmem:[#allocation43_spill] sm:$0xff] %v4047_v60  ;;  %5365 = vst [vmem:[#allocation44_spill] sm:$0xff] %v4049_v59 }
  0xd9   : > { %871 = vperm.xlu1 %3229, %v3825_v32   ;;  %875 = vperm.xlu0 %3228, %v3822_v31  }
  0xdb   : > { %v4053_v61 = vpop.permute.xlu1 %459  ;;  %v4055_v62 = vpop.permute.xlu0 %454 }
  0xdc   : > { %5366 = vst [vmem:[#allocation45_spill] sm:$0xff] %v4053_v61  ;;  %5367 = vst [vmem:[#allocation46_spill] sm:$0xff] %v4055_v62 }
  0xdd   : > { %879 = vperm.xlu1 %3229, %v3833_v34   ;;  %883 = vperm.xlu0 %3228, %v3830_v33  }
  0xdf   : > { %v4059_v57 = vpop.permute.xlu1 %469  ;;  %v4061_v63 = vpop.permute.xlu0 %464 }
  0xe0   : > { %5368 = vst [vmem:[#allocation47_spill] sm:$0xff] %v4059_v57  ;;  %5369 = vst [vmem:[#allocation48_spill] sm:$0xff] %v4061_v63 }
  0xe1   : > { %887 = vperm.xlu1 %3229, %v3841_v36   ;;  %891 = vperm.xlu0 %3228, %v3838_v35  }
  0xe3   : > { %v4065_v59 = vpop.permute.xlu1 %479  ;;  %v4067_v60 = vpop.permute.xlu0 %474 }
  0xe4   : > { %5370 = vst [vmem:[#allocation49_spill] sm:$0xff] %v4065_v59  ;;  %5371 = vst [vmem:[#allocation50_spill] sm:$0xff] %v4067_v60 }
  0xe5   : > { %895 = vperm.xlu1 %3229, %v3849_v38   ;;  %899 = vperm.xlu0 %3228, %v3846_v37  }
  0xe7   : > { %v4071_v61 = vpop.permute.xlu1 %489  ;;  %v4073_v62 = vpop.permute.xlu0 %484 }
  0xe8   : > { %5372 = vst [vmem:[#allocation51_spill] sm:$0xff] %v4071_v61  ;;  %5373 = vst [vmem:[#allocation52_spill] sm:$0xff] %v4073_v62 }
  0xe9   : > { %903 = vperm.xlu1 %3229, %v3857_v40   ;;  %907 = vperm.xlu0 %3228, %v3854_v39  }
  0xeb   : > { %v4077_v57 = vpop.permute.xlu1 %499  ;;  %v4079_v63 = vpop.permute.xlu0 %494 }
  0xec   : > { %5374 = vst [vmem:[#allocation53_spill] sm:$0xff] %v4077_v57  ;;  %5375 = vst [vmem:[#allocation54_spill] sm:$0xff] %v4079_v63 }
  0xed   : > { %911 = vperm.xlu1 %3229, %v3865_v42   ;;  %915 = vperm.xlu0 %3228, %v3862_v41  }
  0xef   : > { %v4083_v59 = vpop.permute.xlu1 %509  ;;  %v4085_v60 = vpop.permute.xlu0 %504 }
  0xf0   : > { %5376 = vst [vmem:[#allocation55_spill] sm:$0xff] %v4083_v59  ;;  %5377 = vst [vmem:[#allocation56_spill] sm:$0xff] %v4085_v60 }
  0xf1   : > { %919 = vperm.xlu1 %3229, %v3873_v44   ;;  %923 = vperm.xlu0 %3228, %v3870_v43  }
  0xf3   : > { %v4089_v61 = vpop.permute.xlu1 %519  ;;  %v4091_v62 = vpop.permute.xlu0 %514 }
  0xf4   : > { %5378 = vst [vmem:[#allocation57_spill] sm:$0xff] %v4089_v61  ;;  %5379 = vst [vmem:[#allocation58_spill] sm:$0xff] %v4091_v62 }
  0xf5   : > { %927 = vperm.xlu1 %3229, %v3881_v46   ;;  %931 = vperm.xlu0 %3228, %v3878_v45  }
  0xf7   : > { %v4095_v63 = vpop.permute.xlu1 %529  ;;  %v4097_v57 = vpop.permute.xlu0 %524 }
  0xf8   : > { %5380 = vst [vmem:[#allocation59_spill] sm:$0xff] %v4095_v63  ;;  %5381 = vst [vmem:[#allocation60_spill] sm:$0xff] %v4097_v57 }
  0xf9   : > { %935 = vperm.xlu1 %3229, %v3889_v48   ;;  %939 = vperm.xlu0 %3228, %v3886_v47   ;;  %v5322_v48 = vmov 2  }
  0xfb   : > { %v4101_v59 = vpop.permute.xlu1 %539  ;;  %v4103_v60 = vpop.permute.xlu0 %534 }
  0xfc   : > { %5382 = vst [vmem:[#allocation61_spill] sm:$0xff] %v4101_v59  ;;  %5383 = vst [vmem:[#allocation62_spill] sm:$0xff] %v4103_v60 }
  0xfd   : > { %943 = vperm.xlu1 %3229, %v3897_v50   ;;  %947 = vperm.xlu0 %3228, %v3894_v49   ;;  %v5399_v50 = vld [vmem:[#allocation11_spill] sm:$0xff] }
  0xff   : > { %v4107_v61 = vpop.permute.xlu1 %549  ;;  %v4109_v62 = vpop.permute.xlu0 %544 }
 0x100   : > { %5384 = vst [vmem:[#allocation63_spill] sm:$0xff] %v4107_v61  ;;  %5385 = vst [vmem:[#allocation64_spill] sm:$0xff] %v4109_v62  ;;  %v5395_v62 = vld [vmem:[#allocation9_spill] sm:$0xff] }
 0x101   : > { %951 = vperm.xlu1 %3229, %v3905_v52   ;;  %955 = vperm.xlu0 %3228, %v3902_v51  }
 0x103   : > { %v4113_v63 = vpop.permute.xlu1 %559  ;;  %v4115_v57 = vpop.permute.xlu0 %554 }
 0x104   : > { %5386 = vst [vmem:[#allocation65_spill] sm:$0xff] %v4113_v63  ;;  %5387 = vst [vmem:[#allocation66_spill] sm:$0xff] %v4115_v57  ;;  %v5392_v63 = vld [vmem:[#allocation7_spill] sm:$0xff] }
 0x105   : > { %959 = vperm.xlu1 %3229, %v3913_v54   ;;  %963 = vperm.xlu0 %3228, %v3910_v53  }
 0x107   : > { %v4119_v59 = vpop.permute.xlu1 %569  ;;  %v4121_v60 = vpop.permute.xlu0 %564 }
 0x108   : > { %5388 = vst [vmem:[#allocation67_spill] sm:$0xff] %v4119_v59  ;;  %5389 = vst [vmem:[#allocation68_spill] sm:$0xff] %v4121_v60  ;;  %v5396_v59 = vld [vmem:[#allocation8_spill] sm:$0xff] }
 0x109   : > { %967 = vperm.xlu1 %3229, %v3921_v56   ;;  %971 = vperm.xlu0 %3228, %v3918_v55  }
 0x10b   : > { %v4125_v61 = vpop.permute.xlu1 %579  ;;  %v4127_v52 = vpop.permute.xlu0 %574 }
 0x10c   : > { %5390 = vst [vmem:[#allocation69_spill] sm:$0xff] %v4125_v61  ;;  %5391 = vst [vmem:[#allocation70_spill] sm:$0xff] %v4127_v52  ;;  %v5400_v61 = vld [vmem:[#allocation10_spill] sm:$0xff] }
 0x10d   : > { %975 = vperm.xlu1 %3229, %v3929_v58   ;;  %979 = vperm.xlu0 %3228, %v5392_v63  }
 0x10f   : > { %v4131_v57 = vpop.permute.xlu1 %589  ;;  %v4133_v54 = vpop.permute.xlu0 %584 }
 0x110   : > { %5393 = vst [vmem:[#allocation7_spill] sm:$0xff] %v4131_v57  ;;  %5394 = vst [vmem:[#allocation71_spill] sm:$0xff] %v4133_v54  ;;  %v5403_v57 = vld [vmem:[#allocation12_spill] sm:$0xff] }
 0x111   : > { %983 = vperm.xlu1 %3229, %v5395_v62   ;;  %987 = vperm.xlu0 %3228, %v5396_v59  }
 0x113   : > { %v4137_v60 = vpop.permute.xlu1 %599  ;;  %v4139_v56 = vpop.permute.xlu0 %594 }
 0x114   : > { %5397 = vst [vmem:[#allocation9_spill] sm:$0xff] %v4137_v60  ;;  %5398 = vst [vmem:[#allocation8_spill] sm:$0xff] %v4139_v56  ;;  %v5320_v60 = vmov 3  }
 0x115   : > { %991 = vperm.xlu1 %3229, %v5399_v50   ;;  %995 = vperm.xlu0 %3228, %v5400_v61  }
 0x117   : > { %v4143_v52 = vpop.permute.xlu1 %609  ;;  %v4145_v58 = vpop.permute.xlu0 %604 }
 0x118   : > { %5401 = vst [vmem:[#allocation11_spill] sm:$0xff] %v4143_v52  ;;  %5402 = vst [vmem:[#allocation10_spill] sm:$0xff] %v4145_v58 }
 0x119   : > { %999 = vperm.xlu1 %3229, %v3953_v0   ;;  %1003 = vperm.xlu0 %3228, %v5403_v57  }
 0x11c   : > { %v4149_v54 = vpop.permute.xlu1 %755  ;;  %v4151_v62 = vpop.permute.xlu0 %751 }
 0x11d   : > { %3230 = vset.pattern.permute.xlu1 %v5322_v48  ;;  %3232 = vset.pattern.permute.xlu0 %v5320_v60 }
 0x11e   : > { %1139 = vperm.xlu1 %3230, %v3705_v2   ;;  %1655 = vperm.xlu0 %3232, %v3833_v34  }
 0x120   : > { %v4157_v50 = vpop.permute.xlu1 %759  ;;  %v4159_v58 = vpop.permute.xlu0 %763 }
 0x121   : > { %5404 = vst [vmem:[#allocation12_spill] sm:$0xff] %v4159_v58 }
 0x122   : > { %1147 = vperm.xlu1 %3230, %v3702_v1   ;;  %3233 = vset.pattern.permute.xlu0 %v5322_v48 }
 0x123   : > { %1143 = vperm.xlu0 %3233, %v3713_v4  }
 0x124   : > { %v4164_v0 = vpop.permute.xlu1 %767  ;;  %v4166_v56 = vpop.permute.xlu0 %771 }
 0x125   : > { %5405 = vst [vmem:[#allocation72_spill] sm:$0xff] %v4164_v0  ;;  %5406 = vst [vmem:[#allocation73_spill] sm:$0xff] %v4166_v56 }
 0x126   : > { %1151 = vperm.xlu1 %3230, %v3710_v3  }
 0x127   : > { %1155 = vperm.xlu0 %3233, %v3721_v6  }
 0x128   : > { %v4170_v60 = vpop.permute.xlu1 %775  ;;  %v4172_v52 = vpop.permute.xlu0 %779 }
 0x129   : > { %5407 = vst [vmem:[#allocation74_spill] sm:$0xff] %v4170_v60  ;;  %5408 = vst [vmem:[#allocation75_spill] sm:$0xff] %v4172_v52 }
 0x12a   : > { %1159 = vperm.xlu1 %3230, %v3718_v5  }
 0x12b   : > { %1163 = vperm.xlu0 %3233, %v3729_v8  }
 0x12c   : > { %v4176_v58 = vpop.permute.xlu1 %783  ;;  %v4178_v48 = vpop.permute.xlu0 %787 }
 0x12d   : > { %5409 = vst [vmem:[#allocation76_spill] sm:$0xff] %v4176_v58  ;;  %5410 = vst [vmem:[#allocation77_spill] sm:$0xff] %v4178_v48 }
 0x12e   : > { %1167 = vperm.xlu1 %3230, %v3726_v7  }
 0x12f   : > { %1171 = vperm.xlu0 %3233, %v3737_v10  }
 0x130   : > { %v4182_v56 = vpop.permute.xlu1 %791  ;;  %v4184_v0 = vpop.permute.xlu0 %795 }
 0x131   : > { %5411 = vst [vmem:[#allocation78_spill] sm:$0xff] %v4182_v56  ;;  %5412 = vst [vmem:[#allocation79_spill] sm:$0xff] %v4184_v0 }
 0x132   : > { %1175 = vperm.xlu1 %3230, %v3734_v9  }
 0x133   : > { %1179 = vperm.xlu0 %3233, %v3745_v12  }
 0x134   : > { %v4188_v52 = vpop.permute.xlu1 %799  ;;  %v4190_v60 = vpop.permute.xlu0 %803 }
 0x135   : > { %5413 = vst [vmem:[#allocation80_spill] sm:$0xff] %v4188_v52  ;;  %5414 = vst [vmem:[#allocation81_spill] sm:$0xff] %v4190_v60 }
 0x136   : > { %1183 = vperm.xlu1 %3230, %v3742_v11  }
 0x137   : > { %1187 = vperm.xlu0 %3233, %v3753_v14  }
 0x138   : > { %v4194_v48 = vpop.permute.xlu1 %807  ;;  %v4196_v58 = vpop.permute.xlu0 %811 }
 0x139   : > { %5415 = vst [vmem:[#allocation82_spill] sm:$0xff] %v4194_v48  ;;  %5416 = vst [vmem:[#allocation83_spill] sm:$0xff] %v4196_v58 }
 0x13a   : > { %1191 = vperm.xlu1 %3230, %v3750_v13  }
 0x13b   : > { %1195 = vperm.xlu0 %3233, %v3761_v16  }
 0x13c   : > { %v4200_v56 = vpop.permute.xlu1 %815  ;;  %v4202_v0 = vpop.permute.xlu0 %819 }
 0x13d   : > { %5417 = vst [vmem:[#allocation84_spill] sm:$0xff] %v4200_v56  ;;  %5418 = vst [vmem:[#allocation85_spill] sm:$0xff] %v4202_v0  ;;  %v2304_v0 = vld [vmem:[%s5304_s3 + $0x30] sm:$0xff] }
 0x13e   : > { %1199 = vperm.xlu1 %3230, %v3758_v15  }
 0x13f   : > { %1203 = vperm.xlu0 %3233, %v3769_v18  }
 0x140   : > { %v4206_v52 = vpop.permute.xlu1 %823  ;;  %v4208_v60 = vpop.permute.xlu0 %827 }
 0x141   : > { %5419 = vst [vmem:[#allocation86_spill] sm:$0xff] %v4206_v52  ;;  %5420 = vst [vmem:[#allocation87_spill] sm:$0xff] %v4208_v60  ;;  %v2302_v60 = vld [vmem:[%s5304_s3 + $0x20] sm:$0xff] }
 0x142   : > { %1207 = vperm.xlu1 %3230, %v3766_v17  }
 0x143   : > { %1211 = vperm.xlu0 %3233, %v3777_v20  }
 0x144   : > { %v4212_v48 = vpop.permute.xlu1 %831  ;;  %v4214_v58 = vpop.permute.xlu0 %835 }
 0x145   : > { %5421 = vst [vmem:[#allocation88_spill] sm:$0xff] %v4212_v48  ;;  %5422 = vst [vmem:[#allocation89_spill] sm:$0xff] %v4214_v58  ;;  %v2301_v58 = vld [vmem:[%s5304_s3 + $0x18] sm:$0xff] }
 0x146   : > { %1215 = vperm.xlu1 %3230, %v3774_v19  }
 0x147   : > { %1219 = vperm.xlu0 %3233, %v3785_v22  }
 0x148   : > { %v4218_v16 = vpop.permute.xlu1 %839  ;;  %v4220_v56 = vpop.permute.xlu0 %843 }
 0x149   : > { %5423 = vst [vmem:[#allocation90_spill] sm:$0xff] %v4218_v16  ;;  %5424 = vst [vmem:[#allocation91_spill] sm:$0xff] %v4220_v56  ;;  %v2300_v56 = vld [vmem:[%s5304_s3 + $0x10] sm:$0xff] }
 0x14a   : > { %1223 = vperm.xlu1 %3230, %v3782_v21  }
 0x14b   : > { %1227 = vperm.xlu0 %3233, %v3793_v24  }
 0x14c   : > { %v4224_v18 = vpop.permute.xlu1 %847  ;;  %v4226_v52 = vpop.permute.xlu0 %851 }
 0x14d   : > { %5425 = vst [vmem:[#allocation92_spill] sm:$0xff] %v4224_v18  ;;  %5426 = vst [vmem:[#allocation93_spill] sm:$0xff] %v4226_v52 }
 0x14e   : > { %1231 = vperm.xlu1 %3230, %v3790_v23  }
 0x14f   : > { %1235 = vperm.xlu0 %3233, %v3801_v26  }
 0x150   : > { %v4230_v20 = vpop.permute.xlu1 %855  ;;  %v4232_v48 = vpop.permute.xlu0 %859 }
 0x151   : > { %5427 = vst [vmem:[#allocation94_spill] sm:$0xff] %v4230_v20  ;;  %5428 = vst [vmem:[#allocation95_spill] sm:$0xff] %v4232_v48 }
 0x152   : > { %1239 = vperm.xlu1 %3230, %v3798_v25  }
 0x153   : > { %1243 = vperm.xlu0 %3233, %v3809_v28  }
 0x154   : > { %v4236_v22 = vpop.permute.xlu1 %863  ;;  %v4238_v16 = vpop.permute.xlu0 %867 }
 0x155   : > { %5429 = vst [vmem:[#allocation96_spill] sm:$0xff] %v4236_v22  ;;  %5430 = vst [vmem:[#allocation97_spill] sm:$0xff] %v4238_v16 }
 0x156   : > { %1247 = vperm.xlu1 %3230, %v3806_v27  }
 0x157   : > { %1251 = vperm.xlu0 %3233, %v3817_v30  }
 0x158   : > { %v4242_v24 = vpop.permute.xlu1 %871  ;;  %v4244_v18 = vpop.permute.xlu0 %875 }
 0x159   : > { %5431 = vst [vmem:[#allocation98_spill] sm:$0xff] %v4242_v24  ;;  %5432 = vst [vmem:[#allocation99_spill] sm:$0xff] %v4244_v18  ;;  %v2298_v18 = vld [vmem:[%s5304_s3] sm:$0xff] }
 0x15a   : > { %1255 = vperm.xlu1 %3230, %v3814_v29  }
 0x15b   : > { %1259 = vperm.xlu0 %3233, %v3825_v32   ;;  %v5433_v32 = vmov 3  }
 0x15c   : > { %v4248_v26 = vpop.permute.xlu1 %879  ;;  %v4250_v20 = vpop.permute.xlu0 %883 }
 0x15e   : > { %1263 = vperm.xlu1 %3230, %v3822_v31  }
 0x15f   : > { %1267 = vperm.xlu0 %3233, %v3833_v34   ;;  %v2299_v34 = vld [vmem:[%s5304_s3 + $0x8] sm:$0xff] }
 0x160   : > { %v4254_v28 = vpop.permute.xlu1 %887  ;;  %v4256_v22 = vpop.permute.xlu0 %891  ;;  %v3133_v16 = vpack.c.bf16 %v2299_v34, %v2298_v18 }
 0x162   : > { %1271 = vperm.xlu1 %3230, %v3830_v33   ;;  %3134 = vmatprep.subr.bf16.mxu0 %v3133_v16 }
 0x163   : > { %1275 = vperm.xlu0 %3233, %v3841_v36   ;;  %3165 = vmatprep.subr.bf16.mxu1 %v3133_v16 }
 0x164   : > { %v4260_v30 = vpop.permute.xlu1 %895  ;;  %v4262_v24 = vpop.permute.xlu0 %899  ;;  %3136 = vmatpush3.bf16.msra.mxu0 %v3133_v16  ;;  %3173 = vmatpush3.bf16.msra.mxu1 %v3133_v16  ;;  %v2303_v16 = vld [vmem:[%s5304_s3 + $0x28] sm:$0xff] }
 0x166   : > { %3231 = vset.pattern.permute.xlu1 %v5433_v32 }
 0x167   : > { %1527 = vperm.xlu1 %3231, %v3705_v2   ;;  %1279 = vperm.xlu0 %3233, %v3838_v35   ;;  %v3137_v2 = vpack.c.bf16 %v2301_v58, %v2300_v56 }
 0x168   : > { %v4273_v48 = vpop.permute.xlu1 %903  ;;  %v4275_v52 = vpop.permute.xlu0 %907 }
 0x169   : > { %3138 = vmatprep.subr.bf16.mxu0 %v3137_v2  ;;  %3166 = vmatprep.subr.bf16.mxu1 %v3137_v2 }
 0x16a   : > { %3140 = vmatpush3.bf16.msra.mxu0 %v3137_v2  ;;  %3174 = vmatpush3.bf16.msra.mxu1 %v3137_v2  ;;  %v2305_v2 = vld [vmem:[%s5304_s3 + $0x38] sm:$0xff] }
 0x16b   : > { %1531 = vperm.xlu1 %3231, %v3713_v4   ;;  %1287 = vperm.xlu0 %3233, %v3846_v37   ;;  %v3141_v4 = vpack.c.bf16 %v2303_v16, %v2302_v60 }
 0x16c   : > { %v4285_v18 = vpop.permute.xlu1 %911  ;;  %v4287_v34 = vpop.permute.xlu0 %915 }
 0x16d   : > { %3142 = vmatprep.subr.bf16.mxu0 %v3141_v4  ;;  %3167 = vmatprep.subr.bf16.mxu1 %v3141_v4 }
 0x16e   : > { %3144 = vmatpush3.bf16.msra.mxu0 %v3141_v4  ;;  %3175 = vmatpush3.bf16.msra.mxu1 %v3141_v4  ;;  %v2307_v4 = vld [vmem:[%s5304_s3 + $0x48] sm:$0xff] }
 0x16f   : > { %1659 = vperm.xlu1 %3231, %v3830_v33   ;;  %1295 = vperm.xlu0 %3233, %v3854_v39   ;;  %v3145_v33 = vpack.c.bf16 %v2305_v2, %v2304_v0 }
 0x170   : > { %v4297_v56 = vpop.permute.xlu1 %919  ;;  %v4299_v58 = vpop.permute.xlu0 %923 }
 0x171   : > { %5434 = vst [vmem:[#allocation100_spill] sm:$0xff] %v4299_v58  ;;  %3146 = vmatprep.subr.bf16.mxu0 %v3145_v33  ;;  %3168 = vmatprep.subr.bf16.mxu1 %v3145_v33  ;;  %v2306_v58 = vld [vmem:[%s5304_s3 + $0x40] sm:$0xff] }
 0x172   : > { %3148 = vmatpush3.bf16.msra.mxu0 %v3145_v33  ;;  %3176 = vmatpush3.bf16.msra.mxu1 %v3145_v33  ;;  %v2309_v33 = vld [vmem:[%s5304_s3 + $0x58] sm:$0xff] }
 0x173   : > { %1535 = vperm.xlu1 %3231, %v3702_v1   ;;  %1303 = vperm.xlu0 %3233, %v3862_v41   ;;  %v3149_v1 = vpack.c.bf16 %v2307_v4, %v2306_v58 }
 0x174   : > { %v4309_v60 = vpop.permute.xlu1 %927  ;;  %v4311_v16 = vpop.permute.xlu0 %931 }
 0x175   : > { %5435 = vst [vmem:[#allocation101_spill] sm:$0xff] %v4311_v16  ;;  %3150 = vmatprep.subr.bf16.mxu0 %v3149_v1  ;;  %3169 = vmatprep.subr.bf16.mxu1 %v3149_v1  ;;  %v2308_v16 = vld [vmem:[%s5304_s3 + $0x50] sm:$0xff] }
 0x176   : > { %3152 = vmatpush3.bf16.msra.mxu0 %v3149_v1  ;;  %3177 = vmatpush3.bf16.msra.mxu1 %v3149_v1  ;;  %v2311_v1 = vld [vmem:[%s5304_s3 + $0x68] sm:$0xff] }
 0x177   : > { %1663 = vperm.xlu1 %3231, %v3841_v36   ;;  %1311 = vperm.xlu0 %3233, %v3870_v43   ;;  %v3153_v36 = vpack.c.bf16 %v2309_v33, %v2308_v16 }
 0x178   : > { %v4321_v0 = vpop.permute.xlu1 %935  ;;  %v4323_v2 = vpop.permute.xlu0 %939 }
 0x179   : > { %5436 = vst [vmem:[#allocation102_spill] sm:$0xff] %v4323_v2  ;;  %3154 = vmatprep.subr.bf16.mxu0 %v3153_v36  ;;  %3170 = vmatprep.subr.bf16.mxu1 %v3153_v36  ;;  %v2310_v2 = vld [vmem:[%s5304_s3 + $0x60] sm:$0xff] }
 0x17a   : > { %3156 = vmatpush3.bf16.msra.mxu0 %v3153_v36  ;;  %3178 = vmatpush3.bf16.msra.mxu1 %v3153_v36  ;;  %v3157_v16 = vpack.c.bf16 %v2311_v1, %v2310_v2  ;;  %v2313_v36 = vld [vmem:[%s5304_s3 + $0x78] sm:$0xff] }
 0x17b   : > { %1667 = vperm.xlu1 %3231, %v3838_v35   ;;  %1319 = vperm.xlu0 %3233, %v3878_v45   ;;  %v5439_v35 = vmov 2  }
 0x17c   : > { %v4333_v58 = vpop.permute.xlu1 %943  ;;  %v4335_v4 = vpop.permute.xlu0 %947  ;;  %3158 = vmatprep.subr.bf16.mxu0 %v3157_v16  ;;  %3171 = vmatprep.subr.bf16.mxu1 %v3157_v16 }
 0x17d   : > { %5437 = vst [vmem:[#allocation103_spill] sm:$0xff] %v4333_v58  ;;  %5438 = vst [vmem:[#allocation104_spill] sm:$0xff] %v4335_v4  ;;  %v2312_v58 = vld [vmem:[%s5304_s3 + $0x70] sm:$0xff] }
 0x17e   : > { %3160 = vmatpush3.bf16.msra.mxu0 %v3157_v16  ;;  %3179 = vmatpush3.bf16.msra.mxu1 %v3157_v16  ;;  %v3161_v2 = vpack.c.bf16 %v2313_v36, %v2312_v58 }
 0x17f   : > { %3234 = vset.pattern.permute.xlu1 %v5439_v35  ;;  %1327 = vperm.xlu0 %3233, %v3886_v47  }
 0x180   : > { %v4345_v33 = vpop.permute.xlu1 %951  ;;  %1283 = vperm.xlu1 %3234, %v3849_v38   ;;  %v4348_v4 = vpop.permute.xlu0 %955  ;;  %3162 = vmatprep.subr.bf16.mxu0 %v3161_v2 }
 0x181   : > { %5440 = vst [vmem:[#allocation105_spill] sm:$0xff] %v4345_v33  ;;  %5441 = vst [vmem:[#allocation106_spill] sm:$0xff] %v4348_v4  ;;  %3172 = vmatprep.subr.bf16.mxu1 %v3161_v2 }
 0x182   : > { %3164 = vmatpush3.bf16.msra.mxu0 %v3161_v2  ;;  %3180 = vmatpush3.bf16.msra.mxu1 %v3161_v2 }
 0x183   : > { %1335 = vperm.xlu0 %3233, %v3894_v49  }
 0x184   : > { %v4357_v1 = vpop.permute.xlu1 %959  ;;  %3235 = vset.pattern.permute.xlu1 %v5433_v32  ;;  %v4360_v4 = vpop.permute.xlu0 %963 }
 0x185   : > { %5442 = vst [vmem:[#allocation107_spill] sm:$0xff] %v4357_v1  ;;  %5443 = vst [vmem:[#allocation108_spill] sm:$0xff] %v4360_v4  ;;  %1543 = vperm.xlu1 %3235, %v3721_v6  }
 0x187   : > { %1343 = vperm.xlu0 %3233, %v3902_v51  }
 0x188   : > { %v4364_v33 = vpop.permute.xlu1 %967  ;;  %v4366_v16 = vpop.permute.xlu0 %971 }
 0x189   : > { %5444 = vst [vmem:[#allocation109_spill] sm:$0xff] %v4364_v33  ;;  %5445 = vst [vmem:[#allocation110_spill] sm:$0xff] %v4366_v16  ;;  %1671 = vperm.xlu1 %3235, %v3849_v38  }
 0x18b   : > { %1351 = vperm.xlu0 %3233, %v3910_v53  }
 0x18c   : > { %v4370_v49 = vpop.permute.xlu1 %975  ;;  %v4372_v58 = vpop.permute.xlu0 %979 }
 0x18d   : > { %5446 = vst [vmem:[#allocation111_spill] sm:$0xff] %v4370_v49  ;;  %5447 = vst [vmem:[#allocation112_spill] sm:$0xff] %v4372_v58  ;;  %1675 = vperm.xlu1 %3235, %v3846_v37  }
 0x18f   : > { %1359 = vperm.xlu0 %3233, %v3918_v55  }
 0x190   : > { %v4376_v6 = vpop.permute.xlu1 %983  ;;  %v4378_v51 = vpop.permute.xlu0 %987 }
 0x191   : > { %5448 = vst [vmem:[#allocation113_spill] sm:$0xff] %v4376_v6  ;;  %5449 = vst [vmem:[#allocation114_spill] sm:$0xff] %v4378_v51  ;;  %3236 = vset.pattern.permute.xlu1 %v5439_v35 }
 0x192   : > { %1291 = vperm.xlu1 %3236, %v3857_v40  }
 0x193   : > { %1367 = vperm.xlu0 %3233, %v5392_v63  }
 0x194   : > { %v4383_v38 = vpop.permute.xlu1 %991  ;;  %v4385_v53 = vpop.permute.xlu0 %995 }
 0x195   : > { %5450 = vst [vmem:[#allocation115_spill] sm:$0xff] %v4383_v38  ;;  %5451 = vst [vmem:[#allocation116_spill] sm:$0xff] %v4385_v53 }
 0x196   : > { %3237 = vset.pattern.permute.xlu1 %v5433_v32 }
 0x197   : > { %1551 = vperm.xlu1 %3237, %v3729_v8   ;;  %1375 = vperm.xlu0 %3233, %v5396_v59  }
 0x198   : > { %v4390_v37 = vpop.permute.xlu1 %999  ;;  %v4392_v55 = vpop.permute.xlu0 %1003 }
 0x199   : > { %5452 = vst [vmem:[#allocation117_spill] sm:$0xff] %v4390_v37 }
 0x19b   : > { %1679 = vperm.xlu1 %3237, %v3857_v40   ;;  %1383 = vperm.xlu0 %3233, %v5400_v61  }
 0x19d   : > { %v4396_v36 = vpop.permute.xlu1 %1139  ;;  %v4398_v63 = vpop.permute.xlu0 %1655 }
 0x19f   : > { %1683 = vperm.xlu1 %3237, %v3854_v39   ;;  %1391 = vperm.xlu0 %3233, %v5403_v57  }
 0x1a1   : > { %v4402_v2 = vpop.permute.xlu1 %1147 }
 0x1a2   : > { %v4404_v8 = vpop.permute.xlu0 %1143 }
 0x1a3   : > { %3238 = vset.pattern.permute.xlu1 %v5439_v35  ;;  %3261 = vset.pattern.permute.xlu0 %v5433_v32 }
 0x1a4   : > { %1299 = vperm.xlu1 %3238, %v3865_v42   ;;  %1539 = vperm.xlu0 %3261, %v3710_v3  }
 0x1a5   : > { %v4410_v40 = vpop.permute.xlu1 %1151 }
 0x1a6   : > { %v4412_v59 = vpop.permute.xlu0 %1155 }
 0x1a8   : > { %3239 = vset.pattern.permute.xlu1 %v5433_v32  ;;  %1547 = vperm.xlu0 %3261, %v3718_v5  }
 0x1a9   : > { %1559 = vperm.xlu1 %3239, %v3737_v10   ;;  %v4417_v39 = vpop.permute.xlu1 %1159 }
 0x1aa   : > { %v4419_v57 = vpop.permute.xlu0 %1163 }
 0x1ac   : > { %1555 = vperm.xlu0 %3261, %v3726_v7  }
 0x1ad   : > { %1687 = vperm.xlu1 %3239, %v3865_v42   ;;  %v4423_v61 = vpop.permute.xlu1 %1167 }
 0x1ae   : > { %v4425_v3 = vpop.permute.xlu0 %1171 }
 0x1b0   : > { %1563 = vperm.xlu0 %3261, %v3734_v9  }
 0x1b1   : > { %1691 = vperm.xlu1 %3239, %v3862_v41   ;;  %v4429_v37 = vpop.permute.xlu1 %1175 }
 0x1b2   : > { %v4431_v5 = vpop.permute.xlu0 %1179 }
 0x1b4   : > { %1571 = vperm.xlu0 %3261, %v3742_v11  }
 0x1b5   : > { %3240 = vset.pattern.permute.xlu1 %v5439_v35  ;;  %v4435_v10 = vpop.permute.xlu1 %1183 }
 0x1b6   : > { %1307 = vperm.xlu1 %3240, %v3873_v44   ;;  %v4438_v7 = vpop.permute.xlu0 %1187 }
 0x1b8   : > { %1579 = vperm.xlu0 %3261, %v3750_v13  }
 0x1b9   : > { %v4441_v42 = vpop.permute.xlu1 %1191 }
 0x1ba   : > { %3241 = vset.pattern.permute.xlu1 %v5433_v32  ;;  %v4444_v9 = vpop.permute.xlu0 %1195 }
 0x1bb   : > { %1567 = vperm.xlu1 %3241, %v3745_v12  }
 0x1bc   : > { %1587 = vperm.xlu0 %3261, %v3758_v15  }
 0x1bd   : > { %v4448_v11 = vpop.permute.xlu1 %1199 }
 0x1be   : > { %v4450_v41 = vpop.permute.xlu0 %1203 }
 0x1bf   : > { %5453 = vst [vmem:[#allocation118_spill] sm:$0xff] %v4450_v41  ;;  %1695 = vperm.xlu1 %3241, %v3873_v44   ;;  %v612_v44 = vlaneseq }
 0x1c0   : > { %1595 = vperm.xlu0 %3261, %v3766_v17  }
 0x1c1   : > { %v4454_v53 = vpop.permute.xlu1 %1207  ;;  %v613_v51 = vshrl.u32 %v612_v44, 7 }
 0x1c2   : > { %5454 = vst [vmem:[#allocation119_spill] sm:$0xff] %v4454_v53  ;;  %v4456_v13 = vpop.permute.xlu0 %1211  ;;  %v3528_v53 = vld [vmem:[%s3699_s9 + $0x1a8] sm:$0xff] }
 0x1c3   : > { %5455 = vst [vmem:[#allocation120_spill] sm:$0xff] %v4456_v13  ;;  %1699 = vperm.xlu1 %3241, %v3870_v43   ;;  %v614_v58 = vsub.s32 0, %v613_v51  ;;  %v1396_v16 = vsub.s32 2, %v613_v51 }
 0x1c4   : > { %1603 = vperm.xlu0 %3261, %v3774_v19  }
 0x1c5   : > { %v4460_v38 = vpop.permute.xlu1 %1215 }
 0x1c6   : > { %5456 = vst [vmem:[#allocation121_spill] sm:$0xff] %v4460_v38  ;;  %v4462_v12 = vpop.permute.xlu0 %1219 }
 0x1c7   : > { %5457 = vst [vmem:[#allocation122_spill] sm:$0xff] %v4462_v12  ;;  %3242 = vset.pattern.permute.xlu1 %v5439_v35 }
 0x1c8   : > { %1315 = vperm.xlu1 %3242, %v3881_v46   ;;  %1611 = vperm.xlu0 %3261, %v3782_v21  }
 0x1c9   : > { %v4467_v15 = vpop.permute.xlu1 %1223 }
 0x1ca   : > { %5458 = vst [vmem:[#allocation123_spill] sm:$0xff] %v4467_v15  ;;  %v4469_v17 = vpop.permute.xlu0 %1227 }
 0x1cb   : > { %5459 = vst [vmem:[#allocation124_spill] sm:$0xff] %v4469_v17 }
 0x1cc   : > { %3243 = vset.pattern.permute.xlu1 %v5433_v32  ;;  %1619 = vperm.xlu0 %3261, %v3790_v23   ;;  %v291_v23 = vld [vmem:[%s5302_s1] sm:$0xf] }
 0x1cd   : > { %1575 = vperm.xlu1 %3243, %v3753_v14   ;;  %v4474_v19 = vpop.permute.xlu1 %1231  ;;  %v1008_v14 = vsub.s32 1, %v613_v51 }
 0x1ce   : > { %5460 = vst [vmem:[#allocation125_spill] sm:$0xff] %v4474_v19  ;;  %v4476_v43 = vpop.permute.xlu0 %1235  ;;  %v3519_v19 = vld [vmem:[%s3699_s9 + $0x70] sm:$0xff] }
 0x1cf   : > { %5461 = vst [vmem:[#allocation126_spill] sm:$0xff] %v4476_v43 }
 0x1d0   : > { %1627 = vperm.xlu0 %3261, %v3798_v25   ;;  %v4493_v25 = vrot.slane %v291_v23, %v614_v58 }
 0x1d1   : > { %1703 = vperm.xlu1 %3243, %v3881_v46   ;;  %v4480_v21 = vpop.permute.xlu1 %1239  ;;  %v1784_v46 = vsub.s32 3, %v613_v51 }
 0x1d2   : > { %5462 = vst [vmem:[#allocation127_spill] sm:$0xff] %v4480_v21  ;;  %v4482_v6 = vpop.permute.xlu0 %1243  ;;  %v4498_v21 = vrot.slane %v291_v23, %v1008_v14 }
 0x1d3   : > { %5463 = vst [vmem:[#allocation128_spill] sm:$0xff] %v4482_v6  ;;  %v5466_v6 = vld [vmem:[#allocation46_spill] sm:$0xff] }
 0x1d4   : > { %1635 = vperm.xlu0 %3261, %v3806_v27   ;;  %v648_v43 = vmul.f32 %v4493_v25, %v5466_v6  ;;  %v1042_v58 = vmul.f32 %v4498_v21, %v4248_v26  ;;  %v5470_v6 = vld [vmem:[#allocation14_spill] sm:$0xff] }
 0x1d5   : > { %1707 = vperm.xlu1 %3243, %v3878_v45   ;;  %v4489_v49 = vpop.permute.xlu1 %1247  ;;  %v5468_v45 = vld [vmem:[#allocation5_spill] sm:$0xff]  ;;  %v616_v51 = vmul.f32 %v4493_v25, %v5470_v6  ;;  %v5472_v6 = vld [vmem:[#allocation16_spill] sm:$0xff] }
 0x1d6   : > { %5464 = vst [vmem:[#allocation129_spill] sm:$0xff] %v4489_v49  ;;  %v4491_v44 = vpop.permute.xlu0 %1251 }
 0x1d7   : > { %5465 = vst [vmem:[#allocation130_spill] sm:$0xff] %v4491_v44  ;;  %v4508_v44 = vrot.slane %v291_v23, %v1784_v46 }
 0x1d8   : > { %1643 = vperm.xlu0 %3261, %v3814_v29   ;;  %v4513_v29 = vld [vmem:[%s5303_s2] ss:$0 sm:$0xff] }
 0x1d9   : > { %3244 = vset.pattern.permute.xlu1 %v5439_v35  ;;  %v4501_v27 = vpop.permute.xlu1 %1255  ;;  %v718_v14 = vadd.f32 %v4513_v29, %v648_v43  ;;  %v1818_v33 = vmul.f32 %v4508_v44, %v4398_v63  ;;  %v617_v43 = vmul.f32 %v4493_v25, %v5472_v6  ;;  %v5473_v6 = vld [vmem:[#allocation45_spill] sm:$0xff] }
 0x1da   : > { %5467 = vst [vmem:[#allocation46_spill] sm:$0xff] %v4501_v27  ;;  %1323 = vperm.xlu1 %3244, %v5468_v45   ;;  %v4504_v49 = vpop.permute.xlu0 %1259  ;;  %v4519_v27 = vrot.slane %v291_v23, %v1396_v16  ;;  %v1010_v16 = vmul.f32 %v4498_v21, %v4151_v62  ;;  %v649_v1 = vmul.f32 %v4493_v25, %v5473_v6  ;;  %v5476_v6 = vld [vmem:[#allocation48_spill] sm:$0xff] }
 0x1db   : > { %5469 = vst [vmem:[#allocation5_spill] sm:$0xff] %v4504_v49  ;;  %v1106_v46 = vadd.f32 %v1042_v58, %v718_v14  ;;  %v687_v63 = vadd.f32 %v4513_v29, %v617_v43 }
 0x1dc   : > { %1651 = vperm.xlu0 %3261, %v3822_v31   ;;  %v686_v31 = vadd.f32 %v4513_v29, %v616_v51  ;;  %v1398_v58 = vmul.f32 %v4519_v27, %v4396_v36  ;;  %v1399_v12 = vmul.f32 %v4519_v27, %v4404_v8 }
 0x1dd   : > { %v4521_v49 = vpop.permute.xlu1 %1263 }
 0x1de   : > { %5471 = vst [vmem:[#allocation14_spill] sm:$0xff] %v4521_v49  ;;  %3245 = vset.pattern.permute.xlu1 %v5433_v32  ;;  %v1268_v26 = vpop.permute.xlu0 %1267  ;;  %v1074_v51 = vadd.f32 %v1010_v16, %v686_v31  ;;  %v5474_v31 = vld [vmem:[#allocation13_spill] sm:$0xff]  ;;  %v719_v16 = vadd.f32 %v4513_v29, %v649_v1 }
 0x1df   : > { %v1430_v17 = vmul.f32 %v4519_v27, %v1268_v26  ;;  %1583 = vperm.xlu1 %3245, %v3519_v19   ;;  %v1011_v19 = vmul.f32 %v4498_v21, %v4149_v54  ;;  %v1043_v54 = vmul.f32 %v4498_v21, %v4250_v20  ;;  %v618_v43 = vmul.f32 %v4493_v25, %v5474_v31 }
 0x1e0   : > { %v1012_v20 = vmul.f32 %v4498_v21, %v4157_v50  ;;  %v1044_v31 = vmul.f32 %v4498_v21, %v4254_v28 }
 0x1e1   : > { %v1494_v23 = vadd.f32 %v1430_v17, %v1106_v46  ;;  %v1272_v49 = vpop.permute.xlu1 %1271  ;;  %v1462_v46 = vadd.f32 %v1398_v58, %v1074_v51  ;;  %v1075_v36 = vadd.f32 %v1011_v19, %v687_v63  ;;  %v5475_v63 = vld [vmem:[#allocation6_spill] sm:$0xff]  ;;  %v1107_v19 = vadd.f32 %v1043_v54, %v719_v16  ;;  %v3520_v16 = vld [vmem:[%s3699_s9 + $0x80] sm:$0xff] }
 0x1e2   : > { %v1276_v4 = vpop.permute.xlu0 %1275  ;;  %v1431_v8 = vmul.f32 %v4519_v27, %v1272_v49 }
 0x1e3   : > { %v1882_v14 = vadd.f32 %v1818_v33, %v1494_v23  ;;  %1711 = vperm.xlu1 %3245, %v5468_v45  }
 0x1e5   : > { %v2886_v26 = vmul.f32 -1.442695, %v1882_v14  ;;  %v1463_v14 = vadd.f32 %v1399_v12, %v1075_v36  ;;  %v650_v12 = vmul.f32 %v4493_v25, %v5476_v6 }
 0x1e6   : > { %v1528_v62 = vpop.permute.xlu1 %1527  ;;  %v1280_v17 = vpop.permute.xlu0 %1279 }
 0x1e7   : > { %v1786_v33 = vmul.f32 %v4508_v44, %v1528_v62  ;;  %1715 = vperm.xlu1 %3245, %v3886_v47   ;;  %3263 = vpow2.f32 %v2886_v26  ;;  %v688_v26 = vadd.f32 %v4513_v29, %v618_v43 }
 0x1e9   : > { %v1850_v45 = vadd.f32 %v1786_v33, %v1462_v46  ;;  %v1400_v46 = vmul.f32 %v4519_v27, %v4402_v2  ;;  %v1495_v33 = vadd.f32 %v1431_v8, %v1107_v19  ;;  %v1076_v54 = vadd.f32 %v1012_v20, %v688_v26 }
 0x1ea   : > { %v1532_v23 = vpop.permute.xlu1 %1531  ;;  %v4550_v58 = vpop.permute.xlu0 %1287  ;;  %v720_v2 = vadd.f32 %v4513_v29, %v650_v12  ;;  %v1432_v20 = vmul.f32 %v4519_v27, %v1276_v4  ;;  %v1045_v26 = vmul.f32 %v4498_v21, %v4256_v22 }
 0x1eb   : > { %v2854_v51 = vmul.f32 -1.442695, %v1850_v45  ;;  %v1787_v47 = vmul.f32 %v4508_v44, %v1532_v23  ;;  %3246 = vset.pattern.permute.xlu1 %v5439_v35  ;;  %v5477_v23 = vld [vmem:[#allocation47_spill] sm:$0xff] }
 0x1ec   : > { %1331 = vperm.xlu1 %3246, %v5475_v63   ;;  %v1464_v63 = vadd.f32 %v1400_v46, %v1076_v54 }
 0x1ed   : > { %3265 = vpow2.f32 %v2854_v51  ;;  %v1851_v1 = vadd.f32 %v1787_v47, %v1463_v14  ;;  %v651_v14 = vmul.f32 %v4493_v25, %v5477_v23 }
 0x1ee   : > { %v1660_v49 = vpop.permute.xlu1 %1659  ;;  %v4561_v62 = vpop.permute.xlu0 %1295 }
 0x1ef   : > { %v2855_v36 = vmul.f32 -1.442695, %v1851_v1  ;;  %v1819_v45 = vmul.f32 %v4508_v44, %v1660_v49  ;;  %v1108_v1 = vadd.f32 %v1044_v31, %v720_v2  ;;  %v3521_v49 = vld [vmem:[%s3699_s9 + $0x180] sm:$0xff]  ;;  %v721_v12 = vadd.f32 %v4513_v29, %v651_v14 }
 0x1f0   : > { %3247 = vset.pattern.permute.xlu1 %v5433_v32 }
 0x1f1   : > { %v3264_v50 = vpop.eup %3263  ;;  %3267 = vpow2.f32 %v2855_v36  ;;  %v1883_v43 = vadd.f32 %v1819_v45, %v1495_v33  ;;  %1591 = vperm.xlu1 %3247, %v3520_v16   ;;  %v1496_v4 = vadd.f32 %v1432_v20, %v1108_v1  ;;  %v1433_v45 = vmul.f32 %v4519_v27, %v1280_v17  ;;  %v3522_v16 = vld [vmem:[%s3699_s9 + $0x188] sm:$0xff] }
 0x1f2   : > { %v1536_v8 = vpop.permute.xlu1 %1535  ;;  %v4573_v51 = vpop.permute.xlu0 %1303  ;;  %v2138_v47 = vadd.f32 1.0, %v3264_v50 }
 0x1f3   : > { %v2887_v19 = vmul.f32 -1.442695, %v1883_v43  ;;  %v1788_v28 = vmul.f32 %v4508_v44, %v1536_v8  ;;  %v1109_v43 = vadd.f32 %v1045_v26, %v721_v12 }
 0x1f4   : > { %3269 = vrcp.f32 %v2138_v47 }
 0x1f5   : > { %3271 = vpow2.f32 %v2887_v19  ;;  %v1852_v6 = vadd.f32 %v1788_v28, %v1464_v63  ;;  %1719 = vperm.xlu1 %3247, %v3521_v49   ;;  %v1497_v8 = vadd.f32 %v1433_v45, %v1109_v43  ;;  %v3523_v28 = vld [vmem:[%s3699_s9 + $0x190] sm:$0xff] }
 0x1f6   : > { %v1664_v33 = vpop.permute.xlu1 %1663  ;;  %v4581_v36 = vpop.permute.xlu0 %1311 }
 0x1f7   : > { %v3266_v46 = vpop.eup %3265  ;;  %v2856_v50 = vmul.f32 -1.442695, %v1852_v6  ;;  %v1820_v54 = vmul.f32 %v4508_v44, %v1664_v33  ;;  %v5478_v33 = vld [vmem:[#allocation50_spill] sm:$0xff] }
 0x1f8   : > { %v2106_v31 = vadd.f32 1.0, %v3266_v46  ;;  %v652_v46 = vmul.f32 %v4493_v25, %v5478_v33 }
 0x1f9   : > { %3273 = vpow2.f32 %v2856_v50  ;;  %v1884_v22 = vadd.f32 %v1820_v54, %v1496_v4  ;;  %1723 = vperm.xlu1 %3247, %v3522_v16   ;;  %v1046_v50 = vmul.f32 %v4498_v21, %v4260_v30  ;;  %v3524_v54 = vld [vmem:[%s3699_s9 + $0x90] sm:$0xff]  ;;  %v5480_v16 = vld [vmem:[#allocation49_spill] sm:$0xff]  ;;  %v1047_v30 = vmul.f32 %v4498_v21, %v4262_v24  ;;  %v3525_v24 = vld [vmem:[%s3699_s9 + $0x198] sm:$0xff] }
 0x1fa   : > { %v1668_v23 = vpop.permute.xlu1 %1667  ;;  %v4586_v2 = vpop.permute.xlu0 %1319  ;;  %3275 = vrcp.f32 %v2106_v31 }
 0x1fb   : > { %v3268_v14 = vpop.eup %3267  ;;  %v2888_v47 = vmul.f32 -1.442695, %v1884_v22  ;;  %v1821_v63 = vmul.f32 %v4508_v44, %v1668_v23  ;;  %v653_v23 = vmul.f32 %v4493_v25, %v5480_v16 }
 0x1fc   : > { %v2107_v17 = vadd.f32 1.0, %v3268_v14  ;;  %v722_v14 = vadd.f32 %v4513_v29, %v652_v46 }
 0x1fd   : > { %3277 = vpow2.f32 %v2888_v47  ;;  %v1885_v20 = vadd.f32 %v1821_v63, %v1497_v8  ;;  %3248 = vset.pattern.permute.xlu1 %v5439_v35 }
 0x1fe   : > { %v3270_v19 = vpop.eup %3269  ;;  %3279 = vrcp.f32 %v2107_v17  ;;  %1339 = vperm.xlu1 %3248, %v3523_v28   ;;  %v4591_v1 = vpop.permute.xlu0 %1327  ;;  %v1110_v17 = vadd.f32 %v1046_v50, %v722_v14 }
 0x1ff   : > { %v3272_v26 = vpop.eup %3271  ;;  %v2889_v6 = vmul.f32 -1.442695, %v1885_v20  ;;  %v1284_v49 = vpop.permute.xlu1 %1283  ;;  %3085 = vmatprep.mubr.f32.mxu1 %v3270_v19 }
 0x200   : > { %v2139_v12 = vadd.f32 1.0, %v3272_v26  ;;  %v1434_v8 = vmul.f32 %v4519_v27, %v1284_v49 }
 0x201   : > { %3281 = vpow2.f32 %v2889_v6  ;;  %v723_v6 = vadd.f32 %v4513_v29, %v653_v23 }
 0x202   : > { %3283 = vrcp.f32 %v2139_v12  ;;  %3249 = vset.pattern.permute.xlu1 %v5433_v32  ;;  %v4596_v4 = vpop.permute.xlu0 %1335  ;;  %v1435_v12 = vmul.f32 %v4519_v27, %v4550_v58  ;;  %v1498_v49 = vadd.f32 %v1434_v8, %v1110_v17  ;;  %v3526_v17 = vld [vmem:[%s3699_s9 + $0x1a0] sm:$0xff] }
 0x203   : > { %5479 = vst [vmem:[#allocation16_spill] sm:$0xff] %v4596_v4  ;;  %v3274_v45 = vpop.eup %3273  ;;  %1599 = vperm.xlu1 %3249, %v3524_v54   ;;  %v1111_v50 = vadd.f32 %v1047_v30, %v723_v6  ;;  %v5484_v30 = vld [vmem:[#allocation15_spill] sm:$0xff]  ;;  %v5485_v6 = vld [vmem:[#allocation17_spill] sm:$0xff] }
 0x204   : > { %v3276_v31 = vpop.eup %3275  ;;  %v2108_v43 = vadd.f32 1.0, %v3274_v45  ;;  %v4601_v22 = vpop.permute.xlu1 %1543 }
 0x205   : > { %3037 = vmatprep.mubr.f32.mxu0 %v3276_v31  ;;  %v1499_v16 = vadd.f32 %v1435_v12, %v1111_v50  ;;  %v621_v12 = vmul.f32 %v4493_v25, %v5485_v6  ;;  %v1048_v6 = vmul.f32 %v4498_v21, %v4273_v48 }
 0x206   : > { %3285 = vrcp.f32 %v2108_v43  ;;  %v4607_v47 = vpop.permute.xlu0 %1343 }
 0x207   : > { %5481 = vst [vmem:[#allocation45_spill] sm:$0xff] %v4607_v47  ;;  %v3278_v63 = vpop.eup %3277  ;;  %1727 = vperm.xlu1 %3249, %v3523_v28  }
 0x208   : > { %v3280_v20 = vpop.eup %3279  ;;  %v2140_v19 = vadd.f32 1.0, %v3278_v63  ;;  %v1672_v26 = vpop.permute.xlu1 %1671 }
 0x209   : > { %v1822_v33 = vmul.f32 %v4508_v44, %v1672_v26  ;;  %3038 = vmatmul.mubr.f32.vlgmr.msra.gmra.mrb[0].mxu0 %v3280_v20  ;;  %v619_v20 = vmul.f32 %v4493_v25, %v5484_v30 }
 0x20a   : > { %3287 = vrcp.f32 %v2140_v19  ;;  %v4615_v46 = vpop.permute.xlu0 %1351 }
 0x20b   : > { %5482 = vst [vmem:[#allocation13_spill] sm:$0xff] %v4615_v46  ;;  %v3282_v45 = vpop.eup %3281  ;;  %v1886_v54 = vadd.f32 %v1822_v33, %v1498_v49  ;;  %1731 = vperm.xlu1 %3249, %v3525_v24   ;;  %v5486_v49 = vld [vmem:[#allocation18_spill] sm:$0xff]  ;;  %v5489_v24 = vld [vmem:[#allocation20_spill] sm:$0xff]  ;;  %v4643_v30 = vadd.f32 %v4513_v29, %v619_v20 }
 0x20c   : > { %v3284_v28 = vpop.eup %3283  ;;  %v2141_v31 = vadd.f32 1.0, %v3282_v45  ;;  %v1676_v43 = vpop.permute.xlu1 %1675  ;;  %v620_v33 = vmul.f32 %v4493_v25, %v5486_v49  ;;  %v5487_v45 = vld [vmem:[#allocation19_spill] sm:$0xff]  ;;  %v3527_v49 = vld [vmem:[%s3699_s9 + $0xa0] sm:$0xff] }
 0x20d   : > { %v2890_v23 = vmul.f32 -1.442695, %v1886_v54  ;;  %v1823_v58 = vmul.f32 %v4508_v44, %v1676_v43  ;;  %3086 = vmatmul.mubr.f32.vlgmr.msra.gmra.mrb[0].mxu1 %v3284_v28  ;;  %v623_v50 = vmul.f32 %v4493_v25, %v5487_v45  ;;  %v622_v28 = vmul.f32 %v4493_v25, %v5489_v24 }
 0x20e   : > { %3289 = vrcp.f32 %v2141_v31  ;;  %v4619_v14 = vpop.permute.xlu0 %1359  ;;  %v5490_v31 = vld [vmem:[#allocation21_spill] sm:$0xff]  ;;  %v4649_v45 = vadd.f32 %v4513_v29, %v621_v12 }
 0x20f   : > { %5483 = vst [vmem:[#allocation6_spill] sm:$0xff] %v4619_v14  ;;  %3291 = vpow2.f32 %v2890_v23  ;;  %v1887_v8 = vadd.f32 %v1823_v58, %v1499_v16  ;;  %3250 = vset.pattern.permute.xlu1 %v5439_v35  ;;  %v625_v43 = vmul.f32 %v4493_v25, %v5490_v31  ;;  %v5491_v16 = vld [vmem:[#allocation52_spill] sm:$0xff]  ;;  %v4653_v24 = vadd.f32 %v4513_v29, %v623_v50  ;;  %v5493_v31 = vld [vmem:[#allocation51_spill] sm:$0xff] }
 0x210   : > { %v3286_v63 = vpop.eup %3285  ;;  %1347 = vperm.xlu1 %3250, %v3526_v17   ;;  %v654_v23 = vmul.f32 %v4493_v25, %v5491_v16  ;;  %v655_v16 = vmul.f32 %v4493_v25, %v5493_v31  ;;  %v5495_v50 = vld [vmem:[#allocation23_spill] sm:$0xff] }
 0x211   : > { %v2891_v19 = vmul.f32 -1.442695, %v1887_v8  ;;  %v1292_v26 = vpop.permute.xlu1 %1291  ;;  %3040 = vmatprep.mubr.f32.mxu0 %v3286_v63  ;;  %v5492_v8 = vld [vmem:[#allocation22_spill] sm:$0xff]  ;;  %v4661_v48 = vadd.f32 %v4513_v29, %v625_v43  ;;  %v627_v14 = vmul.f32 %v4493_v25, %v5495_v50  ;;  %v5496_v31 = vld [vmem:[#allocation11_spill] sm:$0xff]  ;;  %v1073_v50 = vmul.f32 %v4498_v21, %v4392_v55 }
 0x212   : > { %v4631_v54 = vpop.permute.xlu0 %1367  ;;  %v624_v63 = vmul.f32 %v4493_v25, %v5492_v8  ;;  %v1436_v12 = vmul.f32 %v4519_v27, %v1292_v26  ;;  %v679_v46 = vmul.f32 %v4493_v25, %v5496_v31  ;;  %v5498_v43 = vld [vmem:[#allocation74_spill] sm:$0xff]  ;;  %v1049_v26 = vmul.f32 %v4498_v21, %v4275_v52 }
 0x213   : > { %5488 = vst [vmem:[#allocation48_spill] sm:$0xff] %v4631_v54  ;;  %3293 = vpow2.f32 %v2891_v19  ;;  %v690_v19 = vadd.f32 %v4513_v29, %v620_v33  ;;  %v692_v54 = vadd.f32 %v4513_v29, %v622_v28  ;;  %v1016_v47 = vmul.f32 %v4498_v21, %v5498_v43  ;;  %v5500_v43 = vld [vmem:[#allocation53_spill] sm:$0xff] }
 0x214   : > { %v3288_v58 = vpop.eup %3287  ;;  %3251 = vset.pattern.permute.xlu1 %v5433_v32  ;;  %v4666_v33 = vadd.f32 %v4513_v29, %v624_v63  ;;  %v725_v63 = vadd.f32 %v4513_v29, %v655_v16  ;;  %v1402_v31 = vmul.f32 %v4519_v27, %v4412_v59  ;;  %v1437_v52 = vmul.f32 %v4519_v27, %v4561_v62 }
 0x215   : > { %1607 = vperm.xlu1 %3251, %v3527_v49   ;;  %3088 = vmatprep.mubr.f32.mxu1 %v3288_v58  ;;  %v724_v58 = vadd.f32 %v4513_v29, %v654_v23  ;;  %v1790_v59 = vmul.f32 %v4508_v44, %v4601_v22  ;;  %v1080_v4 = vadd.f32 %v1016_v47, %v692_v54 }
 0x216   : > { %v1552_v8 = vpop.permute.xlu1 %1551  ;;  %v4657_v20 = vpop.permute.xlu0 %1375  ;;  %v1113_v41 = vadd.f32 %v1049_v26, %v725_v63  ;;  %v1401_v47 = vmul.f32 %v4519_v27, %v4410_v40  ;;  %v5502_v26 = vld [vmem:[#allocation73_spill] sm:$0xff] }
 0x217   : > { %5494 = vst [vmem:[#allocation47_spill] sm:$0xff] %v4657_v20  ;;  %v5497_v20 = vld [vmem:[#allocation72_spill] sm:$0xff]  ;;  %v1112_v23 = vadd.f32 %v1048_v6, %v724_v58  ;;  %v657_v6 = vmul.f32 %v4493_v25, %v5500_v43  ;;  %v749_v58 = vadd.f32 %v4513_v29, %v679_v46 }
 0x218   : > { %v3290_v49 = vpop.eup %3289  ;;  %v1014_v28 = vmul.f32 %v4498_v21, %v5497_v20 }
 0x219   : > { %v3292_v15 = vpop.eup %3291  ;;  %1735 = vperm.xlu1 %3251, %v3526_v17   ;;  %3089 = vmatmul.mubr.f32.gmra.mrb[2].mxu1 %v3290_v49  ;;  %v1500_v17 = vadd.f32 %v1436_v12, %v1112_v23  ;;  %v5501_v49 = vld [vmem:[#allocation12_spill] sm:$0xff]  ;;  %v1137_v62 = vadd.f32 %v1073_v50, %v749_v58  ;;  %v1404_v23 = vmul.f32 %v4519_v27, %v4419_v57 }
 0x21a   : > { %v2142_v13 = vadd.f32 1.0, %v3292_v15  ;;  %v1680_v20 = vpop.permute.xlu1 %1679  ;;  %v4683_v38 = vpop.permute.xlu0 %1383  ;;  %v1078_v55 = vadd.f32 %v1014_v28, %v690_v19  ;;  %v1015_v57 = vmul.f32 %v4498_v21, %v5502_v26  ;;  %v5504_v58 = vld [vmem:[#allocation76_spill] sm:$0xff] }
 0x21b   : > { %5499 = vst [vmem:[#allocation50_spill] sm:$0xff] %v4683_v38  ;;  %v1824_v16 = vmul.f32 %v4508_v44, %v1680_v20  ;;  %v1013_v38 = vmul.f32 %v4498_v21, %v5501_v49  ;;  %v1501_v20 = vadd.f32 %v1437_v52, %v1113_v41  ;;  %v4709_v41 = vadd.f32 %v4513_v29, %v627_v14 }
 0x21c   : > { %3295 = vrcp.f32 %v2142_v13  ;;  %v1466_v12 = vadd.f32 %v1402_v31, %v1078_v55  ;;  %v5503_v31 = vld [vmem:[#allocation54_spill] sm:$0xff]  ;;  %v1018_v55 = vmul.f32 %v4498_v21, %v5504_v58  ;;  %v1051_v58 = vmul.f32 %v4498_v21, %v4287_v34 }
 0x21d   : > { %v3294_v15 = vpop.eup %3293  ;;  %v1888_v43 = vadd.f32 %v1824_v16, %v1500_v17  ;;  %1739 = vperm.xlu1 %3251, %v3528_v53   ;;  %v1792_v53 = vmul.f32 %v4508_v44, %v1552_v8  ;;  %v656_v52 = vmul.f32 %v4493_v25, %v5503_v31  ;;  %v1077_v40 = vadd.f32 %v1013_v38, %v4643_v30  ;;  %v3529_v16 = vld [vmem:[%s3699_s9 + $0x1b0] sm:$0xff] }
 0x21e   : > { %v2143_v46 = vadd.f32 1.0, %v3294_v15  ;;  %v1684_v19 = vpop.permute.xlu1 %1683  ;;  %v1392_v28 = vpop.permute.xlu0 %1391  ;;  %v1854_v54 = vadd.f32 %v1790_v59, %v1466_v12  ;;  %v1468_v17 = vadd.f32 %v1404_v23, %v1080_v4  ;;  %v727_v8 = vadd.f32 %v4513_v29, %v657_v6  ;;  %v5505_v30 = vld [vmem:[#allocation75_spill] sm:$0xff] }
 0x21f   : > { %v2892_v22 = vmul.f32 -1.442695, %v1888_v43  ;;  %v1825_v13 = vmul.f32 %v4508_v44, %v1684_v19  ;;  %v1461_v49 = vmul.f32 %v4519_v27, %v1392_v28  ;;  %v1403_v59 = vmul.f32 %v4519_v27, %v4417_v39  ;;  %v5506_v28 = vld [vmem:[#allocation77_spill] sm:$0xff] }
 0x220   : > { %3297 = vrcp.f32 %v2143_v46  ;;  %v2858_v12 = vmul.f32 -1.442695, %v1854_v54  ;;  %v1856_v46 = vadd.f32 %v1792_v53, %v1468_v17  ;;  %v1079_v4 = vadd.f32 %v1015_v57, %v4649_v45 }
 0x221   : > { %3299 = vpow2.f32 %v2892_v22  ;;  %v1889_v63 = vadd.f32 %v1825_v13, %v1501_v20  ;;  %v4705_v50 = vadd.f32 %v1461_v49, %v1137_v62  ;;  %3252 = vset.pattern.permute.xlu1 %v5439_v35  ;;  %v1465_v62 = vadd.f32 %v1401_v47, %v1077_v40 }
 0x222   : > { %1355 = vperm.xlu1 %3252, %v3529_v16   ;;  %v1017_v6 = vmul.f32 %v4498_v21, %v5505_v30  ;;  %v1406_v23 = vmul.f32 %v4519_v27, %v4425_v3  ;;  %v726_v39 = vadd.f32 %v4513_v29, %v656_v52  ;;  %v1019_v20 = vmul.f32 %v4498_v21, %v5506_v28  ;;  %v3530_v3 = vld [vmem:[%s3699_s9 + $0xb0] sm:$0xff] }
 0x223   : > { %v2893_v15 = vmul.f32 -1.442695, %v1889_v63  ;;  %v1300_v43 = vpop.permute.xlu1 %1299  ;;  %v1540_v14 = vpop.permute.xlu0 %1539  ;;  %v1050_v22 = vmul.f32 %v4498_v21, %v4285_v18  ;;  %v1082_v45 = vadd.f32 %v1018_v55, %v4666_v33  ;;  %v1467_v49 = vadd.f32 %v1403_v59, %v1079_v4 }
 0x224   : > { %v1789_v38 = vmul.f32 %v4508_v44, %v1540_v14  ;;  %v1405_v47 = vmul.f32 %v4519_v27, %v4423_v61  ;;  %v2860_v53 = vmul.f32 -1.442695, %v1856_v46  ;;  %v1081_v18 = vadd.f32 %v1017_v6, %v4653_v24 }
 0x225   : > { %3301 = vpow2.f32 %v2893_v15  ;;  %v1470_v31 = vadd.f32 %v1406_v23, %v1082_v45  ;;  %v1438_v52 = vmul.f32 %v4519_v27, %v1300_v43  ;;  %v1083_v61 = vadd.f32 %v1019_v20, %v4661_v48 }
 0x226   : > { %v3296_v19 = vpop.eup %3295  ;;  %v1853_v13 = vadd.f32 %v1789_v38, %v1465_v62  ;;  %3253 = vset.pattern.permute.xlu1 %v5433_v32  ;;  %3303 = vpow2.f32 %v2858_v12  ;;  %v1114_v17 = vadd.f32 %v1050_v22, %v726_v39  ;;  %v1469_v15 = vadd.f32 %v1405_v47, %v1081_v18  ;;  %v3531_v22 = vld [vmem:[%s3699_s9 + $0x1b8] sm:$0xff] }
 0x227   : > { %1615 = vperm.xlu1 %3253, %v3530_v3   ;;  %3091 = vmatprep.mubr.f32.mxu1 %v3296_v19  ;;  %v1548_v54 = vpop.permute.xlu0 %1547  ;;  %v1407_v14 = vmul.f32 %v4519_v27, %v4429_v37  ;;  %v1439_v34 = vmul.f32 %v4519_v27, %v4573_v51  ;;  %v5507_v37 = vld [vmem:[#allocation79_spill] sm:$0xff]  ;;  %v1409_v28 = vmul.f32 %v4519_v27, %v4435_v10  ;;  %v5508_v3 = vld [vmem:[#allocation24_spill] sm:$0xff] }
 0x228   : > { %v2857_v26 = vmul.f32 -1.442695, %v1853_v13  ;;  %v1791_v57 = vmul.f32 %v4508_v44, %v1548_v54  ;;  %v1560_v63 = vpop.permute.xlu1 %1559  ;;  %v1502_v38 = vadd.f32 %v1438_v52, %v1114_v17  ;;  %v1021_v6 = vmul.f32 %v4498_v21, %v5507_v37 }
 0x229   : > { %v1794_v33 = vmul.f32 %v4508_v44, %v1560_v63  ;;  %v1471_v39 = vadd.f32 %v1407_v14, %v1083_v61  ;;  %v3532_v61 = vld [vmem:[%s3699_s9 + $0x1c0] sm:$0xff] }
 0x22a   : > { %v3298_v40 = vpop.eup %3297  ;;  %v1855_v55 = vadd.f32 %v1791_v57, %v1467_v49  ;;  %3305 = vpow2.f32 %v2857_v26  ;;  %v1085_v57 = vadd.f32 %v1021_v6, %v4709_v41 }
 0x22b   : > { %v3300_v59 = vpop.eup %3299  ;;  %v1858_v24 = vadd.f32 %v1794_v33, %v1470_v31  ;;  %1743 = vperm.xlu1 %3253, %v3529_v16   ;;  %3092 = vmatmul.mubr.f32.gmra.mrb[4].mxu1 %v3298_v40  ;;  %v1556_v43 = vpop.permute.xlu0 %1555  ;;  %3307 = vpow2.f32 %v2860_v53  ;;  %v1115_v16 = vadd.f32 %v1051_v58, %v727_v8  ;;  %v626_v8 = vmul.f32 %v4493_v25, %v5508_v3 }
 0x22c   : > { %v2144_v62 = vadd.f32 1.0, %v3300_v59  ;;  %v2859_v12 = vmul.f32 -1.442695, %v1855_v55  ;;  %v1793_v48 = vmul.f32 %v4508_v44, %v1556_v43  ;;  %v1688_v46 = vpop.permute.xlu1 %1687  ;;  %v1473_v52 = vadd.f32 %v1409_v28, %v1085_v57  ;;  %v5509_v55 = vld [vmem:[#allocation78_spill] sm:$0xff]  ;;  %v5510_v43 = vld [vmem:[#allocation56_spill] sm:$0xff] }
 0x22d   : > { %v2862_v4 = vmul.f32 -1.442695, %v1858_v24  ;;  %v1826_v30 = vmul.f32 %v4508_v44, %v1688_v46  ;;  %v1503_v54 = vadd.f32 %v1439_v34, %v1115_v16  ;;  %v696_v58 = vadd.f32 %v4513_v29, %v626_v8  ;;  %v5512_v8 = vld [vmem:[#allocation100_spill] sm:$0xff] }
 0x22e   : > { %3309 = vrcp.f32 %v2144_v62  ;;  %v1857_v23 = vadd.f32 %v1793_v48, %v1469_v15  ;;  %v1020_v41 = vmul.f32 %v4498_v21, %v5509_v55  ;;  %v658_v62 = vmul.f32 %v4493_v25, %v5510_v43 }
 0x22f   : > { %v3302_v19 = vpop.eup %3301  ;;  %3311 = vpow2.f32 %v2859_v12  ;;  %v1890_v20 = vadd.f32 %v1826_v30, %v1502_v38  ;;  %1747 = vperm.xlu1 %3253, %v3531_v22   ;;  %v1564_v51 = vpop.permute.xlu0 %1563  ;;  %v1408_v46 = vmul.f32 %v4519_v27, %v4431_v5  ;;  %v1052_v38 = vmul.f32 %v4498_v21, %v4297_v56  ;;  %v5511_v30 = vld [vmem:[#allocation55_spill] sm:$0xff] }
 0x230   : > { %v2145_v13 = vadd.f32 1.0, %v3302_v19  ;;  %3313 = vpow2.f32 %v2862_v4  ;;  %v2861_v45 = vmul.f32 -1.442695, %v1857_v23  ;;  %v1795_v49 = vmul.f32 %v4508_v44, %v1564_v51  ;;  %v1692_v47 = vpop.permute.xlu1 %1691  ;;  %v3304_v10 = vpop.eup %3303  ;;  %v3533_v23 = vld [vmem:[%s3699_s9 + $0xc0] sm:$0xff] }
 0x231   : > { %v2894_v53 = vmul.f32 -1.442695, %v1890_v20  ;;  %v1827_v26 = vmul.f32 %v4508_v44, %v1692_v47  ;;  %v2110_v59 = vadd.f32 1.0, %v3304_v10  ;;  %v659_v37 = vmul.f32 %v4493_v25, %v5511_v30 }
 0x232   : > { %3315 = vrcp.f32 %v2145_v13  ;;  %v1859_v63 = vadd.f32 %v1795_v49, %v1471_v39  ;;  %v1084_v6 = vadd.f32 %v1020_v41, %v696_v58  ;;  %v728_v5 = vadd.f32 %v4513_v29, %v658_v62  ;;  %v3534_v41 = vld [vmem:[%s3699_s9 + $0x1c8] sm:$0xff] }
 0x233   : > { %3317 = vpow2.f32 %v2861_v45  ;;  %v1891_v18 = vadd.f32 %v1827_v26, %v1503_v54  ;;  %3254 = vset.pattern.permute.xlu1 %v5439_v35  ;;  %v1572_v31 = vpop.permute.xlu0 %1571  ;;  %v729_v3 = vadd.f32 %v4513_v29, %v659_v37  ;;  %v1053_v54 = vmul.f32 %v4498_v21, %v5512_v8 }
 0x234   : > { %3319 = vpow2.f32 %v2894_v53  ;;  %v2863_v33 = vmul.f32 -1.442695, %v1859_v63  ;;  %v1797_v40 = vmul.f32 %v4508_v44, %v1572_v31  ;;  %1363 = vperm.xlu1 %3254, %v3532_v61   ;;  %v3306_v17 = vpop.eup %3305  ;;  %v1472_v22 = vadd.f32 %v1408_v46, %v1084_v6  ;;  %v5514_v46 = vld [vmem:[#allocation26_spill] sm:$0xff] }
 0x235   : > { %v2895_v15 = vmul.f32 -1.442695, %v1891_v18  ;;  %v1308_v14 = vpop.permute.xlu1 %1307  ;;  %v3308_v24 = vpop.eup %3307  ;;  %v2109_v12 = vadd.f32 1.0, %v3306_v17  ;;  %v1116_v49 = vadd.f32 %v1052_v38, %v728_v5  ;;  %v1441_v10 = vmul.f32 %v4519_v27, %v4581_v36  ;;  %v5515_v38 = vld [vmem:[#allocation81_spill] sm:$0xff] }
 0x236   : > { %3321 = vpow2.f32 %v2863_v33  ;;  %v1861_v48 = vadd.f32 %v1797_v40, %v1473_v52  ;;  %v2112_v16 = vadd.f32 1.0, %v3308_v24  ;;  %v1440_v56 = vmul.f32 %v4519_v27, %v1308_v14 }
 0x237   : > { %3323 = vpow2.f32 %v2895_v15  ;;  %v1117_v58 = vadd.f32 %v1053_v54, %v729_v3  ;;  %v1580_v6 = vpop.permute.xlu0 %1579  ;;  %v1411_v5 = vmul.f32 %v4519_v27, %v4441_v42  ;;  %v1410_v8 = vmul.f32 %v4519_v27, %v4438_v7 }
 0x238   : > { %v3310_v34 = vpop.eup %3309  ;;  %3325 = vrcp.f32 %v2109_v12  ;;  %3255 = vset.pattern.permute.xlu1 %v5433_v32  ;;  %v2865_v28 = vmul.f32 -1.442695, %v1861_v48  ;;  %v1504_v63 = vadd.f32 %v1440_v56, %v1116_v49  ;;  %v1799_v3 = vmul.f32 %v4508_v44, %v1580_v6 }
 0x239   : > { %v3312_v4 = vpop.eup %3311  ;;  %3327 = vrcp.f32 %v2110_v59  ;;  %1623 = vperm.xlu1 %3255, %v3533_v23   ;;  %3094 = vmatprep.mubr.f32.mxu1 %v3310_v34  ;;  %v5513_v59 = vld [vmem:[#allocation25_spill] sm:$0xff]  ;;  %v1505_v62 = vadd.f32 %v1441_v10, %v1117_v58  ;;  %v628_v34 = vmul.f32 %v4493_v25, %v5514_v46  ;;  %v3536_v10 = vld [vmem:[%s3699_s9 + $0xd0] sm:$0xff] }
 0x23a   : > { %v3314_v19 = vpop.eup %3313  ;;  %v2111_v39 = vadd.f32 1.0, %v3312_v4  ;;  %v1568_v20 = vpop.permute.xlu1 %1567  ;;  %v629_v15 = vmul.f32 %v4493_v25, %v5513_v59  ;;  %v1023_v4 = vmul.f32 %v4498_v21, %v5515_v38  ;;  %v5519_v59 = vld [vmem:[#allocation101_spill] sm:$0xff] }
 0x23b   : > { %v2114_v51 = vadd.f32 1.0, %v3314_v19  ;;  %v1796_v13 = vmul.f32 %v4508_v44, %v1568_v20  ;;  %v698_v20 = vadd.f32 %v4513_v29, %v628_v34 }
 0x23c   : > { %v3316_v45 = vpop.eup %3315  ;;  %3329 = vrcp.f32 %v2111_v39  ;;  %v699_v19 = vadd.f32 %v4513_v29, %v629_v15  ;;  %v1055_v15 = vmul.f32 %v4498_v21, %v5519_v59 }
 0x23d   : > { %v3318_v47 = vpop.eup %3317  ;;  %3331 = vrcp.f32 %v2112_v16  ;;  %v1860_v53 = vadd.f32 %v1796_v13, %v1472_v22  ;;  %1751 = vperm.xlu1 %3255, %v3532_v61   ;;  %3095 = vmatmul.mubr.f32.gmra.mrb[6].mxu1 %v3316_v45  ;;  %v3535_v16 = vld [vmem:[%s3699_s9 + $0x1d0] sm:$0xff]  ;;  %v5516_v22 = vld [vmem:[#allocation58_spill] sm:$0xff]  ;;  %v5517_v13 = vld [vmem:[#allocation80_spill] sm:$0xff] }
 0x23e   : > { %v3320_v26 = vpop.eup %3319  ;;  %v2113_v57 = vadd.f32 1.0, %v3318_v47  ;;  %3333 = vpow2.f32 %v2865_v28  ;;  %v1696_v18 = vpop.permute.xlu1 %1695  ;;  %v1022_v45 = vmul.f32 %v4498_v21, %v5517_v13  ;;  %v1087_v47 = vadd.f32 %v1023_v4, %v699_v19  ;;  %v5520_v4 = vld [vmem:[#allocation27_spill] sm:$0xff] }
 0x23f   : > { %3335 = vrcp.f32 %v2114_v51  ;;  %v2146_v31 = vadd.f32 1.0, %v3320_v26  ;;  %v2864_v52 = vmul.f32 -1.442695, %v1860_v53  ;;  %v1828_v33 = vmul.f32 %v4508_v44, %v1696_v18  ;;  %v5521_v19 = vld [vmem:[#allocation83_spill] sm:$0xff] }
 0x240   : > { %v3322_v40 = vpop.eup %3321  ;;  %3337 = vrcp.f32 %v2113_v57  ;;  %v660_v51 = vmul.f32 %v4493_v25, %v5516_v22  ;;  %v1054_v53 = vmul.f32 %v4498_v21, %v4309_v60  ;;  %v1475_v26 = vadd.f32 %v1411_v5, %v1087_v47 }
 0x241   : > { %v3324_v17 = vpop.eup %3323  ;;  %3339 = vrcp.f32 %v2146_v31  ;;  %v2115_v61 = vadd.f32 1.0, %v3322_v40  ;;  %v1892_v55 = vadd.f32 %v1828_v33, %v1504_v63  ;;  %1755 = vperm.xlu1 %3255, %v3534_v41   ;;  %v5518_v63 = vld [vmem:[#allocation57_spill] sm:$0xff] }
 0x242   : > { %v3326_v36 = vpop.eup %3325  ;;  %v2147_v14 = vadd.f32 1.0, %v3324_v17  ;;  %3341 = vpow2.f32 %v2864_v52  ;;  %v1700_v24 = vpop.permute.xlu1 %1699  ;;  %v661_v18 = vmul.f32 %v4493_v25, %v5518_v63  ;;  %v730_v31 = vadd.f32 %v4513_v29, %v660_v51 }
 0x243   : > { %v3328_v43 = vpop.eup %3327  ;;  %3343 = vrcp.f32 %v2115_v61  ;;  %v2896_v12 = vmul.f32 -1.442695, %v1892_v55  ;;  %v1829_v48 = vmul.f32 %v4508_v44, %v1700_v24  ;;  %3041 = vmatmul.mubr.f32.gmra.mrb[2].mxu0 %v3326_v36  ;;  %v1086_v52 = vadd.f32 %v1022_v45, %v698_v20  ;;  %v1588_v51 = vpop.permute.xlu0 %1587 }
 0x244   : > { %3345 = vrcp.f32 %v2147_v14  ;;  %3043 = vmatprep.mubr.f32.mxu0 %v3328_v43  ;;  %v1863_v17 = vadd.f32 %v1799_v3, %v1475_v26  ;;  %v1118_v36 = vadd.f32 %v1054_v53, %v730_v31  ;;  %v731_v24 = vadd.f32 %v4513_v29, %v661_v18 }
 0x245   : > { %v1893_v30 = vadd.f32 %v1829_v48, %v1505_v62  ;;  %3256 = vset.pattern.permute.xlu1 %v5439_v35  ;;  %3347 = vpow2.f32 %v2896_v12  ;;  %v1474_v41 = vadd.f32 %v1410_v8, %v1086_v52  ;;  %v1443_v43 = vmul.f32 %v4519_v27, %v4586_v2  ;;  %v5524_v52 = vld [vmem:[#allocation60_spill] sm:$0xff] }
 0x246   : > { %v3330_v37 = vpop.eup %3329  ;;  %1371 = vperm.xlu1 %3256, %v3535_v16   ;;  %v2867_v48 = vmul.f32 -1.442695, %v1863_v17  ;;  %v1119_v6 = vadd.f32 %v1055_v15, %v731_v24  ;;  %v1025_v2 = vmul.f32 %v4498_v21, %v5521_v19  ;;  %v1801_v8 = vmul.f32 %v4508_v44, %v1588_v51 }
 0x247   : > { %v3332_v23 = vpop.eup %3331  ;;  %v2897_v39 = vmul.f32 -1.442695, %v1893_v30  ;;  %3044 = vmatmul.mubr.f32.gmra.mrb[4].mxu0 %v3330_v37  ;;  %v1316_v28 = vpop.permute.xlu1 %1315  ;;  %v631_v30 = vmul.f32 %v4493_v25, %v5520_v4  ;;  %v1445_v19 = vmul.f32 %v4519_v27, %v4591_v1 }
 0x248   : > { %v3334_v56 = vpop.eup %3333  ;;  %3046 = vmatprep.mubr.f32.mxu0 %v3332_v23  ;;  %v1442_v60 = vmul.f32 %v4519_v27, %v1316_v28  ;;  %v3537_v23 = vld [vmem:[%s3699_s9 + $0x1d8] sm:$0xff]  ;;  %v1507_v22 = vadd.f32 %v1443_v43, %v1119_v6  ;;  %v5526_v43 = vld [vmem:[#allocation29_spill] sm:$0xff]  ;;  %v1596_v51 = vpop.permute.xlu0 %1595 }
 0x249   : > { %v3336_v49 = vpop.eup %3335  ;;  %3349 = vpow2.f32 %v2897_v39  ;;  %v2117_v33 = vadd.f32 1.0, %v3334_v56  ;;  %v5522_v56 = vld [vmem:[#allocation28_spill] sm:$0xff]  ;;  %v701_v45 = vadd.f32 %v4513_v29, %v631_v30 }
 0x24a   : > { %v3338_v42 = vpop.eup %3337  ;;  %3257 = vset.pattern.permute.xlu1 %v5433_v32  ;;  %v1506_v34 = vadd.f32 %v1442_v60, %v1118_v36  ;;  %v630_v20 = vmul.f32 %v4493_v25, %v5522_v56  ;;  %v3539_v60 = vld [vmem:[%s3699_s9 + $0xe0] sm:$0xff] }
 0x24b   : > { %v3340_v54 = vpop.eup %3339  ;;  %3047 = vmatmul.mubr.f32.gmra.mrb[6].mxu0 %v3338_v42  ;;  %1631 = vperm.xlu1 %3257, %v3536_v10   ;;  %v1089_v42 = vadd.f32 %v1025_v2, %v701_v45  ;;  %v5523_v10 = vld [vmem:[#allocation82_spill] sm:$0xff] }
 0x24c   : > { %v3342_v57 = vpop.eup %3341  ;;  %3049 = vmatprep.mubr.f32.mxu0 %v3336_v49  ;;  %3097 = vmatprep.mubr.f32.mxu1 %v3340_v54  ;;  %v1576_v7 = vpop.permute.xlu1 %1575  ;;  %v1413_v49 = vmul.f32 %v4519_v27, %v4448_v11  ;;  %v3538_v54 = vld [vmem:[%s3699_s9 + $0x1e0] sm:$0xff]  ;;  %v700_v26 = vadd.f32 %v4513_v29, %v630_v20 }
 0x24d   : > { %v3344_v40 = vpop.eup %3343  ;;  %v2116_v58 = vadd.f32 1.0, %v3342_v57  ;;  %v1798_v61 = vmul.f32 %v4508_v44, %v1576_v7  ;;  %v1024_v57 = vmul.f32 %v4498_v21, %v5523_v10  ;;  %v1412_v7 = vmul.f32 %v4519_v27, %v4444_v9  ;;  %v4850_v9 = vld [vmem:[%s5303_s2] ss:$0 sm:$0xff] }
 0x24e   : > { %v3346_v55 = vpop.eup %3345  ;;  %v1477_v31 = vadd.f32 %v1413_v49, %v1089_v42  ;;  %v3541_v49 = vld [vmem:[%s3699_s9 + $0x1e8] sm:$0xff] }
 0x24f   : > { %3351 = vrcp.f32 %v2116_v58  ;;  %3050 = vmatmul.mubr.f32.gmra.mrb[8].mxu0 %v3344_v40  ;;  %1759 = vperm.xlu1 %3257, %v3535_v16   ;;  %v3348_v14 = vpop.eup %3347  ;;  %v1862_v62 = vadd.f32 %v1798_v61, %v1474_v41  ;;  %v1088_v17 = vadd.f32 %v1024_v57, %v700_v26  ;;  %v1056_v58 = vmul.f32 %v4498_v21, %v4321_v0  ;;  %v5525_v61 = vld [vmem:[#allocation59_spill] sm:$0xff] }
 0x250   : > { %3353 = vrcp.f32 %v2117_v33  ;;  %3098 = vmatmul.mubr.f32.gmra.mrb[8].mxu1 %v3346_v55  ;;  %v1704_v12 = vpop.permute.xlu1 %1703  ;;  %v2148_v46 = vadd.f32 1.0, %v3348_v14  ;;  %v662_v33 = vmul.f32 %v4493_v25, %v5524_v52  ;;  %v1865_v40 = vadd.f32 %v1801_v8, %v1477_v31  ;;  %v3542_v52 = vld [vmem:[%s3699_s9 + $0x1f0] sm:$0xff] }
 0x251   : > { %v1830_v38 = vmul.f32 %v4508_v44, %v1704_v12  ;;  %v2866_v39 = vmul.f32 -1.442695, %v1862_v62  ;;  %v663_v55 = vmul.f32 %v4493_v25, %v5525_v61  ;;  %v1476_v15 = vadd.f32 %v1412_v7, %v1088_v17 }
 0x252   : > { %3355 = vrcp.f32 %v2148_v46  ;;  %v732_v59 = vadd.f32 %v4850_v9, %v662_v33  ;;  %v633_v62 = vmul.f32 %v4493_v25, %v5526_v43  ;;  %v2869_v12 = vmul.f32 -1.442695, %v1865_v40  ;;  %v5527_v46 = vld [vmem:[#allocation102_spill] sm:$0xff]  ;;  %v5531_v33 = vld [vmem:[#allocation84_spill] sm:$0xff]  ;;  %v5535_v43 = vld [vmem:[#allocation61_spill] sm:$0xff] }
 0x253   : > { %v3350_v37 = vpop.eup %3349  ;;  %v1894_v16 = vadd.f32 %v1830_v38, %v1506_v34  ;;  %1763 = vperm.xlu1 %3257, %v3537_v23   ;;  %3357 = vpow2.f32 %v2867_v48  ;;  %v1057_v34 = vmul.f32 %v4498_v21, %v5527_v46  ;;  %v733_v30 = vadd.f32 %v4850_v9, %v663_v55  ;;  %v5533_v55 = vld [vmem:[#allocation118_spill] sm:$0xff] }
 0x254   : > { %v2149_v5 = vadd.f32 1.0, %v3350_v37  ;;  %v1708_v28 = vpop.permute.xlu1 %1707  ;;  %v1120_v48 = vadd.f32 %v1056_v58, %v732_v59  ;;  %v5528_v37 = vld [vmem:[#allocation85_spill] sm:$0xff]  ;;  %v703_v56 = vadd.f32 %v4850_v9, %v633_v62  ;;  %v1803_v26 = vmul.f32 %v4508_v44, %v1596_v51 }
 0x255   : > { %v1831_v13 = vmul.f32 %v4508_v44, %v1708_v28  ;;  %v2898_v47 = vmul.f32 -1.442695, %v1894_v16  ;;  %v1027_v6 = vmul.f32 %v4498_v21, %v5528_v37  ;;  %v1026_v7 = vmul.f32 %v4498_v21, %v5531_v33 }
 0x256   : > { %3359 = vrcp.f32 %v2149_v5  ;;  %v665_v62 = vmul.f32 %v4493_v25, %v5535_v43 }
 0x257   : > { %v1895_v3 = vadd.f32 %v1831_v13, %v1507_v22  ;;  %3258 = vset.pattern.permute.xlu1 %v5439_v35  ;;  %3361 = vpow2.f32 %v2866_v39  ;;  %v1121_v22 = vadd.f32 %v1057_v34, %v733_v30  ;;  %v1091_v8 = vadd.f32 %v1027_v6, %v703_v56 }
 0x258   : > { %1379 = vperm.xlu1 %3258, %v3538_v54   ;;  %3363 = vpow2.f32 %v2898_v47  ;;  %v5529_v47 = vld [vmem:[#allocation119_spill] sm:$0xff]  ;;  %v735_v56 = vadd.f32 %v4850_v9, %v665_v62  ;;  %v5544_v62 = vld [vmem:[#allocation120_spill] sm:$0xff] }
 0x259   : > { %v3352_v53 = vpop.eup %3351  ;;  %v2899_v63 = vmul.f32 -1.442695, %v1895_v3  ;;  %v1324_v11 = vpop.permute.xlu1 %1323  ;;  %v1415_v3 = vmul.f32 %v4519_v27, %v5529_v47 }
 0x25a   : > { %v3354_v18 = vpop.eup %3353  ;;  %3052 = vmatprep.mubr.f32.mxu0 %v3352_v53  ;;  %v1444_v14 = vmul.f32 %v4519_v27, %v1324_v11 }
 0x25b   : > { %3053 = vmatmul.mubr.f32.gmra.mrb[10].mxu0 %v3354_v18  ;;  %3365 = vpow2.f32 %v2899_v63  ;;  %v5530_v63 = vld [vmem:[#allocation30_spill] sm:$0xff]  ;;  %v1479_v31 = vadd.f32 %v1415_v3, %v1091_v8  ;;  %v5539_v3 = vld [vmem:[#allocation87_spill] sm:$0xff] }
 0x25c   : > { %3259 = vset.pattern.permute.xlu1 %v5433_v32  ;;  %v3356_v29 = vpop.eup %3355  ;;  %v1508_v5 = vadd.f32 %v1444_v14, %v1120_v48  ;;  %3367 = vpow2.f32 %v2869_v12  ;;  %v632_v11 = vmul.f32 %v4493_v25, %v5530_v63  ;;  %v5540_v63 = vld [vmem:[#allocation121_spill] sm:$0xff] }
 0x25d   : > { %1639 = vperm.xlu1 %3259, %v3539_v60   ;;  %3100 = vmatprep.mubr.f32.mxu1 %v3356_v29  ;;  %v3358_v36 = vpop.eup %3357  ;;  %v1867_v17 = vadd.f32 %v1803_v26, %v1479_v31  ;;  %v5532_v60 = vld [vmem:[#allocation62_spill] sm:$0xff] }
 0x25e   : > { %v1584_v41 = vpop.permute.xlu1 %1583  ;;  %v2119_v16 = vadd.f32 1.0, %v3358_v36  ;;  %v702_v58 = vadd.f32 %v4850_v9, %v632_v11  ;;  %v664_v61 = vmul.f32 %v4493_v25, %v5532_v60  ;;  %v1417_v11 = vmul.f32 %v4519_v27, %v5540_v63 }
 0x25f   : > { %v1800_v0 = vmul.f32 %v4508_v44, %v1584_v41  ;;  %v2871_v12 = vmul.f32 -1.442695, %v1867_v17  ;;  %v5541_v17 = vld [vmem:[#allocation32_spill] sm:$0xff] }
 0x260   : > { %v3360_v24 = vpop.eup %3359  ;;  %v1090_v59 = vadd.f32 %v1026_v7, %v702_v58  ;;  %v734_v34 = vadd.f32 %v4850_v9, %v664_v61  ;;  %v634_v58 = vmul.f32 %v4493_v25, %v5541_v17 }
 0x261   : > { %v1864_v38 = vadd.f32 %v1800_v0, %v1476_v15  ;;  %1767 = vperm.xlu1 %3259, %v3538_v54   ;;  %3101 = vmatmul.mubr.f32.gmra.mrb[10].mxu1 %v3360_v24  ;;  %v3362_v4 = vpop.eup %3361  ;;  %v1509_v54 = vadd.f32 %v1445_v19, %v1121_v22  ;;  %v5534_v15 = vld [vmem:[#allocation103_spill] sm:$0xff] }
 0x262   : > { %v1712_v23 = vpop.permute.xlu1 %1711  ;;  %v2118_v2 = vadd.f32 1.0, %v3362_v4  ;;  %v3364_v28 = vpop.eup %3363  ;;  %v1058_v14 = vmul.f32 %v4498_v21, %v5534_v15  ;;  %v3543_v0 = vld [vmem:[%s3699_s9 + $0xf0] sm:$0xff] }
 0x263   : > { %v1832_v39 = vmul.f32 %v4508_v44, %v1712_v23  ;;  %v2868_v20 = vmul.f32 -1.442695, %v1864_v38  ;;  %v2150_v13 = vadd.f32 1.0, %v3364_v28 }
 0x264   : > { %3369 = vrcp.f32 %v2118_v2  ;;  %v1122_v6 = vadd.f32 %v1058_v14, %v734_v34 }
 0x265   : > { %v1896_v45 = vadd.f32 %v1832_v39, %v1508_v5  ;;  %1771 = vperm.xlu1 %3259, %v3541_v49   ;;  %3371 = vrcp.f32 %v2119_v16  ;;  %v3366_v42 = vpop.eup %3365  ;;  %v5536_v16 = vld [vmem:[#allocation104_spill] sm:$0xff]  ;;  %v5537_v39 = vld [vmem:[#allocation31_spill] sm:$0xff] }
 0x266   : > { %v1716_v1 = vpop.permute.xlu1 %1715  ;;  %3373 = vrcp.f32 %v2150_v13  ;;  %v2151_v10 = vadd.f32 1.0, %v3366_v42  ;;  %v3368_v41 = vpop.eup %3367  ;;  %v1059_v23 = vmul.f32 %v4498_v21, %v5536_v16  ;;  %v635_v28 = vmul.f32 %v4493_v25, %v5537_v39 }
 0x267   : > { %v1833_v53 = vmul.f32 %v4508_v44, %v1716_v1  ;;  %3375 = vpow2.f32 %v2868_v20  ;;  %v2900_v57 = vmul.f32 -1.442695, %v1896_v45  ;;  %v2121_v37 = vadd.f32 1.0, %v3368_v41  ;;  %v5538_v20 = vld [vmem:[#allocation16_spill] sm:$0xff] }
 0x268   : > { %3377 = vrcp.f32 %v2151_v10  ;;  %v1447_v22 = vmul.f32 %v4519_v27, %v5538_v20  ;;  %v1029_v1 = vmul.f32 %v4498_v21, %v5539_v3  ;;  %v1123_v8 = vadd.f32 %v1059_v23, %v735_v56  ;;  %v3544_v10 = vld [vmem:[%s3699_s9 + $0x1f8] sm:$0xff]  ;;  %s216_s9 = sand.u32 1, %s3600_s19  }
 0x269   : > { %v1897_v18 = vadd.f32 %v1833_v53, %v1509_v54  ;;  %3260 = vset.pattern.permute.xlu1 %v5439_v35  ;;  %3379 = vpow2.f32 %v2900_v57  ;;  %v1414_v35 = vmul.f32 %v4519_v27, %v5533_v55  ;;  %v1604_v54 = vpop.permute.xlu0 %1603  ;;  %v705_v57 = vadd.f32 %v4850_v9, %v635_v28  ;;  %v5542_v55 = vld [vmem:[#allocation86_spill] sm:$0xff]  ;;  %s2850_s23 = sshll.u32 %s216_s9, 9  ;;  %s5260_s22 = scalar_lea.sflag [#allocation3], %s216_s9 }
 0x26a   : > { %1387 = vperm.xlu1 %3260, %v3542_v52   ;;  %s5092_s30 = scalar_lea.vmem [#allocation2], %s2850_s23 }
 0x26b   : > { %v2901_v40 = vmul.f32 -1.442695, %v1897_v18  ;;  %v1332_v29 = vpop.permute.xlu1 %1331  ;;  %v1478_v38 = vadd.f32 %v1414_v35, %v1090_v59  ;;  %v1028_v35 = vmul.f32 %v4498_v21, %v5542_v55  ;;  %s2784_s10 = sshll.u32 %s5092_s30, 4  ;;  %s5253_s10 = int_to_ptr.vmem [resolvable:$true] %s2784_s10 }
 0x26c   : > { %s3546_s14 = scalar_lea.vmem %s5253_s10, 8192  ;;  %p3553_p0 = scmp.lt.s32.totalorder %s5253_s10, %s3551_s16 }
 0x26d   : > { %3381 = vpow2.f32 %v2901_v40  ;;  %v1093_v40 = vadd.f32 %v1029_v1, %v705_v57  ;;  %v5550_v57 = vld [vmem:[#allocation89_spill] sm:$0xff]  ;;  %p3547_p11 = scmp.ne.s32.totalorder %s5253_s10, %s3546_s14  ;;  %p3554_p1 = scmp.lt.s32.totalorder %s3552_s17, %s3546_s14 }
 0x26e   : > { %3262 = vset.pattern.permute.xlu1 %v5433_v32  ;;  %v3370_v36 = vpop.eup %3369  ;;  %v1446_v32 = vmul.f32 %v4519_v27, %v1332_v29  ;;  %3383 = vpow2.f32 %v2871_v12  ;;  %v1805_v29 = vmul.f32 %v4508_v44, %v1604_v54  ;;  %v1416_v12 = vmul.f32 %v4519_v27, %v5544_v62 }
 0x26f   : > { %1647 = vperm.xlu1 %3262, %v3543_v0   ;;  %v3372_v24 = vpop.eup %3371  ;;  %3055 = vmatprep.mubr.f32.mxu0 %v3370_v36  ;;  %v1481_v61 = vadd.f32 %v1417_v11, %v1093_v40  ;;  %v704_v0 = vadd.f32 %v4850_v9, %v634_v58  ;;  %v1031_v63 = vmul.f32 %v4498_v21, %v5550_v57  ;;  %p3548_p12 = pnand %p3547_p11, %p3685_p5  ;;  %p3555_p2 = por %p3554_p1, %p3553_p0 }
 0x270   : > { %v1592_v48 = vpop.permute.xlu1 %1591  ;;  %v3374_v46 = vpop.eup %3373  ;;  %3056 = vmatmul.mubr.f32.gmra.mrb[12].mxu0 %v3372_v24  ;;  %v1510_v13 = vadd.f32 %v1446_v32, %v1122_v6  ;;  %v5543_v24 = vld [vmem:[#allocation64_spill] sm:$0xff] }
 0x271   : > { %v1802_v4 = vmul.f32 %v4508_v44, %v1592_v48  ;;  %v3376_v30 = vpop.eup %3375  ;;  %3103 = vmatprep.mubr.f32.mxu1 %v3374_v46  ;;  %v1869_v15 = vadd.f32 %v1805_v29, %v1481_v61  ;;  %v666_v43 = vmul.f32 %v4493_v25, %v5543_v24  ;;  %v1092_v34 = vadd.f32 %v1028_v35, %v704_v0  ;;  %v5553_v24 = vld [vmem:[#allocation88_spill] sm:$0xff]  ;;  %p3549_p13 = pneg %p3548_p12 }
 0x272   : > { %v2120_v19 = vadd.f32 1.0, %v3376_v30  ;;  %v3378_v5 = vpop.eup %3377  ;;  %v5546_v30 = vld [vmem:[#allocation63_spill] sm:$0xff] }
 0x273   : > { %v1866_v2 = vadd.f32 %v1802_v4, %v1478_v38  ;;  %1775 = vperm.xlu1 %3262, %v3542_v52   ;;  %3104 = vmatmul.mubr.f32.gmra.mrb[12].mxu1 %v3378_v5  ;;  %v3380_v47 = vpop.eup %3379  ;;  %v1511_v52 = vadd.f32 %v1447_v22, %v1123_v8  ;;  %v5545_v38 = vld [vmem:[#allocation105_spill] sm:$0xff]  ;;  %v2873_v6 = vmul.f32 -1.442695, %v1869_v15  ;;  %v1480_v5 = vadd.f32 %v1416_v12, %v1092_v34  ;;  %p3556_p3 = pnand %p3555_p2, %p3549_p13 }
 0x274   : > { %v1720_v51 = vpop.permute.xlu1 %1719  ;;  %3385 = vrcp.f32 %v2120_v19  ;;  %v2152_v53 = vadd.f32 1.0, %v3380_v47  ;;  %v1060_v32 = vmul.f32 %v4498_v21, %v5545_v38  ;;  %v5549_v8 = vld [vmem:[#allocation45_spill] sm:$0xff]  ;;  %v5554_v38 = vld [vmem:[#allocation66_spill] sm:$0xff] }
 0x275   : > { %v2870_v45 = vmul.f32 -1.442695, %v1866_v2  ;;  %v1834_v49 = vmul.f32 %v4508_v44, %v1720_v51  ;;  %3387 = vrcp.f32 %v2121_v37  ;;  %v667_v37 = vmul.f32 %v4493_v25, %v5546_v30  ;;  %v5547_v51 = vld [vmem:[#allocation106_spill] sm:$0xff] }
 0x276   : > { %v736_v2 = vadd.f32 %v4850_v9, %v666_v43  ;;  %v1449_v54 = vmul.f32 %v4519_v27, %v5549_v8  ;;  %v1030_v43 = vmul.f32 %v4498_v21, %v5553_v24  ;;  %v5563_v24 = vld [vmem:[#allocation36_spill] sm:$0xff] }
 0x277   : > { %v3382_v42 = vpop.eup %3381  ;;  %3389 = vpow2.f32 %v2870_v45  ;;  %v1898_v26 = vadd.f32 %v1834_v49, %v1510_v13  ;;  %1779 = vperm.xlu1 %3262, %v3544_v10   ;;  %v1061_v13 = vmul.f32 %v4498_v21, %v5547_v51  ;;  %v5548_v49 = vld [vmem:[#allocation33_spill] sm:$0xff]  ;;  %v737_v3 = vadd.f32 %v4850_v9, %v667_v37 }
 0x278   : > { %v2153_v18 = vadd.f32 1.0, %v3382_v42  ;;  %v1724_v31 = vpop.permute.xlu1 %1723  ;;  %3391 = vrcp.f32 %v2152_v53  ;;  %v3384_v59 = vpop.eup %3383  ;;  %v1124_v22 = vadd.f32 %v1060_v32, %v736_v2  ;;  %v637_v47 = vmul.f32 %v4493_v25, %v5548_v49 }
 0x279   : > { %v2902_v33 = vmul.f32 -1.442695, %v1898_v26  ;;  %v1835_v7 = vmul.f32 %v4508_v44, %v1724_v31  ;;  %v2123_v4 = vadd.f32 1.0, %v3384_v59  ;;  %v1612_v31 = vpop.permute.xlu0 %1611  ;;  %v668_v32 = vmul.f32 %v4493_v25, %v5554_v38 }
 0x27a   : > { %3393 = vrcp.f32 %v2153_v18  ;;  %v1125_v18 = vadd.f32 %v1061_v13, %v737_v3  ;;  %v1807_v35 = vmul.f32 %v4508_v44, %v1612_v31 }
 0x27b   : > { %3395 = vpow2.f32 %v2902_v33  ;;  %v1899_v60 = vadd.f32 %v1835_v7, %v1511_v52  ;;  %v707_v33 = vadd.f32 %v4850_v9, %v637_v47  ;;  %v5551_v7 = vld [vmem:[#allocation123_spill] sm:$0xff] }
 0x27c   : > { %v1419_v40 = vmul.f32 %v4519_v27, %v5551_v7  ;;  %v1513_v58 = vadd.f32 %v1449_v54, %v1125_v18  ;;  %v5559_v54 = vld [vmem:[#allocation35_spill] sm:$0xff] }
 0x27d   : > { %v2903_v41 = vmul.f32 -1.442695, %v1899_v60  ;;  %v1340_v36 = vpop.permute.xlu1 %1339  ;;  %v1095_v55 = vadd.f32 %v1031_v63, %v707_v33  ;;  %v5560_v63 = vld [vmem:[#allocation13_spill] sm:$0xff]  ;;  %v5561_v33 = vld [vmem:[#allocation91_spill] sm:$0xff] }
 0x27e   : > { %v3386_v14 = vpop.eup %3385  ;;  %v1448_v39 = vmul.f32 %v4519_v27, %v1340_v36  ;;  %v1033_v7 = vmul.f32 %v4498_v21, %v5561_v33 }
 0x27f   : > { %3397 = vpow2.f32 %v2903_v41  ;;  %v3388_v48 = vpop.eup %3387  ;;  %3058 = vmatprep.mubr.f32.mxu0 %v3386_v14  ;;  %v5552_v41 = vld [vmem:[#allocation34_spill] sm:$0xff]  ;;  %v1483_v14 = vadd.f32 %v1419_v40, %v1095_v55 }
 0x280   : > { %3059 = vmatmul.mubr.f32.gmra.mrb[14].mxu0 %v3388_v48  ;;  %v1512_v53 = vadd.f32 %v1448_v39, %v1124_v22  ;;  %v636_v36 = vmul.f32 %v4493_v25, %v5552_v41  ;;  %v738_v22 = vadd.f32 %v4850_v9, %v668_v32 }
 0x281   : > { %v3390_v46 = vpop.eup %3389 }
 0x282   : > { %v2122_v16 = vadd.f32 1.0, %v3390_v46  ;;  %v1600_v23 = vpop.permute.xlu1 %1599  ;;  %v3392_v19 = vpop.eup %3391  ;;  %v1871_v46 = vadd.f32 %v1807_v35, %v1483_v14  ;;  %v706_v34 = vadd.f32 %v4850_v9, %v636_v36 }
 0x283   : > { %v1804_v28 = vmul.f32 %v4508_v44, %v1600_v23  ;;  %3106 = vmatprep.mubr.f32.mxu1 %v3392_v19  ;;  %v5556_v23 = vld [vmem:[#allocation107_spill] sm:$0xff] }
 0x284   : > { %v3394_v56 = vpop.eup %3393  ;;  %3399 = vrcp.f32 %v2122_v16  ;;  %v1094_v16 = vadd.f32 %v1030_v43, %v706_v34  ;;  %v1062_v19 = vmul.f32 %v4498_v21, %v5556_v23  ;;  %v638_v43 = vmul.f32 %v4493_v25, %v5563_v24  ;;  %v5564_v34 = vld [vmem:[#allocation90_spill] sm:$0xff] }
 0x285   : > { %v3396_v20 = vpop.eup %3395  ;;  %3401 = vrcp.f32 %v2123_v4  ;;  %v1868_v45 = vadd.f32 %v1804_v28, %v1480_v5  ;;  %3107 = vmatmul.mubr.f32.gmra.mrb[14].mxu1 %v3394_v56  ;;  %v5555_v4 = vld [vmem:[#allocation122_spill] sm:$0xff]  ;;  %v5557_v5 = vld [vmem:[#allocation65_spill] sm:$0xff]  ;;  %v2875_v28 = vmul.f32 -1.442695, %v1871_v46  ;;  %v1032_v38 = vmul.f32 %v4498_v21, %v5564_v34 }
 0x286   : > { %3403 = vpow2.f32 %v2873_v6  ;;  %v2154_v1 = vadd.f32 1.0, %v3396_v20  ;;  %v1728_v42 = vpop.permute.xlu1 %1727  ;;  %v1418_v30 = vmul.f32 %v4519_v27, %v5555_v4  ;;  %v669_v39 = vmul.f32 %v4493_v25, %v5557_v5  ;;  %v5574_v34 = vld [vmem:[#allocation38_spill] sm:$0xff] }
 0x287   : > { %v2872_v26 = vmul.f32 -1.442695, %v1868_v45  ;;  %v1836_v10 = vmul.f32 %v4508_v44, %v1728_v42  ;;  %v1126_v3 = vadd.f32 %v1062_v19, %v738_v22  ;;  %v5566_v19 = vld [vmem:[#allocation124_spill] sm:$0xff] }
 0x288   : > { %3405 = vrcp.f32 %v2154_v1  ;;  %v1482_v51 = vadd.f32 %v1418_v30, %v1094_v16  ;;  %v5558_v1 = vld [vmem:[#allocation108_spill] sm:$0xff] }
 0x289   : > { %v3398_v11 = vpop.eup %3397  ;;  %3407 = vpow2.f32 %v2872_v26  ;;  %v1900_v52 = vadd.f32 %v1836_v10, %v1512_v53  ;;  %v1063_v42 = vmul.f32 %v4498_v21, %v5558_v1  ;;  %v639_v53 = vmul.f32 %v4493_v25, %v5559_v54  ;;  %v5565_v16 = vld [vmem:[#allocation68_spill] sm:$0xff] }
 0x28a   : > { %v2155_v29 = vadd.f32 1.0, %v3398_v11  ;;  %v1732_v17 = vpop.permute.xlu1 %1731  ;;  %v739_v26 = vadd.f32 %v4850_v9, %v669_v39  ;;  %v1451_v11 = vmul.f32 %v4519_v27, %v5560_v63  ;;  %v670_v23 = vmul.f32 %v4493_v25, %v5565_v16 }
 0x28b   : > { %v2904_v60 = vmul.f32 -1.442695, %v1900_v52  ;;  %v1837_v61 = vmul.f32 %v4508_v44, %v1732_v17  ;;  %v1620_v17 = vpop.permute.xlu0 %1619 }
 0x28c   : > { %3409 = vrcp.f32 %v2155_v29  ;;  %v1127_v29 = vadd.f32 %v1063_v42, %v739_v26 }
 0x28d   : > { %3411 = vpow2.f32 %v2904_v60  ;;  %v1901_v59 = vadd.f32 %v1837_v61, %v1513_v58  ;;  %v709_v60 = vadd.f32 %v4850_v9, %v639_v53  ;;  %v5562_v61 = vld [vmem:[#allocation125_spill] sm:$0xff] }
 0x28e   : > { %v3400_v15 = vpop.eup %3399  ;;  %v1421_v55 = vmul.f32 %v4519_v27, %v5562_v61  ;;  %v1515_v36 = vadd.f32 %v1451_v11, %v1127_v29  ;;  %v5570_v11 = vld [vmem:[#allocation37_spill] sm:$0xff] }
 0x28f   : > { %v3402_v0 = vpop.eup %3401  ;;  %v2905_v62 = vmul.f32 -1.442695, %v1901_v59  ;;  %v1348_v12 = vpop.permute.xlu1 %1347  ;;  %3061 = vmatprep.mubr.f32.mxu0 %v3400_v15  ;;  %v1097_v14 = vadd.f32 %v1033_v7, %v709_v60  ;;  %v5571_v7 = vld [vmem:[#allocation6_spill] sm:$0xff]  ;;  %v5572_v60 = vld [vmem:[#allocation93_spill] sm:$0xff] }
 0x290   : > { %v3404_v48 = vpop.eup %3403  ;;  %3062 = vmatmul.mubr.f32.gmra.mrb[16].mxu0 %v3402_v0  ;;  %v1450_v13 = vmul.f32 %v4519_v27, %v1348_v12  ;;  %v1809_v0 = vmul.f32 %v4508_v44, %v1620_v17  ;;  %v1035_v61 = vmul.f32 %v4498_v21, %v5572_v60 }
 0x291   : > { %3413 = vpow2.f32 %v2905_v62  ;;  %v2125_v2 = vadd.f32 1.0, %v3404_v48  ;;  %v1485_v48 = vadd.f32 %v1421_v55, %v1097_v14 }
 0x292   : > { %v3406_v37 = vpop.eup %3405  ;;  %v1514_v18 = vadd.f32 %v1450_v13, %v1126_v3  ;;  %v740_v3 = vadd.f32 %v4850_v9, %v670_v23 }
 0x293   : > { %v3408_v6 = vpop.eup %3407  ;;  %3109 = vmatprep.mubr.f32.mxu1 %v3406_v37  ;;  %v1873_v37 = vadd.f32 %v1809_v0, %v1485_v48 }
 0x294   : > { %v2124_v56 = vadd.f32 1.0, %v3408_v6  ;;  %v1608_v20 = vpop.permute.xlu1 %1607  ;;  %v708_v6 = vadd.f32 %v4850_v9, %v638_v43 }
 0x295   : > { %v1806_v45 = vmul.f32 %v4508_v44, %v1608_v20 }
 0x296   : > { %v3410_v49 = vpop.eup %3409  ;;  %3415 = vrcp.f32 %v2124_v56  ;;  %v5567_v56 = vld [vmem:[#allocation109_spill] sm:$0xff] }
 0x297   : > { %v3412_v47 = vpop.eup %3411  ;;  %3417 = vrcp.f32 %v2125_v2  ;;  %v1870_v8 = vadd.f32 %v1806_v45, %v1482_v51  ;;  %3110 = vmatmul.mubr.f32.gmra.mrb[16].mxu1 %v3410_v49  ;;  %v1420_v2 = vmul.f32 %v4519_v27, %v5566_v19  ;;  %v1064_v20 = vmul.f32 %v4498_v21, %v5567_v56  ;;  %v5568_v51 = vld [vmem:[#allocation67_spill] sm:$0xff] }
 0x298   : > { %3419 = vpow2.f32 %v2875_v28  ;;  %v2156_v10 = vadd.f32 1.0, %v3412_v47  ;;  %v1736_v57 = vpop.permute.xlu1 %1735  ;;  %v1096_v28 = vadd.f32 %v1032_v38, %v708_v6  ;;  %v671_v13 = vmul.f32 %v4493_v25, %v5568_v51  ;;  %v5575_v6 = vld [vmem:[#allocation92_spill] sm:$0xff] }
 0x299   : > { %v2874_v31 = vmul.f32 -1.442695, %v1870_v8  ;;  %v1838_v52 = vmul.f32 %v4508_v44, %v1736_v57  ;;  %v2877_v45 = vmul.f32 -1.442695, %v1873_v37  ;;  %v1128_v26 = vadd.f32 %v1064_v20, %v740_v3  ;;  %v5577_v20 = vld [vmem:[#allocation126_spill] sm:$0xff] }
 0x29a   : > { %3421 = vrcp.f32 %v2156_v10  ;;  %v1484_v1 = vadd.f32 %v1420_v2, %v1096_v28  ;;  %v5569_v10 = vld [vmem:[#allocation110_spill] sm:$0xff]  ;;  %v640_v38 = vmul.f32 %v4493_v25, %v5574_v34  ;;  %v1034_v16 = vmul.f32 %v4498_v21, %v5575_v6  ;;  %v5585_v6 = vld [vmem:[#allocation40_spill] sm:$0xff] }
 0x29b   : > { %v3414_v40 = vpop.eup %3413  ;;  %3423 = vpow2.f32 %v2874_v31  ;;  %v1902_v58 = vadd.f32 %v1838_v52, %v1514_v18  ;;  %v1065_v57 = vmul.f32 %v4498_v21, %v5569_v10  ;;  %v641_v18 = vmul.f32 %v4493_v25, %v5570_v11  ;;  %v5576_v28 = vld [vmem:[#allocation70_spill] sm:$0xff] }
 0x29c   : > { %v2157_v35 = vadd.f32 1.0, %v3414_v40  ;;  %v1740_v41 = vpop.permute.xlu1 %1739  ;;  %v741_v31 = vadd.f32 %v4850_v9, %v671_v13  ;;  %v1453_v40 = vmul.f32 %v4519_v27, %v5571_v7  ;;  %v672_v56 = vmul.f32 %v4493_v25, %v5576_v28 }
 0x29d   : > { %v2906_v59 = vmul.f32 -1.442695, %v1902_v58  ;;  %v1839_v15 = vmul.f32 %v4508_v44, %v1740_v41  ;;  %v1628_v41 = vpop.permute.xlu0 %1627 }
 0x29e   : > { %3425 = vrcp.f32 %v2157_v35  ;;  %v1129_v35 = vadd.f32 %v1065_v57, %v741_v31 }
 0x29f   : > { %3427 = vpow2.f32 %v2906_v59  ;;  %v1903_v62 = vadd.f32 %v1839_v15, %v1515_v36  ;;  %v711_v59 = vadd.f32 %v4850_v9, %v641_v18  ;;  %v5573_v15 = vld [vmem:[#allocation127_spill] sm:$0xff] }
 0x2a0   : > { %v3416_v12 = vpop.eup %3415  ;;  %v1423_v14 = vmul.f32 %v4519_v27, %v5573_v15  ;;  %v1517_v43 = vadd.f32 %v1453_v40, %v1129_v35  ;;  %v5581_v40 = vld [vmem:[#allocation39_spill] sm:$0xff] }
 0x2a1   : > { %v3418_v46 = vpop.eup %3417  ;;  %v2907_v32 = vmul.f32 -1.442695, %v1903_v62  ;;  %v1356_v4 = vpop.permute.xlu1 %1355  ;;  %3064 = vmatprep.mubr.f32.mxu0 %v3416_v12  ;;  %v1099_v48 = vadd.f32 %v1035_v61, %v711_v59  ;;  %v5582_v61 = vld [vmem:[#allocation48_spill] sm:$0xff]  ;;  %v5583_v59 = vld [vmem:[#allocation95_spill] sm:$0xff] }
 0x2a2   : > { %v3420_v30 = vpop.eup %3419  ;;  %3065 = vmatmul.mubr.f32.gmra.mrb[18].mxu0 %v3418_v46  ;;  %v1452_v42 = vmul.f32 %v4519_v27, %v1356_v4  ;;  %v1811_v46 = vmul.f32 %v4508_v44, %v1628_v41  ;;  %v1037_v15 = vmul.f32 %v4498_v21, %v5583_v59 }
 0x2a3   : > { %3429 = vpow2.f32 %v2907_v32  ;;  %v2127_v22 = vadd.f32 1.0, %v3420_v30  ;;  %v1487_v30 = vadd.f32 %v1423_v14, %v1099_v48 }
 0x2a4   : > { %v3422_v5 = vpop.eup %3421  ;;  %v1516_v29 = vadd.f32 %v1452_v42, %v1128_v26  ;;  %v742_v26 = vadd.f32 %v4850_v9, %v672_v56 }
 0x2a5   : > { %v3424_v39 = vpop.eup %3423  ;;  %3112 = vmatprep.mubr.f32.mxu1 %v3422_v5  ;;  %v1875_v5 = vadd.f32 %v1811_v46, %v1487_v30 }
 0x2a6   : > { %v2126_v49 = vadd.f32 1.0, %v3424_v39  ;;  %v1616_v47 = vpop.permute.xlu1 %1615  ;;  %v710_v39 = vadd.f32 %v4850_v9, %v640_v38 }
 0x2a7   : > { %v1808_v8 = vmul.f32 %v4508_v44, %v1616_v47 }
 0x2a8   : > { %v3426_v54 = vpop.eup %3425  ;;  %3431 = vrcp.f32 %v2126_v49  ;;  %v5578_v49 = vld [vmem:[#allocation111_spill] sm:$0xff] }
 0x2a9   : > { %v3428_v53 = vpop.eup %3427  ;;  %3433 = vrcp.f32 %v2127_v22  ;;  %v1872_v63 = vadd.f32 %v1808_v8, %v1484_v1  ;;  %3113 = vmatmul.mubr.f32.gmra.mrb[18].mxu1 %v3426_v54  ;;  %v1422_v22 = vmul.f32 %v4519_v27, %v5577_v20  ;;  %v1066_v47 = vmul.f32 %v4498_v21, %v5578_v49  ;;  %v5579_v1 = vld [vmem:[#allocation69_spill] sm:$0xff] }
 0x2aa   : > { %3435 = vpow2.f32 %v2877_v45  ;;  %v2158_v52 = vadd.f32 1.0, %v3428_v53  ;;  %v1744_v33 = vpop.permute.xlu1 %1743  ;;  %v1098_v45 = vadd.f32 %v1034_v16, %v710_v39  ;;  %v673_v42 = vmul.f32 %v4493_v25, %v5579_v1  ;;  %v5586_v39 = vld [vmem:[#allocation94_spill] sm:$0xff] }
 0x2ab   : > { %v2876_v17 = vmul.f32 -1.442695, %v1872_v63  ;;  %v1840_v58 = vmul.f32 %v4508_v44, %v1744_v33  ;;  %v2879_v8 = vmul.f32 -1.442695, %v1875_v5  ;;  %v1130_v31 = vadd.f32 %v1066_v47, %v742_v26  ;;  %v5588_v47 = vld [vmem:[#allocation128_spill] sm:$0xff] }
 0x2ac   : > { %3437 = vrcp.f32 %v2158_v52  ;;  %v1486_v10 = vadd.f32 %v1422_v22, %v1098_v45  ;;  %v5580_v52 = vld [vmem:[#allocation112_spill] sm:$0xff]  ;;  %v642_v16 = vmul.f32 %v4493_v25, %v5585_v6  ;;  %v1036_v28 = vmul.f32 %v4498_v21, %v5586_v39  ;;  %v5587_v45 = vld [vmem:[#allocation71_spill] sm:$0xff]  ;;  %v5596_v39 = vld [vmem:[#allocation42_spill] sm:$0xff] }
 0x2ad   : > { %v3430_v55 = vpop.eup %3429  ;;  %3439 = vpow2.f32 %v2876_v17  ;;  %v1904_v36 = vadd.f32 %v1840_v58, %v1516_v29  ;;  %v1067_v33 = vmul.f32 %v4498_v21, %v5580_v52  ;;  %v643_v29 = vmul.f32 %v4493_v25, %v5581_v40 }
 0x2ae   : > { %v2159_v0 = vadd.f32 1.0, %v3430_v55  ;;  %v1748_v24 = vpop.permute.xlu1 %1747  ;;  %v743_v17 = vadd.f32 %v4850_v9, %v673_v42  ;;  %v1455_v55 = vmul.f32 %v4519_v27, %v5582_v61  ;;  %v674_v49 = vmul.f32 %v4493_v25, %v5587_v45 }
 0x2af   : > { %v2908_v62 = vmul.f32 -1.442695, %v1904_v36  ;;  %v1841_v12 = vmul.f32 %v4508_v44, %v1748_v24  ;;  %v1636_v24 = vpop.permute.xlu0 %1635 }
 0x2b0   : > { %3441 = vrcp.f32 %v2159_v0  ;;  %v1131_v0 = vadd.f32 %v1067_v33, %v743_v17 }
 0x2b1   : > { %3443 = vpow2.f32 %v2908_v62  ;;  %v1905_v32 = vadd.f32 %v1841_v12, %v1517_v43  ;;  %v713_v62 = vadd.f32 %v4850_v9, %v643_v29  ;;  %v5584_v12 = vld [vmem:[#allocation129_spill] sm:$0xff] }
 0x2b2   : > { %v3432_v4 = vpop.eup %3431  ;;  %v1425_v48 = vmul.f32 %v4519_v27, %v5584_v12  ;;  %v1519_v38 = vadd.f32 %v1455_v55, %v1131_v0  ;;  %v5592_v55 = vld [vmem:[#allocation41_spill] sm:$0xff] }
 0x2b3   : > { %v3434_v37 = vpop.eup %3433  ;;  %v2909_v23 = vmul.f32 -1.442695, %v1905_v32  ;;  %v1364_v19 = vpop.permute.xlu1 %1363  ;;  %3067 = vmatprep.mubr.f32.mxu0 %v3432_v4  ;;  %v1101_v30 = vadd.f32 %v1037_v15, %v713_v62  ;;  %v5593_v15 = vld [vmem:[#allocation47_spill] sm:$0xff]  ;;  %v5594_v62 = vld [vmem:[#allocation97_spill] sm:$0xff] }
 0x2b4   : > { %v3436_v2 = vpop.eup %3435  ;;  %3068 = vmatmul.mubr.f32.gmra.mrb[20].mxu0 %v3434_v37  ;;  %v1454_v57 = vmul.f32 %v4519_v27, %v1364_v19  ;;  %v1813_v37 = vmul.f32 %v4508_v44, %v1636_v24  ;;  %v1039_v12 = vmul.f32 %v4498_v21, %v5594_v62  ;;  %v5603_v62 = vld [vmem:[#allocation116_spill] sm:$0xff] }
 0x2b5   : > { %3445 = vpow2.f32 %v2909_v23  ;;  %v2129_v3 = vadd.f32 1.0, %v3436_v2  ;;  %v1489_v2 = vadd.f32 %v1425_v48, %v1101_v30 }
 0x2b6   : > { %v3438_v51 = vpop.eup %3437  ;;  %v1518_v35 = vadd.f32 %v1454_v57, %v1130_v31  ;;  %v744_v31 = vadd.f32 %v4850_v9, %v674_v49 }
 0x2b7   : > { %v3440_v13 = vpop.eup %3439  ;;  %3115 = vmatprep.mubr.f32.mxu1 %v3438_v51  ;;  %v1877_v51 = vadd.f32 %v1813_v37, %v1489_v2 }
 0x2b8   : > { %v2128_v54 = vadd.f32 1.0, %v3440_v13  ;;  %v1624_v53 = vpop.permute.xlu1 %1623  ;;  %v712_v13 = vadd.f32 %v4850_v9, %v642_v16 }
 0x2b9   : > { %v1810_v63 = vmul.f32 %v4508_v44, %v1624_v53 }
 0x2ba   : > { %v3442_v11 = vpop.eup %3441  ;;  %3447 = vrcp.f32 %v2128_v54  ;;  %v5589_v54 = vld [vmem:[#allocation113_spill] sm:$0xff] }
 0x2bb   : > { %v3444_v18 = vpop.eup %3443  ;;  %3449 = vrcp.f32 %v2129_v3  ;;  %v1874_v7 = vadd.f32 %v1810_v63, %v1486_v10  ;;  %3116 = vmatmul.mubr.f32.gmra.mrb[20].mxu1 %v3442_v11  ;;  %v1424_v3 = vmul.f32 %v4519_v27, %v5588_v47  ;;  %v1068_v53 = vmul.f32 %v4498_v21, %v5589_v54  ;;  %v5590_v10 = vld [vmem:[#allocation7_spill] sm:$0xff] }
 0x2bc   : > { %3451 = vpow2.f32 %v2879_v8  ;;  %v2160_v58 = vadd.f32 1.0, %v3444_v18  ;;  %v1752_v60 = vpop.permute.xlu1 %1751  ;;  %v1100_v8 = vadd.f32 %v1036_v28, %v712_v13  ;;  %v675_v57 = vmul.f32 %v4493_v25, %v5590_v10  ;;  %v5597_v13 = vld [vmem:[#allocation96_spill] sm:$0xff] }
 0x2bd   : > { %v2878_v41 = vmul.f32 -1.442695, %v1874_v7  ;;  %v1842_v36 = vmul.f32 %v4508_v44, %v1752_v60  ;;  %v2881_v63 = vmul.f32 -1.442695, %v1877_v51  ;;  %v1132_v17 = vadd.f32 %v1068_v53, %v744_v31  ;;  %v5599_v53 = vld [vmem:[#allocation130_spill] sm:$0xff] }
 0x2be   : > { %3453 = vrcp.f32 %v2160_v58  ;;  %v1488_v52 = vadd.f32 %v1424_v3, %v1100_v8  ;;  %v5591_v58 = vld [vmem:[#allocation114_spill] sm:$0xff]  ;;  %v644_v28 = vmul.f32 %v4493_v25, %v5596_v39  ;;  %v1038_v45 = vmul.f32 %v4498_v21, %v5597_v13 }
 0x2bf   : > { %v3446_v14 = vpop.eup %3445  ;;  %3455 = vpow2.f32 %v2878_v41  ;;  %v1906_v43 = vadd.f32 %v1842_v36, %v1518_v35  ;;  %v1069_v60 = vmul.f32 %v4498_v21, %v5591_v58  ;;  %v645_v35 = vmul.f32 %v4493_v25, %v5592_v55  ;;  %v5606_v13 = vld [vmem:[#allocation14_spill] sm:$0xff] }
 0x2c0   : > { %v2161_v46 = vadd.f32 1.0, %v3446_v14  ;;  %v1756_v34 = vpop.permute.xlu1 %1755  ;;  %v745_v41 = vadd.f32 %v4850_v9, %v675_v57  ;;  %v1457_v14 = vmul.f32 %v4519_v27, %v5593_v15  ;;  %v714_v54 = vadd.f32 %v4850_v9, %v644_v28  ;;  %v5077_v57 = vld [vmem:[%s5305_s4] ss:$0 sm:$0xff]  ;;  %v5602_v15 = vld [vmem:[#allocation43_spill] sm:$0xff] }
 0x2c1   : > { %v2910_v32 = vmul.f32 -1.442695, %v1906_v43  ;;  %v1843_v4 = vmul.f32 %v4508_v44, %v1756_v34  ;;  %v1644_v34 = vpop.permute.xlu0 %1643 }
 0x2c2   : > { %3457 = vrcp.f32 %v2161_v46  ;;  %v1133_v46 = vadd.f32 %v1069_v60, %v745_v41 }
 0x2c3   : > { %3459 = vpow2.f32 %v2910_v32  ;;  %v1907_v23 = vadd.f32 %v1843_v4, %v1519_v38  ;;  %v715_v32 = vadd.f32 %v4850_v9, %v645_v35  ;;  %v5595_v4 = vld [vmem:[#allocation46_spill] sm:$0xff] }
 0x2c4   : > { %v3448_v19 = vpop.eup %3447  ;;  %v1427_v30 = vmul.f32 %v4519_v27, %v5595_v4  ;;  %v1521_v16 = vadd.f32 %v1457_v14, %v1133_v46  ;;  %v647_v14 = vmul.f32 %v4493_v25, %v5602_v15  ;;  %v5611_v15 = vld [vmem:[#allocation117_spill] sm:$0xff] }
 0x2c5   : > { %v3450_v5 = vpop.eup %3449  ;;  %v2911_v56 = vmul.f32 -1.442695, %v1907_v23  ;;  %v1372_v20 = vpop.permute.xlu1 %1371  ;;  %3070 = vmatprep.mubr.f32.mxu0 %v3448_v19  ;;  %v1103_v2 = vadd.f32 %v1039_v12, %v715_v32  ;;  %v1071_v12 = vmul.f32 %v4498_v21, %v5603_v62 }
 0x2c6   : > { %v3452_v22 = vpop.eup %3451  ;;  %3071 = vmatmul.mubr.f32.gmra.mrb[22].mxu0 %v3450_v5  ;;  %v1456_v33 = vmul.f32 %v4519_v27, %v1372_v20  ;;  %v1815_v5 = vmul.f32 %v4508_v44, %v1644_v34  ;;  %v5604_v34 = vld [vmem:[#allocation50_spill] sm:$0xff] }
 0x2c7   : > { %3461 = vpow2.f32 %v2911_v56  ;;  %v2131_v26 = vadd.f32 1.0, %v3452_v22  ;;  %v1491_v22 = vadd.f32 %v1427_v30, %v1103_v2  ;;  %v5605_v2 = vld [vmem:[#allocation99_spill] sm:$0xff] }
 0x2c8   : > { %v3454_v1 = vpop.eup %3453  ;;  %v1520_v0 = vadd.f32 %v1456_v33, %v1132_v17  ;;  %v5601_v33 = vld [vmem:[#allocation9_spill] sm:$0xff] }
 0x2c9   : > { %v3456_v42 = vpop.eup %3455  ;;  %3118 = vmatprep.mubr.f32.mxu1 %v3454_v1  ;;  %v5598_v1 = vld [vmem:[#allocation8_spill] sm:$0xff]  ;;  %v1879_v8 = vadd.f32 %v1815_v5, %v1491_v22  ;;  %v1041_v5 = vmul.f32 %v4498_v21, %v5605_v2 }
 0x2ca   : > { %v2130_v11 = vadd.f32 1.0, %v3456_v42  ;;  %v1632_v18 = vpop.permute.xlu1 %1631  ;;  %v676_v42 = vmul.f32 %v4493_v25, %v5598_v1 }
 0x2cb   : > { %v1812_v7 = vmul.f32 %v4508_v44, %v1632_v18  ;;  %v5600_v18 = vld [vmem:[#allocation115_spill] sm:$0xff] }
 0x2cc   : > { %v3458_v40 = vpop.eup %3457  ;;  %3463 = vrcp.f32 %v2130_v11  ;;  %v1102_v11 = vadd.f32 %v1038_v45, %v714_v54  ;;  %v1070_v31 = vmul.f32 %v4498_v21, %v5600_v18  ;;  %v1429_v45 = vmul.f32 %v4519_v27, %v5606_v13  ;;  %v5608_v18 = vld [vmem:[#allocation98_spill] sm:$0xff] }
 0x2cd   : > { %v3460_v29 = vpop.eup %3459  ;;  %3465 = vrcp.f32 %v2131_v26  ;;  %v1876_v61 = vadd.f32 %v1812_v7, %v1488_v52  ;;  %3119 = vmatmul.mubr.f32.gmra.mrb[22].mxu1 %v3458_v40  ;;  %v1426_v26 = vmul.f32 %v4519_v27, %v5599_v53  ;;  %v677_v7 = vmul.f32 %v4493_v25, %v5601_v33  ;;  %v5607_v53 = vld [vmem:[#allocation44_spill] sm:$0xff] }
 0x2ce   : > { %3467 = vpow2.f32 %v2881_v63  ;;  %v2162_v36 = vadd.f32 1.0, %v3460_v29  ;;  %v1760_v59 = vpop.permute.xlu1 %1759  ;;  %v746_v40 = vadd.f32 %v4850_v9, %v676_v42  ;;  %v2883_v29 = vmul.f32 -1.442695, %v1879_v8 }
 0x2cf   : > { %v2880_v24 = vmul.f32 -1.442695, %v1876_v61  ;;  %v1844_v43 = vmul.f32 %v4508_v44, %v1760_v59  ;;  %v1490_v61 = vadd.f32 %v1426_v26, %v1102_v11  ;;  %v747_v46 = vadd.f32 %v4850_v9, %v677_v7 }
 0x2d0   : > { %3469 = vrcp.f32 %v2162_v36  ;;  %v646_v26 = vmul.f32 %v4493_v25, %v5607_v53 }
 0x2d1   : > { %v3462_v48 = vpop.eup %3461  ;;  %3471 = vpow2.f32 %v2880_v24  ;;  %v1908_v38 = vadd.f32 %v1844_v43, %v1520_v0  ;;  %v1134_v43 = vadd.f32 %v1070_v31, %v746_v40  ;;  %v1040_v31 = vmul.f32 %v4498_v21, %v5608_v18 }
 0x2d2   : > { %v2163_v37 = vadd.f32 1.0, %v3462_v48  ;;  %v1764_v6 = vpop.permute.xlu1 %1763 }
 0x2d3   : > { %v2912_v23 = vmul.f32 -1.442695, %v1908_v38  ;;  %v1845_v19 = vmul.f32 %v4508_v44, %v1764_v6  ;;  %v1459_v38 = vmul.f32 %v4519_v27, %v5604_v34 }
 0x2d4   : > { %3473 = vrcp.f32 %v2163_v37 }
 0x2d5   : > { %3475 = vpow2.f32 %v2912_v23  ;;  %v1909_v56 = vadd.f32 %v1845_v19, %v1521_v16 }
 0x2d6   : > { %v3464_v20 = vpop.eup %3463 }
 0x2d7   : > { %v3466_v51 = vpop.eup %3465  ;;  %v2913_v49 = vmul.f32 -1.442695, %v1909_v56  ;;  %v1380_v47 = vpop.permute.xlu1 %1379  ;;  %3073 = vmatprep.mubr.f32.mxu0 %v3464_v20  ;;  %v1135_v56 = vadd.f32 %v1071_v12, %v747_v46 }
 0x2d8   : > { %v3468_v3 = vpop.eup %3467  ;;  %3074 = vmatmul.mubr.f32.gmra.mrb[24].mxu0 %v3466_v51  ;;  %v1458_v55 = vmul.f32 %v4519_v27, %v1380_v47  ;;  %v1652_v20 = vpop.permute.xlu0 %1651  ;;  %v717_v51 = vadd.f32 %v4850_v9, %v647_v14  ;;  %v1072_v14 = vmul.f32 %v4498_v21, %v5611_v15 }
 0x2d9   : > { %3477 = vpow2.f32 %v2913_v49  ;;  %v2133_v52 = vadd.f32 1.0, %v3468_v3  ;;  %v1523_v3 = vadd.f32 %v1459_v38, %v1135_v56  ;;  %v1817_v54 = vmul.f32 %v4508_v44, %v1652_v20 }
 0x2da   : > { %v3470_v10 = vpop.eup %3469  ;;  %v1522_v37 = vadd.f32 %v1458_v55, %v1134_v43  ;;  %v1105_v8 = vadd.f32 %v1041_v5, %v717_v51 }
 0x2db   : > { %v3472_v63 = vpop.eup %3471  ;;  %3121 = vmatprep.mubr.f32.mxu1 %v3470_v10 }
 0x2dc   : > { %v2132_v17 = vadd.f32 1.0, %v3472_v63  ;;  %v1640_v58 = vpop.permute.xlu1 %1639  ;;  %v3039_v60 = vpop.f32.mrb[0].mxu0  ;;  %v1493_v63 = vadd.f32 %v1429_v45, %v1105_v8 }
 0x2dd   : > { %v1814_v35 = vmul.f32 %v4508_v44, %v1640_v58  ;;  %v2393_v41 = vadd.f32 %v3039_v60, %v5077_v57  ;;  %v2387_v36 = vpop.f32.mrb[1].mxu0  ;;  %v5609_v58 = vld [vmem:[#allocation10_spill] sm:$0xff] }
 0x2de   : > { %v3474_v59 = vpop.eup %3473  ;;  %3479 = vrcp.f32 %v2132_v17  ;;  %v2388_v0 = vadd.f32 %v5077_v57, %v2387_v36  ;;  %v1881_v40 = vadd.f32 %v1817_v54, %v1493_v63  ;;  %v678_v60 = vmul.f32 %v4493_v25, %v5609_v58 }
 0x2df   : > { %v3476_v24 = vpop.eup %3475  ;;  %3481 = vrcp.f32 %v2133_v52  ;;  %v1878_v48 = vadd.f32 %v1814_v35, %v1490_v61  ;;  %2707 = vst [vmem:[%s5092_s30 + $0x8] sm:$0xff] %v2393_v41  ;;  %3122 = vmatmul.mubr.f32.gmra.mrb[24].mxu1 %v3474_v59  ;;  %v5610_v61 = vld [vmem:[#allocation5_spill] sm:$0xff] }
 0x2e0   : > { %3483 = vpow2.f32 %v2883_v29  ;;  %v2164_v32 = vadd.f32 1.0, %v3476_v24  ;;  %2706 = vst [vmem:[%s5092_s30] sm:$0xff] %v2388_v0  ;;  %v1768_v4 = vpop.permute.xlu1 %1767  ;;  %v3087_v30 = vpop.f32.mrb[0].mxu1  ;;  %v3545_v29 = vld [vmem:[%s5303_s2] ss:$0 sm:$0xff]  ;;  %v1428_v55 = vmul.f32 %v4519_v27, %v5610_v61  ;;  %v2885_v62 = vmul.f32 -1.442695, %v1881_v40 }
 0x2e1   : > { %v2882_v6 = vmul.f32 -1.442695, %v1878_v48  ;;  %v1846_v16 = vmul.f32 %v4508_v44, %v1768_v4  ;;  %v2553_v23 = vadd.f32 %v3087_v30, %v5077_v57  ;;  %v2547_v19 = vpop.f32.mrb[1].mxu1  ;;  %v716_v17 = vadd.f32 %v3545_v29, %v646_v26 }
 0x2e2   : > { %3485 = vrcp.f32 %v2164_v32  ;;  %v2548_v39 = vadd.f32 %v5077_v57, %v2547_v19  ;;  %v748_v46 = vadd.f32 %v3545_v29, %v678_v60 }
 0x2e3   : > { %v3478_v28 = vpop.eup %3477  ;;  %3487 = vpow2.f32 %v2882_v6  ;;  %v1910_v22 = vadd.f32 %v1846_v16, %v1522_v37  ;;  %2739 = vst [vmem:[%s5092_s30 + $0x108] sm:$0xff] %v2553_v23  ;;  %v1104_v59 = vadd.f32 %v1040_v31, %v716_v17 }
 0x2e4   : > { %v2165_v49 = vadd.f32 1.0, %v3478_v28  ;;  %2738 = vst [vmem:[%s5092_s30 + $0x100] sm:$0xff] %v2548_v39  ;;  %v1772_v47 = vpop.permute.xlu1 %1771  ;;  %v1136_v30 = vadd.f32 %v1072_v14, %v748_v46 }
 0x2e5   : > { %v2914_v1 = vmul.f32 -1.442695, %v1910_v22  ;;  %v1847_v42 = vmul.f32 %v4508_v44, %v1772_v47  ;;  %v1492_v34 = vadd.f32 %v1428_v55, %v1104_v59 }
 0x2e6   : > { %3489 = vrcp.f32 %v2165_v49 }
 0x2e7   : > { %3491 = vpow2.f32 %v2914_v1  ;;  %v1911_v10 = vadd.f32 %v1847_v42, %v1523_v3 }
 0x2e8   : > { %v3480_v9 = vpop.eup %3479 }
 0x2e9   : > { %v3482_v11 = vpop.eup %3481  ;;  %v2915_v52 = vmul.f32 -1.442695, %v1911_v10  ;;  %v1388_v33 = vpop.permute.xlu1 %1387  ;;  %3076 = vmatprep.mubr.f32.mxu0 %v3480_v9 }
 0x2ea   : > { %v3484_v7 = vpop.eup %3483  ;;  %3077 = vmatmul.mubr.f32.gmra.mrb[26].mxu0 %v3482_v11  ;;  %v1460_v38 = vmul.f32 %v4519_v27, %v1388_v33 }
 0x2eb   : > { %3493 = vpow2.f32 %v2915_v52  ;;  %v2135_v0 = vadd.f32 1.0, %v3484_v7 }
 0x2ec   : > { %v3486_v35 = vpop.eup %3485  ;;  %v3090_v41 = vpop.f32.mrb[2].mxu1  ;;  %v1524_v23 = vadd.f32 %v1460_v38, %v1136_v30 }
 0x2ed   : > { %v3488_v36 = vpop.eup %3487  ;;  %v2563_v24 = vadd.f32 %v3090_v41, %v5077_v57  ;;  %v2557_v43 = vpop.f32.mrb[3].mxu1  ;;  %3124 = vmatprep.mubr.f32.mxu1 %v3486_v35 }
 0x2ee   : > { %v2134_v25 = vadd.f32 1.0, %v3488_v36  ;;  %v2558_v12 = vadd.f32 %v5077_v57, %v2557_v43  ;;  %v1648_v48 = vpop.permute.xlu1 %1647 }
 0x2ef   : > { %2741 = vst [vmem:[%s5092_s30 + $0x118] sm:$0xff] %v2563_v24  ;;  %v1816_v32 = vmul.f32 %v4508_v44, %v1648_v48 }
 0x2f0   : > { %v3490_v4 = vpop.eup %3489  ;;  %3495 = vrcp.f32 %v2134_v25  ;;  %2740 = vst [vmem:[%s5092_s30 + $0x110] sm:$0xff] %v2558_v12 }
 0x2f1   : > { %v3492_v21 = vpop.eup %3491  ;;  %3497 = vrcp.f32 %v2135_v0  ;;  %v1880_v37 = vadd.f32 %v1816_v32, %v1492_v34  ;;  %3125 = vmatmul.mubr.f32.gmra.mrb[26].mxu1 %v3490_v4 }
 0x2f2   : > { %3499 = vpow2.f32 %v2885_v62  ;;  %v2166_v6 = vadd.f32 1.0, %v3492_v21  ;;  %v1776_v16 = vpop.permute.xlu1 %1775 }
 0x2f3   : > { %v2884_v19 = vmul.f32 -1.442695, %v1880_v37  ;;  %v1848_v2 = vmul.f32 %v4508_v44, %v1776_v16 }
 0x2f4   : > { %3501 = vrcp.f32 %v2166_v6 }
 0x2f5   : > { %v3494_v27 = vpop.eup %3493  ;;  %3503 = vpow2.f32 %v2884_v19  ;;  %v1912_v5 = vadd.f32 %v1848_v2, %v1524_v23 }
 0x2f6   : > { %v2167_v39 = vadd.f32 1.0, %v3494_v27  ;;  %v1780_v28 = vpop.permute.xlu1 %1779 }
 0x2f7   : > { %v2916_v56 = vmul.f32 -1.442695, %v1912_v5  ;;  %v1849_v20 = vmul.f32 %v4508_v44, %v1780_v28 }
 0x2f8   : > { %3505 = vrcp.f32 %v2167_v39 }
 0x2f9   : > { %3507 = vpow2.f32 %v2916_v56  ;;  %v1913_v22 = vadd.f32 %v1849_v20, %v4705_v50 }
 0x2fa   : > { %v3496_v51 = vpop.eup %3495 }
 0x2fb   : > { %v3498_v13 = vpop.eup %3497  ;;  %v2917_v45 = vmul.f32 -1.442695, %v1913_v22  ;;  %3079 = vmatprep.mubr.f32.mxu0 %v3496_v51 }
 0x2fc   : > { %v3500_v49 = vpop.eup %3499  ;;  %3080 = vmatmul.mubr.f32.gmra.mrb[28].mxu0 %v3498_v13 }
 0x2fd   : > { %3509 = vpow2.f32 %v2917_v45  ;;  %v2137_v42 = vadd.f32 1.0, %v3500_v49 }
 0x2fe   : > { %v3502_v47 = vpop.eup %3501  ;;  %v3093_v3 = vpop.f32.mrb[4].mxu1 }
 0x2ff   : > { %v3504_v1 = vpop.eup %3503  ;;  %v2573_v8 = vadd.f32 %v3093_v3, %v5077_v57  ;;  %v2567_v44 = vpop.f32.mrb[5].mxu1  ;;  %3127 = vmatprep.mubr.f32.mxu1 %v3502_v47 }
 0x300   : > { %v2136_v54 = vadd.f32 1.0, %v3504_v1  ;;  %v2568_v50 = vadd.f32 %v5077_v57, %v2567_v44 }
 0x301   : > { %2743 = vst [vmem:[%s5092_s30 + $0x128] sm:$0xff] %v2573_v8 }
 0x302   : > { %v3506_v53 = vpop.eup %3505  ;;  %3511 = vrcp.f32 %v2136_v54  ;;  %2742 = vst [vmem:[%s5092_s30 + $0x120] sm:$0xff] %v2568_v50 }
 0x303   : > { %v3508_v26 = vpop.eup %3507  ;;  %3513 = vrcp.f32 %v2137_v42  ;;  %3128 = vmatmul.mubr.f32.gmra.mrb[28].mxu1 %v3506_v53 }
 0x304   : > { %v2168_v10 = vadd.f32 1.0, %v3508_v26 }
 0x306   : > { %3515 = vrcp.f32 %v2168_v10 }
 0x307   : > { %v3510_v9 = vpop.eup %3509 }
 0x308   : > { %v2169_v63 = vadd.f32 1.0, %v3510_v9 }
 0x30a   : > { %3517 = vrcp.f32 %v2169_v63 }
 0x30c   : > { %v3512_v11 = vpop.eup %3511 }
 0x30d   : > { %v3514_v18 = vpop.eup %3513  ;;  %3082 = vmatprep.mubr.f32.mxu0 %v3512_v11 }
 0x30e   : > { %3083 = vmatmul.mubr.f32.gmra.mrb[30].mxu0 %v3514_v18 }
 0x310   : > { %v3516_v31 = vpop.eup %3515  ;;  %v3096_v52 = vpop.f32.mrb[6].mxu1 }
 0x311   : > { %v2583_v33 = vadd.f32 %v3096_v52, %v5077_v57  ;;  %v2577_v7 = vpop.f32.mrb[7].mxu1  ;;  %3130 = vmatprep.mubr.f32.mxu1 %v3516_v31 }
 0x312   : > { %v2578_v40 = vadd.f32 %v5077_v57, %v2577_v7 }
 0x313   : > { %2745 = vst [vmem:[%s5092_s30 + $0x138] sm:$0xff] %v2583_v33 }
 0x314   : > { %v3518_v29 = vpop.eup %3517  ;;  %2744 = vst [vmem:[%s5092_s30 + $0x130] sm:$0xff] %v2578_v40 }
 0x315   : > { %3131 = vmatmul.mubr.f32.gmra.mrb[30].mxu1 %v3518_v29 }
 0x316   : > { %v3042_v17 = vpop.f32.mrb[2].mxu0 }
 0x317   : > { %v2403_v58 = vadd.f32 %v3042_v17, %v5077_v57  ;;  %v2397_v60 = vpop.f32.mrb[3].mxu0 }
 0x318   : > { %v2398_v61 = vadd.f32 %v5077_v57, %v2397_v60 }
 0x319   : > { %2709 = vst [vmem:[%s5092_s30 + $0x18] sm:$0xff] %v2403_v58 }
 0x31a   : > { %2708 = vst [vmem:[%s5092_s30 + $0x10] sm:$0xff] %v2398_v61  ;;  %v3045_v55 = vpop.f32.mrb[4].mxu0 }
 0x31b   : > { %v2413_v35 = vadd.f32 %v3045_v55, %v5077_v57  ;;  %v2407_v41 = vpop.f32.mrb[5].mxu0 }
 0x31c   : > { %v2408_v36 = vadd.f32 %v5077_v57, %v2407_v41 }
 0x31d   : > { %2711 = vst [vmem:[%s5092_s30 + $0x28] sm:$0xff] %v2413_v35 }
 0x31e   : > { %2710 = vst [vmem:[%s5092_s30 + $0x20] sm:$0xff] %v2408_v36  ;;  %v3048_v59 = vpop.f32.mrb[6].mxu0 }
 0x31f   : > { %v2423_v15 = vadd.f32 %v3048_v59, %v5077_v57  ;;  %v2417_v14 = vpop.f32.mrb[7].mxu0 }
 0x320   : > { %v2418_v0 = vadd.f32 %v5077_v57, %v2417_v14 }
 0x321   : > { %2713 = vst [vmem:[%s5092_s30 + $0x38] sm:$0xff] %v2423_v15 }
 0x322   : > { %2712 = vst [vmem:[%s5092_s30 + $0x30] sm:$0xff] %v2418_v0  ;;  %v3051_v24 = vpop.f32.mrb[8].mxu0 }
 0x323   : > { %v2433_v43 = vadd.f32 %v3051_v24, %v5077_v57  ;;  %v2427_v62 = vpop.f32.mrb[9].mxu0  ;;  %v3099_v25 = vpop.f32.mrb[8].mxu1 }
 0x324   : > { %v2428_v12 = vadd.f32 %v5077_v57, %v2427_v62  ;;  %v2593_v48 = vadd.f32 %v3099_v25, %v5077_v57  ;;  %v2587_v46 = vpop.f32.mrb[9].mxu1 }
 0x325   : > { %2715 = vst [vmem:[%s5092_s30 + $0x48] sm:$0xff] %v2433_v43  ;;  %v2588_v34 = vadd.f32 %v5077_v57, %v2587_v46 }
 0x326   : > { %2714 = vst [vmem:[%s5092_s30 + $0x40] sm:$0xff] %v2428_v12  ;;  %2747 = vst [vmem:[%s5092_s30 + $0x148] sm:$0xff] %v2593_v48 }
 0x327   : > { %2746 = vst [vmem:[%s5092_s30 + $0x140] sm:$0xff] %v2588_v34 }
 0x32e   : > { %v3054_v38 = vpop.f32.mrb[10].mxu0 }
 0x32f   : > { %v2443_v32 = vadd.f32 %v3054_v38, %v5077_v57  ;;  %v2437_v4 = vpop.f32.mrb[11].mxu0 }
 0x330   : > { %v2438_v21 = vadd.f32 %v5077_v57, %v2437_v4 }
 0x331   : > { %2717 = vst [vmem:[%s5092_s30 + $0x58] sm:$0xff] %v2443_v32 }
 0x332   : > { %2716 = vst [vmem:[%s5092_s30 + $0x50] sm:$0xff] %v2438_v21 }
 0x334   : > { %v3102_v30 = vpop.f32.mrb[10].mxu1 }
 0x335   : > { %v2603_v37 = vadd.f32 %v3102_v30, %v5077_v57  ;;  %v2597_v6 = vpop.f32.mrb[11].mxu1 }
 0x336   : > { %v2598_v16 = vadd.f32 %v5077_v57, %v2597_v6 }
 0x337   : > { %2749 = vst [vmem:[%s5092_s30 + $0x158] sm:$0xff] %v2603_v37 }
 0x338   : > { %2748 = vst [vmem:[%s5092_s30 + $0x150] sm:$0xff] %v2598_v16 }
 0x343   : > { %v3057_v23 = vpop.f32.mrb[12].mxu0 }
 0x344   : > { %v2453_v19 = vadd.f32 %v3057_v23, %v5077_v57  ;;  %v2447_v2 = vpop.f32.mrb[13].mxu0 }
 0x345   : > { %v2448_v27 = vadd.f32 %v5077_v57, %v2447_v2 }
 0x346   : > { %2719 = vst [vmem:[%s5092_s30 + $0x68] sm:$0xff] %v2453_v19  ;;  %v3105_v5 = vpop.f32.mrb[12].mxu1 }
 0x347   : > { %2718 = vst [vmem:[%s5092_s30 + $0x60] sm:$0xff] %v2448_v27  ;;  %v2613_v39 = vadd.f32 %v3105_v5, %v5077_v57  ;;  %v2607_v28 = vpop.f32.mrb[13].mxu1 }
 0x348   : > { %v2608_v56 = vadd.f32 %v5077_v57, %v2607_v28 }
 0x349   : > { %2751 = vst [vmem:[%s5092_s30 + $0x168] sm:$0xff] %v2613_v39 }
 0x34a   : > { %2750 = vst [vmem:[%s5092_s30 + $0x160] sm:$0xff] %v2608_v56 }
 0x353   : > { %v3060_v20 = vpop.f32.mrb[14].mxu0 }
 0x354   : > { %v2463_v22 = vadd.f32 %v3060_v20, %v5077_v57  ;;  %v2457_v51 = vpop.f32.mrb[15].mxu0 }
 0x355   : > { %v2458_v13 = vadd.f32 %v5077_v57, %v2457_v51 }
 0x356   : > { %2721 = vst [vmem:[%s5092_s30 + $0x78] sm:$0xff] %v2463_v22 }
 0x357   : > { %2720 = vst [vmem:[%s5092_s30 + $0x70] sm:$0xff] %v2458_v13 }
 0x358   : > { %v3108_v45 = vpop.f32.mrb[14].mxu1 }
 0x359   : > { %v2623_v49 = vadd.f32 %v3108_v45, %v5077_v57  ;;  %v2617_v47 = vpop.f32.mrb[15].mxu1 }
 0x35a   : > { %v2618_v3 = vadd.f32 %v5077_v57, %v2617_v47 }
 0x35b   : > { %2753 = vst [vmem:[%s5092_s30 + $0x178] sm:$0xff] %v2623_v49 }
 0x35c   : > { %2752 = vst [vmem:[%s5092_s30 + $0x170] sm:$0xff] %v2618_v3 }
 0x363   : > { %v3063_v1 = vpop.f32.mrb[16].mxu0 }
 0x364   : > { %v2473_v42 = vadd.f32 %v3063_v1, %v5077_v57  ;;  %v2467_v8 = vpop.f32.mrb[17].mxu0 }
 0x365   : > { %v2468_v44 = vadd.f32 %v5077_v57, %v2467_v8 }
 0x366   : > { %2723 = vst [vmem:[%s5092_s30 + $0x88] sm:$0xff] %v2473_v42 }
 0x367   : > { %2722 = vst [vmem:[%s5092_s30 + $0x80] sm:$0xff] %v2468_v44 }
 0x36a   : > { %v3111_v54 = vpop.f32.mrb[16].mxu1 }
 0x36b   : > { %v2633_v50 = vadd.f32 %v3111_v54, %v5077_v57  ;;  %v2627_v53 = vpop.f32.mrb[17].mxu1 }
 0x36c   : > { %v2628_v26 = vadd.f32 %v5077_v57, %v2627_v53 }
 0x36d   : > { %2755 = vst [vmem:[%s5092_s30 + $0x188] sm:$0xff] %v2633_v50 }
 0x36e   : > { %2754 = vst [vmem:[%s5092_s30 + $0x180] sm:$0xff] %v2628_v26 }
 0x375   : > { %v3066_v10 = vpop.f32.mrb[18].mxu0 }
 0x376   : > { %v2483_v9 = vadd.f32 %v3066_v10, %v5077_v57  ;;  %v2477_v63 = vpop.f32.mrb[19].mxu0 }
 0x377   : > { %v2478_v11 = vadd.f32 %v5077_v57, %v2477_v63 }
 0x378   : > { %2725 = vst [vmem:[%s5092_s30 + $0x98] sm:$0xff] %v2483_v9 }
 0x379   : > { %2724 = vst [vmem:[%s5092_s30 + $0x90] sm:$0xff] %v2478_v11 }
 0x37c   : > { %v3114_v18 = vpop.f32.mrb[18].mxu1 }
 0x37d   : > { %v2643_v31 = vadd.f32 %v3114_v18, %v5077_v57  ;;  %v2637_v52 = vpop.f32.mrb[19].mxu1 }
 0x37e   : > { %v2638_v33 = vadd.f32 %v5077_v57, %v2637_v52 }
 0x37f   : > { %2757 = vst [vmem:[%s5092_s30 + $0x198] sm:$0xff] %v2643_v31 }
 0x380   : > { %2756 = vst [vmem:[%s5092_s30 + $0x190] sm:$0xff] %v2638_v33 }
 0x387   : > { %v3069_v7 = vpop.f32.mrb[20].mxu0 }
 0x388   : > { %v2493_v40 = vadd.f32 %v3069_v7, %v5077_v57  ;;  %v2487_v29 = vpop.f32.mrb[21].mxu0 }
 0x389   : > { %v2488_v17 = vadd.f32 %v5077_v57, %v2487_v29 }
 0x38a   : > { %2727 = vst [vmem:[%s5092_s30 + $0xa8] sm:$0xff] %v2493_v40 }
 0x38b   : > { %2726 = vst [vmem:[%s5092_s30 + $0xa0] sm:$0xff] %v2488_v17 }
 0x38e   : > { %v3117_v58 = vpop.f32.mrb[20].mxu1 }
 0x38f   : > { %v2653_v60 = vadd.f32 %v3117_v58, %v5077_v57  ;;  %v2647_v61 = vpop.f32.mrb[21].mxu1 }
 0x390   : > { %v2648_v55 = vadd.f32 %v5077_v57, %v2647_v61 }
 0x391   : > { %2759 = vst [vmem:[%s5092_s30 + $0x1a8] sm:$0xff] %v2653_v60 }
 0x392   : > { %2758 = vst [vmem:[%s5092_s30 + $0x1a0] sm:$0xff] %v2648_v55 }
 0x399   : > { %v3072_v35 = vpop.f32.mrb[22].mxu0 }
 0x39a   : > { %v2503_v41 = vadd.f32 %v3072_v35, %v5077_v57  ;;  %v2497_v36 = vpop.f32.mrb[23].mxu0 }
 0x39b   : > { %v2498_v59 = vadd.f32 %v5077_v57, %v2497_v36 }
 0x39c   : > { %2729 = vst [vmem:[%s5092_s30 + $0xb8] sm:$0xff] %v2503_v41 }
 0x39d   : > { %2728 = vst [vmem:[%s5092_s30 + $0xb0] sm:$0xff] %v2498_v59 }
 0x3a0   : > { %v3120_v15 = vpop.f32.mrb[22].mxu1 }
 0x3a1   : > { %v2663_v14 = vadd.f32 %v3120_v15, %v5077_v57  ;;  %v2657_v0 = vpop.f32.mrb[23].mxu1 }
 0x3a2   : > { %v2658_v24 = vadd.f32 %v5077_v57, %v2657_v0 }
 0x3a3   : > { %2761 = vst [vmem:[%s5092_s30 + $0x1b8] sm:$0xff] %v2663_v14 }
 0x3a4   : > { %2760 = vst [vmem:[%s5092_s30 + $0x1b0] sm:$0xff] %v2658_v24 }
 0x3ab   : > { %v3075_v43 = vpop.f32.mrb[24].mxu0 }
 0x3ac   : > { %v2513_v62 = vadd.f32 %v3075_v43, %v5077_v57  ;;  %v2507_v25 = vpop.f32.mrb[25].mxu0 }
 0x3ad   : > { %v2508_v12 = vadd.f32 %v5077_v57, %v2507_v25 }
 0x3ae   : > { %2731 = vst [vmem:[%s5092_s30 + $0xc8] sm:$0xff] %v2513_v62 }
 0x3af   : > { %2730 = vst [vmem:[%s5092_s30 + $0xc0] sm:$0xff] %v2508_v12 }
 0x3b2   : > { %v3123_v48 = vpop.f32.mrb[24].mxu1 }
 0x3b3   : > { %v2673_v46 = vadd.f32 %v3123_v48, %v5077_v57  ;;  %v2667_v34 = vpop.f32.mrb[25].mxu1 }
 0x3b4   : > { %v2668_v38 = vadd.f32 %v5077_v57, %v2667_v34 }
 0x3b5   : > { %2763 = vst [vmem:[%s5092_s30 + $0x1c8] sm:$0xff] %v2673_v46 }
 0x3b6   : > { %2762 = vst [vmem:[%s5092_s30 + $0x1c0] sm:$0xff] %v2668_v38 }
 0x3bd   : > { %v3078_v32 = vpop.f32.mrb[26].mxu0 }
 0x3be   : > { %v2523_v4 = vadd.f32 %v3078_v32, %v5077_v57  ;;  %v2517_v21 = vpop.f32.mrb[27].mxu0 }
 0x3bf   : > { %v2518_v30 = vadd.f32 %v5077_v57, %v2517_v21 }
 0x3c0   : > { %2733 = vst [vmem:[%s5092_s30 + $0xd8] sm:$0xff] %v2523_v4 }
 0x3c1   : > { %2732 = vst [vmem:[%s5092_s30 + $0xd0] sm:$0xff] %v2518_v30 }
 0x3c4   : > { %v3126_v37 = vpop.f32.mrb[26].mxu1 }
 0x3c5   : > { %v2683_v6 = vadd.f32 %v3126_v37, %v5077_v57  ;;  %v2677_v16 = vpop.f32.mrb[27].mxu1 }
 0x3c6   : > { %v2678_v23 = vadd.f32 %v5077_v57, %v2677_v16 }
 0x3c7   : > { %2765 = vst [vmem:[%s5092_s30 + $0x1d8] sm:$0xff] %v2683_v6 }
 0x3c8   : > { %2764 = vst [vmem:[%s5092_s30 + $0x1d0] sm:$0xff] %v2678_v23 }
 0x3cf   : > { %v3081_v19 = vpop.f32.mrb[28].mxu0 }
 0x3d0   : > { %v2533_v2 = vadd.f32 %v3081_v19, %v5077_v57  ;;  %v2527_v27 = vpop.f32.mrb[29].mxu0 }
 0x3d1   : > { %v2528_v5 = vadd.f32 %v5077_v57, %v2527_v27 }
 0x3d2   : > { %2735 = vst [vmem:[%s5092_s30 + $0xe8] sm:$0xff] %v2533_v2 }
 0x3d3   : > { %2734 = vst [vmem:[%s5092_s30 + $0xe0] sm:$0xff] %v2528_v5 }
 0x3d6   : > { %v3129_v39 = vpop.f32.mrb[28].mxu1 }
 0x3d7   : > { %v2693_v28 = vadd.f32 %v3129_v39, %v5077_v57  ;;  %v2687_v56 = vpop.f32.mrb[29].mxu1 }
 0x3d8   : > { %v2688_v20 = vadd.f32 %v5077_v57, %v2687_v56 }
 0x3d9   : > { %2767 = vst [vmem:[%s5092_s30 + $0x1e8] sm:$0xff] %v2693_v28 }
 0x3da   : > { %2766 = vst [vmem:[%s5092_s30 + $0x1e0] sm:$0xff] %v2688_v20 }
 0x3e1   : > { %v3084_v22 = vpop.f32.mrb[30].mxu0 }
 0x3e2   : > { %v2543_v51 = vadd.f32 %v3084_v22, %v5077_v57  ;;  %v2537_v13 = vpop.f32.mrb[31].mxu0 }
 0x3e3   : > { %v2538_v45 = vadd.f32 %v5077_v57, %v2537_v13 }
 0x3e4   : > { %2737 = vst [vmem:[%s5092_s30 + $0xf8] sm:$0xff] %v2543_v51 }
 0x3e5   : > { %2736 = vst [vmem:[%s5092_s30 + $0xf0] sm:$0xff] %v2538_v45 }
 0x3e8   : > { %v3132_v49 = vpop.f32.mrb[30].mxu1 }
 0x3e9   : > { %v2703_v47 = vadd.f32 %v3132_v49, %v5077_v57  ;;  %v2697_v3 = vpop.f32.mrb[31].mxu1 }
 0x3ea   : > { %v2698_v1 = vadd.f32 %v5077_v57, %v2697_v3 }
 0x3eb   : > { %2769 = vst [vmem:[%s5092_s30 + $0x1f8] sm:$0xff] %v2703_v47 }
 0x3ec   : > { %2768 = vst [vmem:[%s5092_s30 + $0x1f0] sm:$0xff] %v2698_v1 }
 0x3ed   : > { %3559 = shalt.err (!%p3556_p3)
}
 0x3ee   : > { %s3560_s9 = scalar_lea.hbm %s5251_s13, 8192  ;;  %s3564_s26 = scalar_lea.hbm %s5306_s5, 32768 }
 0x3ef   : > { %p3561_p4 = scmp.ne.s32.totalorder %s5251_s13, %s3560_s9  ;;  %p3565_p9 = scmp.lt.u32.totalorder %s5251_s13, %s5306_s5 }
 0x3f0   : > { %p3566_p10 = scmp.lt.u32.totalorder %s3564_s26, %s3560_s9  ;;  %p3568_p12 = scmp.lt.u32.totalorder %s3560_s9, %s5251_s13 }
 0x3f1   : > { %p3562_p7 = pnand %p3561_p4, %p3685_p5 }
 0x3f2   : > { %p3567_p11 = por %p3566_p10, %p3565_p9 }
 0x3f3   : > { %p3563_p8 = pneg %p3562_p7 }
 0x3f4   : > { %p3569_p13 = por %p3568_p12, %p3567_p11 }
 0x3f6   : > { %p3570_p0 = pnand %p3569_p13, %p3563_p8 }
 0x3f8   : > { %3573 = shalt.err (!%p3570_p0)
}
 0x3f9   : > { %s3615_s7 = smov 128   ;;  %s3616_s8 = smov 8  }
 0x3fa   : > { %3181 = dma.vmem_to_hbm [thread:$0]  (%p3685_p5), %s5253_s10, 8192, %s5251_s13, %s5260_s22, %s3615_s7, %s3615_s7, %s3616_s8  }
 0x3fb PF: > { %p3187_p1 = scmp.ge.s32.totalorder %s3608_s21, 2  ;;  %s2799_s11 = sand.u32 1, %s3596_s18  }
 0x3fc   : > { %s2800_s12 = scalar_lea.sflag [#allocation3], %s2799_s11 }
 0x3fd   : > { %p3184_p2 = pnand %p3187_p1, %p3689_p6 }
 0x3ff   : > { %3591 = dma.done.wait (!%p3184_p2), %s2800_s12, 8192  }
 0x400   : > { %3593 = vsyncadd (!%p3184_p2), %s2800_s12, 4294959104  ;;  %p15_p3 = scmp.ge.s32.totalorder %s3672_s24, 6   ;;  %s5612_s18 = smov %s3600_s19 }
 0x401   : > { %s5613_s19 = smov %s3604_s20  ;;  %s5614_s20 = smov %s3683_s27 }
 0x402   : > { %s5615_s21 = smov %s3672_s24  ;;  %17 = sbr.rel (!%p15_p3) target bundleno = 3 (0x3), region = 75 }
 0x409   :  { %2805 = vsyncpa [#allocation3], 1 }
 0x40a   :  { %2807 = vsyncpa [#allocation3 + $0x1], 1 }

</bundles_post_ra>
